<compile_context>
chip_gen: v5e
topology: v5e:2x2
jax: 0.10.0
libtpu: 0.0.40
codegen_flags: <defaults>
</compile_context>

<pallas_src>
import numpy as np
import jax
import jax.numpy as jnp
from jax import lax
from jax.experimental import pallas as pl
from jax.experimental.pallas import tpu as pltpu

# ---- model hyper-parameters (consistent with the PyTorch module) ------------
C_IN = 4          # shape[0]  (input "channels" / bars features)
L = 16            # shape[1]  (time steps)
K = 5             # Conv1d kernel size
ACTIONS = 3
B = 2             # batch used in the demo
CONV_CH = 128
HIDDEN = 512
L1 = L - K + 1            # after conv1 (valid conv)  -> 12
L2 = L1 - K + 1           # after conv2               -> 8
SIZE = CONV_CH * L2       # Flatten size              -> 1024
KC = K * C_IN             # conv1 im2col width        -> 20
OUTW = 1 + ACTIONS        # packed FC2 output width (val | adv)


# ---------------------------- fused Pallas kernel -----------------------------
def dqn_fused_kernel(xw_ref, w1_ref, b1_ref, w2_ref, b2_ref,
                     wfc1_ref, bfc1_ref, wfc2_ref, bfc2_ref, o_ref):
    # xw_ref  : (1, L1, KC)        bf16  per-sample conv1 im2col
    # w1_ref  : (KC, 128)          bf16  conv1 weight, row k*C_IN+c
    # b1_ref  : (1, 128)           f32
    # w2_ref  : (K*128, 128)       bf16  conv2 weight, row k*128+i
    # b2_ref  : (1, 128)           f32
    # wfc1_ref: (L2*128, 2*HIDDEN) bf16  packed [val1 | adv1], row t*128+c
    # bfc1_ref: (1, 2*HIDDEN)      f32
    # wfc2_ref: (2*HIDDEN, OUTW)   bf16  block-diagonal [val2 | adv2]
    # bfc2_ref: (1, OUTW)          f32
    # o_ref   : (1, 1, ACTIONS)    f32

    # ---- conv1: single im2col matmul (bf16 x bf16 -> f32 acc) ----------------
    lhs1 = xw_ref[0]                                              # (L1, KC) bf16
    h1 = jnp.dot(lhs1, w1_ref[...], preferred_element_type=jnp.float32)
    h1 = jnp.maximum(h1 + b1_ref[...], 0.0)                       # (L1, 128) f32
    h1 = h1.astype(jnp.bfloat16)                                  # cast ONCE

    # ---- conv2: lane-concat the K shifted slices -> ONE (8,640)x(640,128) ----
    lhs2 = jnp.concatenate([h1[k:k + L2, :] for k in range(K)], axis=-1)
    h2 = jnp.dot(lhs2, w2_ref[...], preferred_element_type=jnp.float32)
    h2 = jnp.maximum(h2 + b2_ref[...], 0.0)                       # (L2, 128) f32
    # flatten (row-major t*128+c) to a lane-dense (1, 1024) row for the FC stack
    h2 = h2.reshape(1, SIZE).astype(jnp.bfloat16)

    # ---- packed dueling FC1: ONE (1,1024)x(1024,1024) matmul -----------------
    hid = jnp.dot(h2, wfc1_ref[...], preferred_element_type=jnp.float32)
    hid = jnp.maximum(hid + bfc1_ref[...], 0.0).astype(jnp.bfloat16)  # (1, 2H)

    # ---- packed block-diagonal FC2 + dueling combine --------------------------
    out = jnp.dot(hid, wfc2_ref[...],
                  preferred_element_type=jnp.float32) + bfc2_ref[...]  # (1, 1+A)
    val = out[:, 0:1]
    adv = out[:, 1:1 + ACTIONS]
    o_ref[0] = val + (adv - jnp.mean(adv, axis=-1, keepdims=True))


# ------------------------------ wrapper ---------------------------------------
def dqn_conv1d_forward(p, x):
    """x: (B, C_IN, L) float32, NCW like PyTorch.  Returns (B, ACTIONS)."""
    bsz = x.shape[0]
    # Tiny glue (fuses into one XLA fusion under jit):
    #   xw[b, t, k*C_IN + c] = x[b, c, t + k]   (conv1 im2col), built in bf16.
    x_t = jnp.transpose(x, (0, 2, 1))                                  # (B, L, C_IN)
    xw = jnp.concatenate([x_t[:, k:k + L1, :] for k in range(K)], axis=-1)
    xw = xw.astype(jnp.bfloat16)                                       # (B, L1, KC)

    def wspec(shape):  # weights: constant index_map -> DMA'd once, VMEM-resident
        return pl.BlockSpec(shape, lambda i: (0,) * len(shape))

    out = pl.pallas_call(
        dqn_fused_kernel,
        out_shape=jax.ShapeDtypeStruct((bsz, 1, ACTIONS), jnp.float32),
        grid=(bsz,),
        in_specs=[
            pl.BlockSpec((1, L1, KC), lambda i: (i, 0, 0)),   # per-sample input
            wspec((KC, CONV_CH)),                             # w1
            wspec((1, CONV_CH)),                              # b1
            wspec((K * CONV_CH, CONV_CH)),                    # w2
            wspec((1, CONV_CH)),                              # b2
            wspec((SIZE, 2 * HIDDEN)),                        # wfc1 (packed)
            wspec((1, 2 * HIDDEN)),                           # bfc1
            wspec((2 * HIDDEN, OUTW)),                        # wfc2 (block diag)
            wspec((1, OUTW)),                                 # bfc2
        ],
        out_specs=pl.BlockSpec((1, 1, ACTIONS), lambda i: (i, 0, 0)),
        compiler_params=pltpu.CompilerParams(
            dimension_semantics=("parallel",)),               # 2 TCs on v7x
    )(xw, p["w1"], p["b1"], p["w2"], p["b2"],
      p["wfc1"], p["bfc1"], p["wfc2"], p["bfc2"])
    return out.reshape(bsz, ACTIONS)


# --------------------- deterministic parameter init ---------------------------
def init_params(key):
    ks = jax.random.split(key, 12)

    def u(k, shape, fan_in):
        bound = 1.0 / np.sqrt(fan_in)
        return jax.random.uniform(k, shape, jnp.float32, -bound, bound)

    # PyTorch-native shapes (out, in, k) / (out, in)
    tp = {
        "conv1_w": u(ks[0], (CONV_CH, C_IN, K), C_IN * K),
        "conv1_b": u(ks[1], (CONV_CH,), C_IN * K),
        "conv2_w": u(ks[2], (CONV_CH, CONV_CH, K), CONV_CH * K),
        "conv2_b": u(ks[3], (CONV_CH,), CONV_CH * K),
        "val1_w": u(ks[4], (HIDDEN, SIZE), SIZE),
        "val1_b": u(ks[5], (HIDDEN,), SIZE),
        "val2_w": u(ks[6], (1, HIDDEN), HIDDEN),
        "val2_b": u(ks[7], (1,), HIDDEN),
        "adv1_w": u(ks[8], (HIDDEN, SIZE), SIZE),
        "adv1_b": u(ks[9], (HIDDEN,), SIZE),
        "adv2_w": u(ks[10], (ACTIONS, HIDDEN), HIDDEN),
        "adv2_b": u(ks[11], (ACTIONS,), HIDDEN),
    }

    # conv1 im2col weight: (K*C_IN, 128), row k*C_IN + c
    w1 = jnp.transpose(tp["conv1_w"], (2, 1, 0)).reshape(KC, CONV_CH)
    # conv2 im2col weight: (K*128, 128), row k*128 + i
    w2 = jnp.transpose(tp["conv2_w"], (2, 1, 0)).reshape(K * CONV_CH, CONV_CH)

    # Packed FC1 (SIZE, 2*HIDDEN): kernel's flatten index is t*128 + c, while
    # PyTorch's Flatten column is c*L2 + t -> permute once at setup time.
    def fc1_rows(w):  # (HIDDEN, SIZE) -> (SIZE, HIDDEN) with row t*128 + c
        return jnp.transpose(w.reshape(HIDDEN, CONV_CH, L2), (2, 1, 0)).reshape(SIZE, HIDDEN)
    wfc1 = jnp.concatenate([fc1_rows(tp["val1_w"]), fc1_rows(tp["adv1_w"])], axis=-1)

    # Packed block-diagonal FC2: (2*HIDDEN, 1+ACTIONS)
    top = jnp.concatenate([tp["val2_w"].T,
                           jnp.zeros((HIDDEN, ACTIONS), jnp.float32)], axis=1)
    bot = jnp.concatenate([jnp.zeros((HIDDEN, 1), jnp.float32),
                           tp["adv2_w"].T], axis=1)
    wfc2 = jnp.concatenate([top, bot], axis=0)

    kp = {
        "w1": w1.astype(jnp.bfloat16),                                   # (20, 128)
        "b1": tp["conv1_b"].reshape(1, CONV_CH).astype(jnp.float32),     # f32 bias
        "w2": w2.astype(jnp.bfloat16),                                   # (640, 128)
        "b2": tp["conv2_b"].reshape(1, CONV_CH).astype(jnp.float32),
        "wfc1": wfc1.astype(jnp.bfloat16),                               # (1024, 1024)
        "bfc1": jnp.concatenate([tp["val1_b"], tp["adv1_b"]]).reshape(1, 2 * HIDDEN),
        "wfc2": wfc2.astype(jnp.bfloat16),                               # (1024, 4)
        "bfc2": jnp.concatenate([tp["val2_b"], tp["adv2_b"]]).reshape(1, OUTW),
    }
    return tp, kp


# ----------------------- pure-JAX reference (PyTorch semantics) ---------------
def reference_forward(tp, x):
    h = lax.conv_general_dilated(x, tp["conv1_w"], (1,), "VALID",
                                 dimension_numbers=("NCH", "OIH", "NCH"))
    h = jnp.maximum(h + tp["conv1_b"][None, :, None], 0.0)
    h = lax.conv_general_dilated(h, tp["conv2_w"], (1,), "VALID",
                                 dimension_numbers=("NCH", "OIH", "NCH"))
    h = jnp.maximum(h + tp["conv2_b"][None, :, None], 0.0)
    flat = h.reshape(x.shape[0], SIZE)            # PyTorch Flatten: c*L2 + t
    hv = jnp.maximum(flat @ tp["val1_w"].T + tp["val1_b"], 0.0)
    val = hv @ tp["val2_w"].T + tp["val2_b"]
    ha = jnp.maximum(flat @ tp["adv1_w"].T + tp["adv1_b"], 0.0)
    adv = ha @ tp["adv2_w"].T + tp["adv2_b"]
    return val + (adv - adv.mean(axis=1, keepdims=True))


if __name__ == "__main__":
    key = jax.random.PRNGKey(0)
    kparam, kx = jax.random.split(key)
    torch_params, kern_params = init_params(kparam)
    x = jax.random.normal(kx, (B, C_IN, L), jnp.float32)

    fwd = jax.jit(dqn_conv1d_forward)
    out = jax.block_until_ready(fwd(kern_params, x))

    ref = reference_forward(torch_params, x)
    np.testing.assert_allclose(np.asarray(out), np.asarray(ref),
                               rtol=1e-2, atol=1e-2)
    assert out.shape == (B, ACTIONS)
    print("KERNEL_OK")
</pallas_src>

<mosaic_0001>
module attributes {stable_mosaic.version = 11 : i64} {
  func.func @dqn_fused_kernel(%arg0: i32, %arg1: memref<1x12x20xbf16, #tpu.memory_space<vmem>>, %arg2: memref<20x128xbf16, #tpu.memory_space<vmem>>, %arg3: memref<1x128xf32, #tpu.memory_space<vmem>>, %arg4: memref<640x128xbf16, #tpu.memory_space<vmem>>, %arg5: memref<1x128xf32, #tpu.memory_space<vmem>>, %arg6: memref<1024x1024xbf16, #tpu.memory_space<vmem>>, %arg7: memref<1x1024xf32, #tpu.memory_space<vmem>>, %arg8: memref<1024x4xbf16, #tpu.memory_space<vmem>>, %arg9: memref<1x4xf32, #tpu.memory_space<vmem>>, %arg10: memref<1x1x3xf32, #tpu.memory_space<vmem>>) attributes {dimension_semantics = [#tpu.dimension_semantics<parallel>], iteration_bounds = array<i64: 2>, scalar_prefetch = 0 : i64, scratch_operands = 0 : i64, tpu.core_type = #tpu.core_type<tc>, window_params = [{transform_indices = @transform_0, window_bounds = array<i64: 1, 12, 20>}, {pipeline_mode = #tpu.pipeline_mode<synchronous>, transform_indices = @transform_1, window_bounds = array<i64: 20, 128>}, {pipeline_mode = #tpu.pipeline_mode<synchronous>, transform_indices = @transform_2, window_bounds = array<i64: 1, 128>}, {pipeline_mode = #tpu.pipeline_mode<synchronous>, transform_indices = @transform_3, window_bounds = array<i64: 640, 128>}, {pipeline_mode = #tpu.pipeline_mode<synchronous>, transform_indices = @transform_4, window_bounds = array<i64: 1, 128>}, {pipeline_mode = #tpu.pipeline_mode<synchronous>, transform_indices = @transform_5, window_bounds = array<i64: 1024, 1024>}, {pipeline_mode = #tpu.pipeline_mode<synchronous>, transform_indices = @transform_6, window_bounds = array<i64: 1, 1024>}, {pipeline_mode = #tpu.pipeline_mode<synchronous>, transform_indices = @transform_7, window_bounds = array<i64: 1024, 4>}, {pipeline_mode = #tpu.pipeline_mode<synchronous>, transform_indices = @transform_8, window_bounds = array<i64: 1, 4>}, {transform_indices = @transform_9, window_bounds = array<i64: 1, 1, 3>}]} {
    %c0 = arith.constant 0 : index
    %c0_0 = arith.constant 0 : index
    %c0_1 = arith.constant 0 : index
    %0 = vector.load %arg1[%c0, %c0_0, %c0_1] : memref<1x12x20xbf16, #tpu.memory_space<vmem>>, vector<1x12x20xbf16>
    %1 = vector.shape_cast %0 : vector<1x12x20xbf16> to vector<12x20xbf16>
    %c0_2 = arith.constant 0 : index
    %c0_3 = arith.constant 0 : index
    %2 = vector.load %arg2[%c0_2, %c0_3] : memref<20x128xbf16, #tpu.memory_space<vmem>>, vector<20x128xbf16>
    %cst = arith.constant dense<0.000000e+00> : vector<12x128xf32>
    %3 = tpu.matmul %1, %2, %cst {dimension_numbers = #tpu.dot_dimension_numbers<[1], [0], [0], [1], [0, 0, 1, 1], [], []>} : vector<12x20xbf16>, vector<20x128xbf16>, vector<12x128xf32> -> vector<12x128xf32>
    %c0_4 = arith.constant 0 : index
    %c0_5 = arith.constant 0 : index
    %4 = vector.load %arg3[%c0_4, %c0_5] : memref<1x128xf32, #tpu.memory_space<vmem>>, vector<1x128xf32>
    %5 = vector.broadcast %4 : vector<1x128xf32> to vector<12x128xf32>
    %6 = arith.addf %3, %5 : vector<12x128xf32>
    %cst_6 = arith.constant 0.000000e+00 : f32
    %7 = vector.broadcast %cst_6 : f32 to vector<12x128xf32>
    %8 = arith.maximumf %6, %7 : vector<12x128xf32>
    %9 = arith.truncf %8 : vector<12x128xf32> to vector<12x128xbf16>
    %10 = vector.extract_strided_slice %9 {offsets = [0, 0], sizes = [8, 128], strides = [1, 1]} : vector<12x128xbf16> to vector<8x128xbf16>
    %11 = vector.extract_strided_slice %9 {offsets = [1, 0], sizes = [8, 128], strides = [1, 1]} : vector<12x128xbf16> to vector<8x128xbf16>
    %12 = vector.extract_strided_slice %9 {offsets = [2, 0], sizes = [8, 128], strides = [1, 1]} : vector<12x128xbf16> to vector<8x128xbf16>
    %13 = vector.extract_strided_slice %9 {offsets = [3, 0], sizes = [8, 128], strides = [1, 1]} : vector<12x128xbf16> to vector<8x128xbf16>
    %14 = vector.extract_strided_slice %9 {offsets = [4, 0], sizes = [8, 128], strides = [1, 1]} : vector<12x128xbf16> to vector<8x128xbf16>
    %15 = tpu.concatenate %10, %11, %12, %13, %14 in 1 : vector<8x128xbf16>, vector<8x128xbf16>, vector<8x128xbf16>, vector<8x128xbf16>, vector<8x128xbf16> -> vector<8x640xbf16>
    %c0_7 = arith.constant 0 : index
    %c0_8 = arith.constant 0 : index
    %16 = vector.load %arg4[%c0_7, %c0_8] : memref<640x128xbf16, #tpu.memory_space<vmem>>, vector<640x128xbf16>
    %cst_9 = arith.constant dense<0.000000e+00> : vector<8x128xf32>
    %17 = tpu.matmul %15, %16, %cst_9 {dimension_numbers = #tpu.dot_dimension_numbers<[1], [0], [0], [1], [0, 0, 1, 1], [], []>} : vector<8x640xbf16>, vector<640x128xbf16>, vector<8x128xf32> -> vector<8x128xf32>
    %c0_10 = arith.constant 0 : index
    %c0_11 = arith.constant 0 : index
    %18 = vector.load %arg5[%c0_10, %c0_11] : memref<1x128xf32, #tpu.memory_space<vmem>>, vector<1x128xf32>
    %19 = vector.broadcast %18 : vector<1x128xf32> to vector<8x128xf32>
    %20 = arith.addf %17, %19 : vector<8x128xf32>
    %cst_12 = arith.constant 0.000000e+00 : f32
    %21 = vector.broadcast %cst_12 : f32 to vector<8x128xf32>
    %22 = arith.maximumf %20, %21 : vector<8x128xf32>
    %23 = vector.shape_cast %22 : vector<8x128xf32> to vector<1x1024xf32>
    %24 = arith.truncf %23 : vector<1x1024xf32> to vector<1x1024xbf16>
    %c0_13 = arith.constant 0 : index
    %c0_14 = arith.constant 0 : index
    %25 = vector.load %arg6[%c0_13, %c0_14] : memref<1024x1024xbf16, #tpu.memory_space<vmem>>, vector<1024x1024xbf16>
    %cst_15 = arith.constant dense<0.000000e+00> : vector<1x1024xf32>
    %26 = tpu.matmul %24, %25, %cst_15 {dimension_numbers = #tpu.dot_dimension_numbers<[1], [0], [0], [1], [0, 0, 1, 1], [], []>} : vector<1x1024xbf16>, vector<1024x1024xbf16>, vector<1x1024xf32> -> vector<1x1024xf32>
    %c0_16 = arith.constant 0 : index
    %c0_17 = arith.constant 0 : index
    %27 = vector.load %arg7[%c0_16, %c0_17] : memref<1x1024xf32, #tpu.memory_space<vmem>>, vector<1x1024xf32>
    %28 = arith.addf %26, %27 : vector<1x1024xf32>
    %cst_18 = arith.constant 0.000000e+00 : f32
    %29 = vector.broadcast %cst_18 : f32 to vector<1x1024xf32>
    %30 = arith.maximumf %28, %29 : vector<1x1024xf32>
    %31 = arith.truncf %30 : vector<1x1024xf32> to vector<1x1024xbf16>
    %c0_19 = arith.constant 0 : index
    %c0_20 = arith.constant 0 : index
    %32 = vector.load %arg8[%c0_19, %c0_20] : memref<1024x4xbf16, #tpu.memory_space<vmem>>, vector<1024x4xbf16>
    %cst_21 = arith.constant dense<0.000000e+00> : vector<1x4xf32>
    %33 = tpu.matmul %31, %32, %cst_21 {dimension_numbers = #tpu.dot_dimension_numbers<[1], [0], [0], [1], [0, 0, 1, 1], [], []>} : vector<1x1024xbf16>, vector<1024x4xbf16>, vector<1x4xf32> -> vector<1x4xf32>
    %c0_22 = arith.constant 0 : index
    %c0_23 = arith.constant 0 : index
    %34 = vector.load %arg9[%c0_22, %c0_23] : memref<1x4xf32, #tpu.memory_space<vmem>>, vector<1x4xf32>
    %35 = arith.addf %33, %34 : vector<1x4xf32>
    %36 = vector.extract_strided_slice %35 {offsets = [0, 0], sizes = [1, 1], strides = [1, 1]} : vector<1x4xf32> to vector<1x1xf32>
    %37 = vector.extract_strided_slice %35 {offsets = [0, 1], sizes = [1, 3], strides = [1, 1]} : vector<1x4xf32> to vector<1x3xf32>
    %cst_24 = arith.constant dense<0.000000e+00> : vector<1xf32>
    %38 = vector.multi_reduction <add>, %37, %cst_24 [1] : vector<1x3xf32> to vector<1xf32>
    %39 = vector.shape_cast %38 : vector<1xf32> to vector<1x1xf32>
    %cst_25 = arith.constant 3.000000e+00 : f32
    %40 = vector.broadcast %cst_25 : f32 to vector<1x1xf32>
    %41 = arith.divf %39, %40 : vector<1x1xf32>
    %42 = vector.broadcast %41 : vector<1x1xf32> to vector<1x3xf32>
    %43 = arith.subf %37, %42 : vector<1x3xf32>
    %44 = vector.broadcast %36 : vector<1x1xf32> to vector<1x3xf32>
    %45 = arith.addf %44, %43 : vector<1x3xf32>
    %c0_26 = arith.constant 0 : index
    %c0_27 = arith.constant 0 : index
    %c0_28 = arith.constant 0 : index
    %46 = vector.load %arg10[%c0_26, %c0_27, %c0_28] : memref<1x1x3xf32, #tpu.memory_space<vmem>>, vector<1x1x3xf32>
    %47 = vector.shape_cast %46 : vector<1x1x3xf32> to vector<1x3xf32>
    %48 = vector.shape_cast %45 : vector<1x3xf32> to vector<1x1x3xf32>
    tpu.vector_store %arg10[%c0_26, %c0_27, %c0_28], %48 {strides = array<i32>} : memref<1x1x3xf32, #tpu.memory_space<vmem>>, vector<1x1x3xf32>,
    return
  }
  func.func @transform_0(%arg0: i32) -> (i32, i32, i32) {
    %c0_i32 = arith.constant 0 : i32
    %c0_i32_0 = arith.constant 0 : i32
    %c0_i32_1 = arith.constant 0 : i32
    return %arg0, %c0_i32, %c0_i32_0 : i32, i32, i32
  }
  func.func @transform_1(%arg0: i32) -> (i32, i32) {
    %c0_i32 = arith.constant 0 : i32
    %c0_i32_0 = arith.constant 0 : i32
    %c0_i32_1 = arith.constant 0 : i32
    return %c0_i32, %c0_i32_0 : i32, i32
  }
  func.func @transform_2(%arg0: i32) -> (i32, i32) {
    %c0_i32 = arith.constant 0 : i32
    %c0_i32_0 = arith.constant 0 : i32
    %c0_i32_1 = arith.constant 0 : i32
    return %c0_i32, %c0_i32_0 : i32, i32
  }
  func.func @transform_3(%arg0: i32) -> (i32, i32) {
    %c0_i32 = arith.constant 0 : i32
    %c0_i32_0 = arith.constant 0 : i32
    %c0_i32_1 = arith.constant 0 : i32
    return %c0_i32, %c0_i32_0 : i32, i32
  }
  func.func @transform_4(%arg0: i32) -> (i32, i32) {
    %c0_i32 = arith.constant 0 : i32
    %c0_i32_0 = arith.constant 0 : i32
    %c0_i32_1 = arith.constant 0 : i32
    return %c0_i32, %c0_i32_0 : i32, i32
  }
  func.func @transform_5(%arg0: i32) -> (i32, i32) {
    %c0_i32 = arith.constant 0 : i32
    %c0_i32_0 = arith.constant 0 : i32
    %c0_i32_1 = arith.constant 0 : i32
    return %c0_i32, %c0_i32_0 : i32, i32
  }
  func.func @transform_6(%arg0: i32) -> (i32, i32) {
    %c0_i32 = arith.constant 0 : i32
    %c0_i32_0 = arith.constant 0 : i32
    %c0_i32_1 = arith.constant 0 : i32
    return %c0_i32, %c0_i32_0 : i32, i32
  }
  func.func @transform_7(%arg0: i32) -> (i32, i32) {
    %c0_i32 = arith.constant 0 : i32
    %c0_i32_0 = arith.constant 0 : i32
    %c0_i32_1 = arith.constant 0 : i32
    return %c0_i32, %c0_i32_0 : i32, i32
  }
  func.func @transform_8(%arg0: i32) -> (i32, i32) {
    %c0_i32 = arith.constant 0 : i32
    %c0_i32_0 = arith.constant 0 : i32
    %c0_i32_1 = arith.constant 0 : i32
    return %c0_i32, %c0_i32_0 : i32, i32
  }
  func.func @transform_9(%arg0: i32) -> (i32, i32, i32) {
    %c0_i32 = arith.constant 0 : i32
    %c0_i32_0 = arith.constant 0 : i32
    %c0_i32_1 = arith.constant 0 : i32
    return %arg0, %c0_i32, %c0_i32_0 : i32, i32, i32
  }
}

</mosaic_0001>

<bundles_post_ra>
// kernel: dqn_conv1d_forward.1
= control target key start
LH: loop header
LB: loop body
LE: loop exit
PB: predicated region body
PF: predicated region fallthrough
CT: control target
= control target key end

     0   :  { %s9742_s0 = inlined_call_operand.vmem [shape: bf16[2,12,20], index: 0, kind: input, shape index: {}]   ;;  %s9743_s1 = inlined_call_operand.hbm [shape: bf16[20,128], index: 1, kind: input, shape index: {}]   ;;  %s9744_s2 = inlined_call_operand.hbm [shape: f32[1,128], index: 2, kind: input, shape index: {}]   ;;  %s9745_s3 = inlined_call_operand.hbm [shape: bf16[640,128], index: 3, kind: input, shape index: {}]   ;;  %s9746_s4 = inlined_call_operand.hbm [shape: f32[1,128], index: 4, kind: input, shape index: {}]   ;;  %s9747_s5 = inlined_call_operand.hbm [shape: bf16[1024,1024], index: 5, kind: input, shape index: {}]   ;;  %s9748_s6 = inlined_call_operand.hbm [shape: f32[1,1024], index: 6, kind: input, shape index: {}]   ;;  %s9749_s7 = inlined_call_operand.vmem [shape: bf16[1024,4], index: 7, kind: input, shape index: {}]   ;;  %s9750_s8 = inlined_call_operand.hbm [shape: f32[1,4], index: 8, kind: input, shape index: {}]   ;;  %s9751_s9 = inlined_call_operand.hbm [shape: f32[2,1,3], index: 9, kind: output, shape index: {}]  }
   0x1   :  { %9752 = sst [smem:[#allocation21_spill]] %s9743_s1 }
   0x2   :  { %9753 = sst [smem:[#allocation22_spill]] %s9744_s2 }
   0x3   :  { %9754 = sst [smem:[#allocation23_spill]] %s9745_s3 }
   0x4   :  { %9755 = sst [smem:[#allocation24_spill]] %s9746_s4 }
   0x5   :  { %9756 = sst [smem:[#allocation25_spill]] %s9748_s6 }
   0x6   :  { %14 = vsyncpa [#allocation3], 0 }
   0x7   :  { %15 = vsyncpa [#allocation6], 0 }
   0x8   :  { %16 = vsyncpa [#allocation9], 0 }
   0x9   :  { %17 = vsyncpa [#allocation12], 0 }
   0xa   :  { %18 = vsyncpa [#allocation4], 0 }
   0xb   :  { %20 = vsyncpa [#allocation4 + $0x1], 0  ;;  %s9236_s30 = smov 0   ;;  %s9238_s10 = smov 0  }
   0xc   :  { %s9240_s11 = smov 0   ;;  %s9242_s12 = smov 0  }
   0xd LB: > { %s9257_s13 = sadd.s32 4294967295, %s9170_s12   ;;  %s5643_s14 = sadd.s32 4294967294, %s9170_s12   ;;  %s9170_s12 = sphi %s9242_s12, %s9771_s12   ;;  %s9166_s11 = sphi %s9240_s11, %s9770_s11   ;;  %s9162_s10 = sphi %s9238_s10, %s9769_s10   ;;  %s9158_s30 = sphi %s9236_s30, %s9768_s30  }
   0xe   : > { %s9261_s15 = sadd.s32 1, %s9170_s12   ;;  %s227_s16 = sadd.s32 1, %s9166_s11 }
   0xf   : > { %s224_s17 = ssub.s32 %s9170_s12, %s9261_s15  ;;  %p237_p0 = scmp.ne.s32.totalorder %s9166_s11, %s9162_s10 }
  0x10   : > { %p225_p1 = scmp.eq.s32.totalorder %s224_s17, 0  ;;  %p238_p2 = scmp.eq.s32.totalorder %s9257_s13, 1 }
  0x11   : > { %p243_p3 = scmp.ne.s32.totalorder %s9162_s10, %s9158_s30  ;;  %p244_p4 = scmp.eq.s32.totalorder %s5643_s14, 1 }
  0x12   : > { %s9272_s18 = scalar_select %p225_p1, %s9166_s11, %s227_s16  }
  0x13   : > { %p9274_p5 = por %p238_p2, %p237_p0  ;;  %p9278_p6 = por %p244_p4, %p243_p3 }
  0x14   : > { %9757 = sst [smem:[#allocation20_spill]] %s9272_s18  ;;  %p5644_p7 = scmp.ge.s32.totalorder %s9170_s12, 1 }
  0x15   : > { %p251_p8 = scmp.lt.s32.totalorder %s9170_s12, 3  ;;  %p8813_p9 = scmp.eq.s32.totalorder %s9257_s13, 0 }
  0x16   : > { %s9761_s2 = sld [smem:[#allocation22_spill]]  ;;  %s9172_s25 = smov [#allocation5]  }
  0x17   : > { %p9285_p10 = pnand %p5644_p7, %p251_p8  ;;  %s279_s26 = sshll.u32 %s9172_s25, 4  ;;  %s280_s26 = int_to_ptr.vmem [resolvable:$true] %s279_s26 }
  0x18   : > { %s9762_s4 = sld [smem:[#allocation24_spill]]  ;;  %s9173_s23 = smov [#allocation8]  }
  0x19   : > { %p8787_p11 = pneg %p9285_p10  ;;  %s9764_s6 = sld [smem:[#allocation25_spill]] }
  0x1a   : > { %s305_s25 = sshll.u32 %s9173_s23, 4  ;;  %s9765_s1 = sld [smem:[#allocation21_spill]]  ;;  %s306_s25 = int_to_ptr.vmem [resolvable:$true] %s305_s25 }
  0x1b   : > { %p9299_p12 = pnand %p8813_p9, %p8787_p11  ;;  %s9175_s16 = smov [#allocation2]  }
  0x1c   : > { %s277_s24 = sshll.u32 %s9761_s2, 4  ;;  %s264_s17 = sshll.u32 %s9175_s16, 4  ;;  %s278_s24 = int_to_ptr.hbm [resolvable:$true] %s277_s24  ;;  %s265_s17 = int_to_ptr.vmem [resolvable:$true] %s264_s17 }
  0x1d   : > { %8793 = dma.hbm_to_vmem [thread:$0]  (!%p9299_p12), %s278_s24, 16, %s280_s26, [#allocation6]  }
  0x1e   : > { %s303_s29 = sshll.u32 %s9762_s4, 4  ;;  %s9174_s4 = smov [#allocation11]   ;;  %s304_s29 = int_to_ptr.hbm [resolvable:$true] %s303_s29 }
  0x1f   : > { %s329_s22 = sshll.u32 %s9764_s6, 4  ;;  %s331_s18 = sshll.u32 %s9174_s4, 4  ;;  %s330_s22 = int_to_ptr.hbm [resolvable:$true] %s329_s22  ;;  %s332_s18 = int_to_ptr.vmem [resolvable:$true] %s331_s18 }
  0x20   : > { %8799 = dma.hbm_to_vmem [thread:$0]  (!%p9299_p12), %s304_s29, 16, %s306_s25, [#allocation9]  }
  0x21   : > { %s262_s2 = sshll.u32 %s9765_s1, 4  ;;  %s9176_s23 = smov 64   ;;  %s263_s2 = int_to_ptr.hbm [resolvable:$true] %s262_s2 }
  0x22   : > { %8805 = dma.hbm_to_vmem [thread:$0]  (!%p9299_p12), %s330_s22, 128, %s332_s18, [#allocation12]  }
  0x23   : > { %s9177_s24 = smov 4   ;;  %s9766_s3 = sld [smem:[#allocation23_spill]] }
  0x24   : > { %8790 = dma.hbm_to_vmem [thread:$0]  (!%p9299_p12), %s263_s2, 192, %s265_s17, [#allocation3], %s9176_s23, %s9176_s23, %s9177_s24  }
  0x25   : > { %s9178_s27 = smov [#allocation7]   ;;  %s314_s18 = sshll.u32 %s9747_s5, 4  ;;  %s315_s18 = int_to_ptr.hbm [resolvable:$true] %s314_s18 }
  0x26   : > { %s290_s4 = sshll.u32 %s9178_s27, 4  ;;  %s9179_s22 = smov [#allocation10]   ;;  %s291_s4 = int_to_ptr.vmem [resolvable:$true] %s290_s4 }
  0x27   : > { %s316_s16 = sshll.u32 %s9179_s22, 4  ;;  %s9180_s2 = smov 512   ;;  %s317_s16 = int_to_ptr.vmem [resolvable:$true] %s316_s16 }
  0x28   : > { %s9181_s17 = smov 32   ;;  %s344_s27 = sshll.u32 %s9750_s8, 4  ;;  %s345_s27 = int_to_ptr.hbm [resolvable:$true] %s344_s27 }
  0x29   : > { %s288_s25 = sshll.u32 %s9766_s3, 4  ;;  %s9182_s3 = smov [#allocation13]   ;;  %s289_s25 = int_to_ptr.hbm [resolvable:$true] %s288_s25 }
  0x2a   : > { %8796 = dma.hbm_to_vmem [thread:$0]  (!%p9299_p12), %s289_s25, 5120, %s291_s4, [#allocation6], %s9176_s23, %s9176_s23, %s9177_s24  }
  0x2b   : > { %8802 = dma.hbm_to_vmem [thread:$0]  (!%p9299_p12), %s315_s18, 65536, %s317_s16, [#allocation9], %s9180_s2, %s9180_s2, %s9181_s17  }
  0x2c   : > { %s346_s6 = sshll.u32 %s9182_s3, 4  ;;  %367 = sbr.rel (%p9285_p10) target bundleno = 1616 (0x650), region = 56  ;;  %s347_s6 = int_to_ptr.vmem [resolvable:$true] %s346_s6 }
  0x2d   : > { %8808 = dma.hbm_to_vmem [thread:$0]  (!%p9299_p12), %s345_s27, 16, %s347_s6, [#allocation12]  }
  0x31   : > { %9137 = dma.done.wait (%p8813_p9), [#allocation3], 192  }
  0x32   : > { %9139 = vsyncadd (%p8813_p9), [#allocation3], 4294967104 }
  0x33   : > { %9141 = dma.done.wait (%p8813_p9), [#allocation6], 5136  }
  0x34   : > { %9143 = vsyncadd (%p8813_p9), [#allocation6], 4294962160 }
  0x35   : > { %9145 = dma.done.wait (%p8813_p9), [#allocation9], 65552  }
  0x36   : > { %9147 = vsyncadd (%p8813_p9), [#allocation9], 4294901744 }
  0x37   : > { %9149 = dma.done.wait (%p8813_p9), [#allocation12], 144  }
  0x38   : > { %9151 = vsyncadd (%p8813_p9), [#allocation12], 4294967152  ;;  %p433_p13 = scmp.lt.s32.totalorder %s9257_s13, 1  ;;  %v443_v0 = vld [vmem:[#allocation2 + $0x8] sm:$0x3]  ;;  %vm466_vm0 = vcmask 1041408   ;;  %s5515_s22 = scalar_lea.hbm %s9751_s9, %s9257_s13 }
  0x39   : > { %v458_v1 = vunpack.c.l.b16 %v443_v0  ;;  %v8148_v2 = vld [vmem:[#allocation7 + $0x38] sm:$0xff]  ;;  %v8147_v4 = vld [vmem:[#allocation7 + $0x30] sm:$0xff]  ;;  %v8146_v12 = vld [vmem:[#allocation7 + $0x28] sm:$0xff]  ;;  %vm462_vm1 = vcmask 162816   ;;  %s9184_s25 = smov 127   ;;  %vm5483_vm2 = vcmask 16384  }
  0x3a   : > { %s434_s1 = scalar_select %p433_p13, %s9257_s13, 1  ;;  %833 = vmatpush.bf16.msra.mxu1 %v8148_v2  ;;  %v8164_v5 = vld [vmem:[#allocation7 + $0xb8] sm:$0xff]  ;;  %v8163_v10 = vld [vmem:[#allocation7 + $0xb0] sm:$0xff]  ;;  %v8162_v16 = vld [vmem:[#allocation7 + $0xa8] sm:$0xff] }
  0x3b   : > { %v460_v3 = vpack.c.b16 %v458_v1, %v458_v1  ;;  %v8156_v6 = vld [vmem:[#allocation7 + $0x78] sm:$0xff]  ;;  %859 = vmatpush.bf16.msra.mxu3 %v8164_v5  ;;  %v8155_v13 = vld [vmem:[#allocation7 + $0x70] sm:$0xff]  ;;  %v8145_v17 = vld [vmem:[#allocation7 + $0x20] sm:$0xff]  ;;  %s431_s4 = sand.u32 1, %s9162_s10   ;;  %s5519_s17 = sshll.u32 %s5515_s22, 4  ;;  %s5520_s17 = int_to_ptr.hbm [resolvable:$true] %s5519_s17 }
  0x3c   : > { %s8138_s3 = sshll.u32 %s434_s1, 3  ;;  %v8140_v8 = vld [vmem:[#allocation2] sm:$0xff]  ;;  %846 = vmatpush.bf16.msra.mxu2 %v8156_v6  ;;  %v8142_v21 = vld [vmem:[#allocation7 + $0x8] sm:$0xff]  ;;  %v8141_v22 = vld [vmem:[#allocation7] sm:$0xff]  ;;  %s432_s16 = scalar_lea.vmem [#allocation14], %s431_s4 }
  0x3d   : > { %s437_s14 = scalar_lea.vmem %s9742_s0, %s8138_s3  ;;  %v468_v7 = vsel %vm466_vm0, %v460_v3, 0  ;;  %v8172_v14 = vld [vmem:[#allocation7 + $0xf8] sm:$0xff]  ;;  %v8171_v18 = vld [vmem:[#allocation7 + $0xf0] sm:$0xff]  ;;  %v8178_v25 = vld [vmem:[#allocation7 + $0x128] sm:$0xff]  ;;  %s5517_s2 = sshll.u32 %s432_s16, 4  ;;  %s5518_s2 = int_to_ptr.vmem [resolvable:$true] %s5517_s2 }
  0x3e   : > { %v5665_v9 = vld [vmem:[%s437_s14] sm:$0xf]  ;;  %476 = vmatpush.bf16.msra.mxu0 %v468_v7  ;;  %v8139_v11 = vld [vmem:[%s437_s14] sm:$0x30]  ;;  %834 = vmatpush.bf16.msra.mxu1 %v8147_v4  ;;  %v8144_v19 = vld [vmem:[#allocation7 + $0x18] sm:$0xff]  ;;  %s5507_s26 = scalar_lea.sflag [#allocation4], %s431_s4 }
  0x3f   : > { %v5666_v15 = vor.u32 %v8139_v11, %v5665_v9  ;;  %860 = vmatpush.bf16.msra.mxu3 %v8163_v10  ;;  %v8143_v20 = vld [vmem:[#allocation7 + $0x10] sm:$0xff]  ;;  %v8180_v23 = vld [vmem:[#allocation7 + $0x138] sm:$0xff]  ;;  %v8154_v26 = vld [vmem:[#allocation7 + $0x68] sm:$0xff]  ;;  %s9106_s29 = sshra.s32 %s5520_s17, 4  ;;  %s9112_s13 = scalar_lea.hbm %s9751_s9, 2  ;;  %s9107_s29 = int_to_ptr.hbm [resolvable:$true] %s9106_s29 }
  0x40   : > { %847 = vmatpush.bf16.msra.mxu2 %v8155_v13  ;;  %v8179_v24 = vld [vmem:[#allocation7 + $0x130] sm:$0xff]  ;;  %v8161_v27 = vld [vmem:[#allocation7 + $0xa0] sm:$0xff]  ;;  %v8170_v28 = vld [vmem:[#allocation7 + $0xe8] sm:$0xff]  ;;  %s9108_s27 = scalar_lea.hbm %s9107_s29, 1  ;;  %p9113_p3 = scmp.lt.s32.totalorder %s9107_s29, %s9751_s9 }
  0x41   : > { %v8177_v29 = vld [vmem:[#allocation7 + $0x120] sm:$0xff]  ;;  %v8160_v31 = vld [vmem:[#allocation7 + $0x98] sm:$0xff]  ;;  %v8159_v35 = vld [vmem:[#allocation7 + $0x90] sm:$0xff]  ;;  %p9109_p0 = scmp.ne.s32.totalorder %s9107_s29, %s9108_s27  ;;  %p9114_p4 = scmp.lt.s32.totalorder %s9112_s13, %s9108_s27 }
  0x42   : > { %477 = vmatpush.bf16.msra.mxu0 %v8140_v8  ;;  %835 = vmatpush.bf16.msra.mxu1 %v8146_v12  ;;  %v8153_v30 = vld [vmem:[#allocation7 + $0x60] sm:$0xff]  ;;  %v8176_v33 = vld [vmem:[#allocation7 + $0x118] sm:$0xff]  ;;  %v8175_v37 = vld [vmem:[#allocation7 + $0x110] sm:$0xff] }
  0x43   : > { %861 = vmatpush.bf16.msra.mxu3 %v8162_v16  ;;  %v8169_v32 = vld [vmem:[#allocation7 + $0xe0] sm:$0xff]  ;;  %v8152_v34 = vld [vmem:[#allocation7 + $0x58] sm:$0xff]  ;;  %v8151_v38 = vld [vmem:[#allocation7 + $0x50] sm:$0xff]  ;;  %p9110_p1 = pnand %p9109_p0, %p9274_p5  ;;  %p9115_p7 = por %p9114_p4, %p9113_p3 }
  0x44   : > { %848 = vmatpush.bf16.msra.mxu2 %v8154_v26  ;;  %v8168_v36 = vld [vmem:[#allocation7 + $0xd8] sm:$0xff]  ;;  %v8158_v39 = vld [vmem:[#allocation7 + $0x88] sm:$0xff]  ;;  %v8167_v40 = vld [vmem:[#allocation7 + $0xd0] sm:$0xff] }
  0x45   : > { %5671 = vmatmul.msk.bf16.vlgmr.msra.gmra.mxu0 %vm462_vm1, %v5666_v15  ;;  %v8174_v41 = vld [vmem:[#allocation7 + $0x108] sm:$0xff]  ;;  %v8157_v43 = vld [vmem:[#allocation7 + $0x80] sm:$0xff]  ;;  %v8876_v61 = vld [vmem:[#allocation5] ss:$0 sm:$0xff]  ;;  %p9111_p2 = pneg %p9110_p1 }
  0x46   : > { %872 = vmatpush.bf16.msrb.mxu0 %v8172_v14  ;;  %836 = vmatpush.bf16.msra.mxu1 %v8145_v17  ;;  %v8150_v42 = vld [vmem:[#allocation7 + $0x48] sm:$0xff]  ;;  %v8173_v45 = vld [vmem:[#allocation7 + $0x100] sm:$0xff] }
  0x47   : > { %862 = vmatpush.bf16.msra.mxu3 %v8161_v27  ;;  %v8166_v44 = vld [vmem:[#allocation7 + $0xc8] sm:$0xff]  ;;  %v8149_v46 = vld [vmem:[#allocation7 + $0x40] sm:$0xff]  ;;  %p9116_p8 = pnand %p9115_p7, %p9111_p2 }
  0x48   : > { %849 = vmatpush.bf16.msra.mxu2 %v8153_v30  ;;  %v8165_v47 = vld [vmem:[#allocation7 + $0xc0] sm:$0xff] }
  0x49   : > { %v6058_v48 = vld [vmem:[#allocation10 + $0x1c0] sm:$0xf] }
  0x4a   : > { %873 = vmatpush.bf16.msrb.mxu0 %v8171_v18  ;;  %837 = vmatpush.bf16.msra.mxu1 %v8144_v19  ;;  %v8241_v49 = vld [vmem:[#allocation10 + $0x1dc] sm:$0xf0] }
  0x4b   : > { %863 = vmatpush.bf16.msra.mxu3 %v8160_v31  ;;  %v6314_v50 = vld [vmem:[#allocation10 + $0x3c0] sm:$0xf]  ;;  %v6059_v51 = vor.u32 %v8241_v49, %v6058_v48 }
  0x4c   : > { %850 = vmatpush.bf16.msra.mxu2 %v8152_v34  ;;  %v8305_v52 = vld [vmem:[#allocation10 + $0x3dc] sm:$0xf0] }
  0x4d   : > { %v6570_v53 = vld [vmem:[#allocation10 + $0x5c0] sm:$0xf]  ;;  %v6315_v55 = vor.u32 %v8305_v52, %v6314_v50 }
  0x4e   : > { %838 = vmatpush.bf16.msra.mxu1 %v8143_v20  ;;  %874 = vmatpush.bf16.msrb.mxu0 %v8170_v28  ;;  %v8369_v54 = vld [vmem:[#allocation10 + $0x5dc] sm:$0xf0] }
  0x4f   : > { %864 = vmatpush.bf16.msra.mxu3 %v8159_v35  ;;  %v6571_v56 = vor.u32 %v8369_v54, %v6570_v53  ;;  %v6026_v57 = vld [vmem:[#allocation10 + $0x180] sm:$0xf] }
  0x50   : > { %851 = vmatpush.bf16.msra.mxu2 %v8151_v38  ;;  %v8233_v58 = vld [vmem:[#allocation10 + $0x19c] sm:$0xf0] }
  0x51   : > { %v6282_v59 = vld [vmem:[#allocation10 + $0x380] sm:$0xf]  ;;  %v6027_v62 = vor.u32 %v8233_v58, %v6026_v57 }
  0x52   : > { %839 = vmatpush.bf16.msra.mxu1 %v8142_v21  ;;  %875 = vmatpush.bf16.msrb.mxu0 %v8169_v32  ;;  %v8297_v60 = vld [vmem:[#allocation10 + $0x39c] sm:$0xf0] }
  0x53   : > { %865 = vmatpush.bf16.msra.mxu3 %v8158_v39  ;;  %v6283_v63 = vor.u32 %v8297_v60, %v6282_v59  ;;  %v6538_v0 = vld [vmem:[#allocation10 + $0x580] sm:$0xf] }
  0x54   : > { %852 = vmatpush.bf16.msra.mxu2 %v8150_v42  ;;  %v8361_v1 = vld [vmem:[#allocation10 + $0x59c] sm:$0xf0] }
  0x55   : > { %v6539_v2 = vor.u32 %v8361_v1, %v6538_v0  ;;  %v5994_v3 = vld [vmem:[#allocation10 + $0x140] sm:$0xf] }
  0x56   : > { %840 = vmatpush.bf16.msra.mxu1 %v8141_v22  ;;  %876 = vmatpush.bf16.msrb.mxu0 %v8168_v36  ;;  %v8225_v4 = vld [vmem:[#allocation10 + $0x15c] sm:$0xf0] }
  0x57   : > { %866 = vmatpush.bf16.msra.mxu3 %v8157_v43  ;;  %v6250_v5 = vld [vmem:[#allocation10 + $0x340] sm:$0xf]  ;;  %v5995_v11 = vor.u32 %v8225_v4, %v5994_v3 }
  0x58   : > { %853 = vmatpush.bf16.msra.mxu2 %v8149_v46  ;;  %v8289_v6 = vld [vmem:[#allocation10 + $0x35c] sm:$0xf0] }
  0x59   : > { %v6506_v7 = vld [vmem:[#allocation10 + $0x540] sm:$0xf]  ;;  %v6251_v14 = vor.u32 %v8289_v6, %v6250_v5 }
  0x5a   : > { %885 = vmatpush.bf16.msrb.mxu1 %v8180_v23  ;;  %877 = vmatpush.bf16.msrb.mxu0 %v8167_v40  ;;  %v6826_v9 = vld [vmem:[#allocation10 + $0x7c0] sm:$0xf] }
  0x5b   : > { %4027 = vmatpush.bf16.msrb.mxu3 %v6315_v55  ;;  %v8433_v10 = vld [vmem:[#allocation10 + $0x7dc] sm:$0xf0] }
  0x5c   : > { %4014 = vmatpush.bf16.msrb.mxu2 %v6059_v51  ;;  %v8353_v12 = vld [vmem:[#allocation10 + $0x55c] sm:$0xf0]  ;;  %v6827_v23 = vor.u32 %v8433_v10, %v6826_v9 }
  0x5d   : > { %v6507_v15 = vor.u32 %v8353_v12, %v6506_v7  ;;  %v5962_v16 = vld [vmem:[#allocation10 + $0x100] sm:$0xf] }
  0x5e   : > { %886 = vmatpush.bf16.msrb.mxu1 %v8179_v24  ;;  %878 = vmatpush.bf16.msrb.mxu0 %v8166_v44  ;;  %v8217_v17 = vld [vmem:[#allocation10 + $0x11c] sm:$0xf0] }
  0x5f   : > { %4028 = vmatpush.bf16.msrb.mxu3 %v6283_v63  ;;  %v6218_v18 = vld [vmem:[#allocation10 + $0x300] sm:$0xf]  ;;  %v5963_v26 = vor.u32 %v8217_v17, %v5962_v16 }
  0x60   : > { %4015 = vmatpush.bf16.msrb.mxu2 %v6027_v62  ;;  %v8281_v19 = vld [vmem:[#allocation10 + $0x31c] sm:$0xf0] }
  0x61   : > { %v6474_v20 = vld [vmem:[#allocation10 + $0x500] sm:$0xf]  ;;  %v6219_v28 = vor.u32 %v8281_v19, %v6218_v18 }
  0x62   : > { %887 = vmatpush.bf16.msrb.mxu1 %v8178_v25  ;;  %879 = vmatpush.bf16.msrb.mxu0 %v8165_v47  ;;  %v8345_v21 = vld [vmem:[#allocation10 + $0x51c] sm:$0xf0] }
  0x63   : > { %v6794_v24 = vld [vmem:[#allocation10 + $0x780] sm:$0xf]  ;;  %4029 = vmatpush.bf16.msrb.mxu3 %v6251_v14 }
  0x64   : > { %v8425_v25 = vld [vmem:[#allocation10 + $0x79c] sm:$0xf0]  ;;  %4016 = vmatpush.bf16.msrb.mxu2 %v5995_v11 }
  0x65   : > { %v5930_v30 = vld [vmem:[#allocation10 + $0xc0] sm:$0xf] }
  0x66   : > { %888 = vmatpush.bf16.msrb.mxu1 %v8177_v29  ;;  %4040 = vmatpush.bf16.msra.mxu0 %v6571_v56  ;;  %v6475_v29 = vor.u32 %v8345_v21, %v6474_v20  ;;  %v8209_v31 = vld [vmem:[#allocation10 + $0xdc] sm:$0xf0] }
  0x67   : > { %v6186_v32 = vld [vmem:[#allocation10 + $0x2c0] sm:$0xf]  ;;  %v5931_v38 = vor.u32 %v8209_v31, %v5930_v30  ;;  %4030 = vmatpush.bf16.msrb.mxu3 %v6219_v28 }
  0x68   : > { %v6442_v34 = vld [vmem:[#allocation10 + $0x4c0] sm:$0xf]  ;;  %4017 = vmatpush.bf16.msrb.mxu2 %v5963_v26 }
  0x69   : > { %v8337_v35 = vld [vmem:[#allocation10 + $0x4dc] sm:$0xf0] }
  0x6a   : > { %889 = vmatpush.bf16.msrb.mxu1 %v8176_v33  ;;  %4041 = vmatpush.bf16.msra.mxu0 %v6539_v2  ;;  %v8273_v33 = vld [vmem:[#allocation10 + $0x2dc] sm:$0xf0]  ;;  %v6443_v43 = vor.u32 %v8337_v35, %v6442_v34 }
  0x6b   : > { %v6762_v40 = vld [vmem:[#allocation10 + $0x740] sm:$0xf]  ;;  %v6187_v42 = vor.u32 %v8273_v33, %v6186_v32 }
  0x6c   : > { %4018 = vmatpush.bf16.msrb.mxu2 %v5931_v38  ;;  %v6730_v47 = vld [vmem:[#allocation10 + $0x700] sm:$0xf] }
  0x6d   : > { %v8409_v48 = vld [vmem:[#allocation10 + $0x71c] sm:$0xf0]  ;;  %4031 = vmatpush.bf16.msrb.mxu3 %v6187_v42 }
  0x6e   : > { %890 = vmatpush.bf16.msrb.mxu1 %v8175_v37  ;;  %4042 = vmatpush.bf16.msra.mxu0 %v6507_v15  ;;  %v6795_v37 = vor.u32 %v8425_v25, %v6794_v24  ;;  %v6731_v51 = vor.u32 %v8409_v48, %v6730_v47  ;;  %v6698_v53 = vld [vmem:[#allocation10 + $0x6c0] sm:$0xf] }
  0x6f   : > { %v8401_v54 = vld [vmem:[#allocation10 + $0x6dc] sm:$0xf0] }
  0x70   : > { %v6699_v58 = vor.u32 %v8401_v54, %v6698_v53  ;;  %v5898_v1 = vld [vmem:[#allocation10 + $0x80] sm:$0xf] }
  0x71   : > { %v8201_v2 = vld [vmem:[#allocation10 + $0x9c] sm:$0xf0] }
  0x72   : > { %891 = vmatpush.bf16.msrb.mxu1 %v8174_v41  ;;  %v8417_v41 = vld [vmem:[#allocation10 + $0x75c] sm:$0xf0]  ;;  %4043 = vmatpush.bf16.msra.mxu0 %v6475_v29  ;;  %v5899_v4 = vor.u32 %v8201_v2, %v5898_v1 }
  0x73   : > { %v6154_v3 = vld [vmem:[#allocation10 + $0x280] sm:$0xf] }
  0x74   : > { %v8265_v5 = vld [vmem:[#allocation10 + $0x29c] sm:$0xf0]  ;;  %4019 = vmatpush.bf16.msrb.mxu2 %v5899_v4 }
  0x75   : > { %v6410_v6 = vld [vmem:[#allocation10 + $0x480] sm:$0xf] }
  0x76   : > { %892 = vmatpush.bf16.msrb.mxu1 %v8173_v45  ;;  %v6763_v45 = vor.u32 %v8417_v41, %v6762_v40  ;;  %4044 = vmatpush.bf16.msra.mxu0 %v6443_v43  ;;  %v8329_v7 = vld [vmem:[#allocation10 + $0x49c] sm:$0xf0] }
  0x77   : > { %v6411_v9 = vor.u32 %v8329_v7, %v6410_v6  ;;  %v6666_v10 = vld [vmem:[#allocation10 + $0x680] sm:$0xf] }
  0x78   : > { %v8393_v11 = vld [vmem:[#allocation10 + $0x69c] sm:$0xf0] }
  0x79   : > { %v6667_v12 = vor.u32 %v8393_v11, %v6666_v10  ;;  %v8193_v14 = vld [vmem:[#allocation10 + $0x5c] sm:$0xf0] }
  0x7a   : > { %v6122_v15 = vld [vmem:[#allocation10 + $0x240] sm:$0xf]  ;;  %4045 = vmatpush.bf16.msra.mxu0 %v6411_v9 }
  0x7b   : > { %v8257_v17 = vld [vmem:[#allocation10 + $0x25c] sm:$0xf0] }
  0x7c   : > { %v6378_v18 = vld [vmem:[#allocation10 + $0x440] sm:$0xf]  ;;  %v6123_v20 = vor.u32 %v8257_v17, %v6122_v15 }
  0x7d   : > { %v8321_v19 = vld [vmem:[#allocation10 + $0x45c] sm:$0xf0] }
  0x7e   : > { %v6379_v21 = vor.u32 %v8321_v19, %v6378_v18  ;;  %v5834_v25 = vld [vmem:[#allocation10] sm:$0xf] }
  0x7f   : > { %v8185_v26 = vld [vmem:[#allocation10 + $0x1c] sm:$0xf0] }
  0x80   : > { %4046 = vmatpush.bf16.msra.mxu0 %v6379_v21  ;;  %v5835_v28 = vor.u32 %v8185_v26, %v5834_v25  ;;  %v8249_v29 = vld [vmem:[#allocation10 + $0x21c] sm:$0xf0] }
  0x81   : > { %v6346_v30 = vld [vmem:[#allocation10 + $0x400] sm:$0xf] }
  0x82   : > { %v8313_v31 = vld [vmem:[#allocation10 + $0x41c] sm:$0xf0] }
  0x83   : > { %v6347_v33 = vor.u32 %v8313_v31, %v6346_v30  ;;  %v6602_v34 = vld [vmem:[#allocation10 + $0x600] sm:$0xf] }
  0x84   : > { %v8377_v35 = vld [vmem:[#allocation10 + $0x61c] sm:$0xf0] }
  0x85   : > { %v8497_v38 = vld [vmem:[#allocation10 + $0x9dc] sm:$0xf0]  ;;  %4047 = vmatpush.bf16.msra.mxu0 %v6347_v33 }
  0x86   : > { %v8561_v40 = vld [vmem:[#allocation10 + $0xbdc] sm:$0xf0] }
  0x87   : > { %v7594_v43 = vld [vmem:[#allocation10 + $0xdc0] sm:$0xf] }
  0x88   : > { %v8689_v47 = vld [vmem:[#allocation10 + $0xfdc] sm:$0xf0] }
  0x89   : > { %v7050_v48 = vld [vmem:[#allocation10 + $0x980] sm:$0xf] }
  0x8a   : > { %v8553_v53 = vld [vmem:[#allocation10 + $0xb9c] sm:$0xf0] }
  0x8b   : > { %v7562_v54 = vld [vmem:[#allocation10 + $0xd80] sm:$0xf] }
  0x8c   : > { %v8545_v1 = vld [vmem:[#allocation10 + $0xb5c] sm:$0xf0] }
  0x8d   : > { %v7530_v2 = vld [vmem:[#allocation10 + $0xd40] sm:$0xf] }
  0x8e   : > { %v7786_v6 = vld [vmem:[#allocation10 + $0xf40] sm:$0xf] }
  0x8f   : > { %v8673_v7 = vld [vmem:[#allocation10 + $0xf5c] sm:$0xf0] }
  0x90   : > { %v6986_v9 = vld [vmem:[#allocation10 + $0x900] sm:$0xf] }
  0x91   : > { %v8473_v10 = vld [vmem:[#allocation10 + $0x91c] sm:$0xf0] }
  0x92   : > { %v7242_v11 = vld [vmem:[#allocation10 + $0xb00] sm:$0xf] }
  0x93   : > { %v8601_v15 = vld [vmem:[#allocation10 + $0xd1c] sm:$0xf0] }
  0x94   : > { %v7754_v18 = vld [vmem:[#allocation10 + $0xf00] sm:$0xf] }
  0x95   : > { %v8665_v19 = vld [vmem:[#allocation10 + $0xf1c] sm:$0xf0] }
  0x96   : > { %v6954_v21 = vld [vmem:[#allocation10 + $0x8c0] sm:$0xf] }
  0x97   : > { %v8529_v25 = vld [vmem:[#allocation10 + $0xadc] sm:$0xf0] }
  0x98   : > { %v7466_v26 = vld [vmem:[#allocation10 + $0xcc0] sm:$0xf] }
  0x99   : > { %v7722_v30 = vld [vmem:[#allocation10 + $0xec0] sm:$0xf] }
  0x9a   : > { %v8657_v31 = vld [vmem:[#allocation10 + $0xedc] sm:$0xf0] }
  0x9b   : > { %v6922_v33 = vld [vmem:[#allocation10 + $0x880] sm:$0xf] }
  0xc2   : > { %v479_v8 = vpop.f32.mrf.mxu0 }
  0xc3   : > { %v480_v13 = vadd.f32 %v8876_v61, %v479_v8  ;;  %v6155_v8 = vor.u32 %v8265_v5, %v6154_v3  ;;  %v8609_v3 = vld [vmem:[#allocation10 + $0xd5c] sm:$0xf0] }
  0xc4   : > { %v7531_v5 = vor.u32 %v8609_v3, %v7530_v2  ;;  %v8633_v3 = vld [vmem:[#allocation10 + $0xe1c] sm:$0xf0] }
  0xc5   : > { %v484_v22 = vmax.f32 %v480_v13, 0.0  ;;  %v5866_v13 = vld [vmem:[#allocation10 + $0x40] sm:$0xf]  ;;  %4032 = vmatpush.bf16.msrb.mxu3 %v6155_v8  ;;  %v7787_v8 = vor.u32 %v8673_v7, %v7786_v6 }
  0xc6   : > { %v5867_v16 = vor.u32 %v8193_v14, %v5866_v13  ;;  %v8537_v13 = vld [vmem:[#allocation10 + $0xb1c] sm:$0xf0] }
  0xc7   : > { %v486_v27 = vpack.c.bf16 %v484_v22, %v484_v22  ;;  %v6634_v22 = vld [vmem:[#allocation10 + $0x640] sm:$0xf] }
  0xc8   : > { %4020 = vmatpush.bf16.msrb.mxu2 %v5867_v16  ;;  %v7498_v14 = vld [vmem:[#allocation10 + $0xd00] sm:$0xf]  ;;  %v7243_v16 = vor.u32 %v8537_v13, %v7242_v11 }
  0xc9   : > { %841 = vmatmul.bf16.vlgmr.msra.gmra.mxu1 %v486_v27  ;;  %v490_v49 = vunpack.c.l.b16 %v486_v27  ;;  %4033 = vmatpush.bf16.msrb.mxu3 %v6123_v20  ;;  %v6090_v27 = vld [vmem:[#allocation10 + $0x200] sm:$0xf]  ;;  %v7499_v17 = vor.u32 %v8601_v15, %v7498_v14  ;;  %v7755_v20 = vor.u32 %v8665_v19, %v7754_v18 }
  0xca   : > { %v481_v36 = vpop.f32.mrf.mxu0  ;;  %4053 = vmatpush.bf16.msra.mxu1 %v6827_v23  ;;  %v8385_v23 = vld [vmem:[#allocation10 + $0x65c] sm:$0xf0]  ;;  %v6091_v32 = vor.u32 %v8249_v29, %v6090_v27 }
  0xcb   : > { %v482_v39 = vadd.f32 %v8876_v61, %v481_v36  ;;  %v6635_v24 = vor.u32 %v8385_v23, %v6634_v22  ;;  %v7082_v36 = vld [vmem:[#allocation10 + $0x9c0] sm:$0xf] }
  0xcc   : > { %4021 = vmatpush.bf16.msrb.mxu2 %v5835_v28  ;;  %v7083_v41 = vor.u32 %v8497_v38, %v7082_v36  ;;  %v8465_v22 = vld [vmem:[#allocation10 + $0x8dc] sm:$0xf0] }
  0xcd   : > { %v485_v44 = vmax.f32 %v482_v39, 0.0  ;;  %v7338_v39 = vld [vmem:[#allocation10 + $0xbc0] sm:$0xf]  ;;  %4034 = vmatpush.bf16.msrb.mxu3 %v6091_v32  ;;  %v7723_v32 = vor.u32 %v8657_v31, %v7722_v30 }
  0xce   : > { %4054 = vmatpush.bf16.msra.mxu1 %v6795_v37  ;;  %v6603_v37 = vor.u32 %v8377_v35, %v6602_v34  ;;  %v7339_v42 = vor.u32 %v8561_v40, %v7338_v39  ;;  %v7210_v23 = vld [vmem:[#allocation10 + $0xac0] sm:$0xf] }
  0xcf   : > { %v487_v46 = vpack.c.bf16 %v485_v44, %v485_v44  ;;  %v8625_v44 = vld [vmem:[#allocation10 + $0xddc] sm:$0xf0]  ;;  %v7211_v28 = vor.u32 %v8529_v25, %v7210_v23  ;;  %v6316_v25 = vld [vmem:[#allocation10 + $0x3e0] sm:$0xf0] }
  0xd0   : > { %v8593_v27 = vld [vmem:[#allocation10 + $0xcdc] sm:$0xf0] }
  0xd1   : > { %v491_v50 = vunpack.c.l.b16 %v487_v46  ;;  %v7595_v46 = vor.u32 %v8625_v44, %v7594_v43  ;;  %v7467_v29 = vor.u32 %v8593_v27, %v7466_v26  ;;  %v8457_v34 = vld [vmem:[#allocation10 + $0x89c] sm:$0xf0]  ;;  %v8365_v26 = vld [vmem:[#allocation10 + $0x5c4] sm:$0xf] }
  0xd2   : > { %4055 = vmatpush.bf16.msra.mxu1 %v6763_v45  ;;  %v7850_v45 = vld [vmem:[#allocation10 + $0xfc0] sm:$0xf]  ;;  %v6923_v36 = vor.u32 %v8457_v34, %v6922_v33  ;;  %v6572_v27 = vld [vmem:[#allocation10 + $0x5e0] sm:$0xf0] }
  0xd3   : > { %v492_v52 = vpack.c.b16 %v491_v50, %v490_v49  ;;  %v8489_v49 = vld [vmem:[#allocation10 + $0x99c] sm:$0xf0]  ;;  %v7851_v50 = vor.u32 %v8689_v47, %v7850_v45  ;;  %v6828_v33 = vld [vmem:[#allocation10 + $0x7e0] sm:$0xf0] }
  0xd4   : > { %v7178_v35 = vld [vmem:[#allocation10 + $0xa80] sm:$0xf] }
  0xd5   : > { %v501_v55 = vrot.slane %v492_v52, 1  ;;  %v494_v56 = vshrl.u32 %v492_v52, 16  ;;  %v496_v57 = vshll.u32 %v492_v52, 16  ;;  %v507_v59 = vrot.slane %v492_v52, 2  ;;  %v7306_v52 = vld [vmem:[#allocation10 + $0xb80] sm:$0xf] }
  0xd6   : > { %4056 = vmatpush.bf16.msra.mxu1 %v6731_v51  ;;  %v7051_v51 = vor.u32 %v8489_v49, %v7050_v48  ;;  %v7434_v38 = vld [vmem:[#allocation10 + $0xc80] sm:$0xf] }
  0xd7   : > { %867 = vmatmul.bf16.vlgmr.msra.gmra.mxu3 %v501_v55  ;;  %v498_v60 = vrot.slane %v496_v57, 1  ;;  %v503_v61 = vrot.slane %v494_v56, 1  ;;  %v504_v62 = vrot.slane %v496_v57, 2  ;;  %v7307_v55 = vor.u32 %v8553_v53, %v7306_v52  ;;  %v7818_v57 = vld [vmem:[#allocation10 + $0xf80] sm:$0xf] }
  0xd8   : > { %4079 = vmatpush.bf16.msra.mxu3 %v7339_v42  ;;  %v8585_v39 = vld [vmem:[#allocation10 + $0xc9c] sm:$0xf0] }
  0xd9   : > { %893 = vmatmul.bf16.vlgmr.msrb.gmra.mxu1 %v507_v59  ;;  %v499_v63 = vor.u32 %v498_v60, %v494_v56  ;;  %v505_v0 = vor.u32 %v504_v62, %v503_v61  ;;  %v8617_v56 = vld [vmem:[#allocation10 + $0xd9c] sm:$0xf0] }
  0xda   : > { %4057 = vmatpush.bf16.msra.mxu1 %v6699_v58  ;;  %v8681_v58 = vld [vmem:[#allocation10 + $0xf9c] sm:$0xf0]  ;;  %v7563_v59 = vor.u32 %v8617_v56, %v7562_v54 }
  0xdb   : > { %854 = vmatmul.bf16.vlgmr.msra.gmra.mxu2 %v499_v63  ;;  %880 = vmatmul.bf16.vlgmr.msrb.gmra.mxu0 %v505_v0  ;;  %v7819_v60 = vor.u32 %v8681_v58, %v7818_v57  ;;  %v7018_v61 = vld [vmem:[#allocation10 + $0x940] sm:$0xf] }
  0xdc   : > { %4066 = vmatpush.bf16.msra.mxu2 %v7083_v41  ;;  %4092 = vmatpush.bf16.msrb.mxu0 %v7595_v46  ;;  %v8481_v62 = vld [vmem:[#allocation10 + $0x95c] sm:$0xf0]  ;;  %v7435_v41 = vor.u32 %v8585_v39, %v7434_v38 }
  0xdd   : > { %v7274_v63 = vld [vmem:[#allocation10 + $0xb40] sm:$0xf]  ;;  %4080 = vmatpush.bf16.msra.mxu3 %v7307_v55  ;;  %v7019_v0 = vor.u32 %v8481_v62, %v7018_v61 }
  0xde   : > { %4058 = vmatpush.bf16.msra.mxu1 %v6667_v12  ;;  %v7275_v4 = vor.u32 %v8545_v1, %v7274_v63  ;;  %v6987_v12 = vor.u32 %v8473_v10, %v6986_v9  ;;  %v7690_v42 = vld [vmem:[#allocation10 + $0xe80] sm:$0xf]  ;;  %v8877_v9 = vld [vmem:[#allocation8] ss:$0 sm:$0xff] }
  0xdf   : > { %v8649_v43 = vld [vmem:[#allocation10 + $0xe9c] sm:$0xf0] }
  0xe0   : > { %4067 = vmatpush.bf16.msra.mxu2 %v7051_v51  ;;  %4093 = vmatpush.bf16.msrb.mxu0 %v7563_v59  ;;  %v7691_v44 = vor.u32 %v8649_v43, %v7690_v42  ;;  %v6890_v45 = vld [vmem:[#allocation10 + $0x840] sm:$0xf]  ;;  %v6575_v42 = vor.u32 %v8365_v26, %v6572_v27  ;;  %v6700_v26 = vld [vmem:[#allocation10 + $0x6e0] sm:$0xf0] }
  0xe1   : > { %4081 = vmatpush.bf16.msra.mxu3 %v7275_v4  ;;  %v8449_v46 = vld [vmem:[#allocation10 + $0x85c] sm:$0xf0] }
  0xe2   : > { %4059 = vmatpush.bf16.msra.mxu1 %v6635_v24  ;;  %v6955_v24 = vor.u32 %v8465_v22, %v6954_v21  ;;  %v7146_v47 = vld [vmem:[#allocation10 + $0xa40] sm:$0xf]  ;;  %v6891_v49 = vor.u32 %v8449_v46, %v6890_v45  ;;  %v8237_v21 = vld [vmem:[#allocation10 + $0x1c4] sm:$0xf] }
  0xe3   : > { %v7402_v51 = vld [vmem:[#allocation10 + $0xc40] sm:$0xf]  ;;  %v6060_v22 = vld [vmem:[#allocation10 + $0x1e0] sm:$0xf0] }
  0xe4   : > { %4068 = vmatpush.bf16.msra.mxu2 %v7019_v0  ;;  %4094 = vmatpush.bf16.msrb.mxu0 %v7531_v5  ;;  %v8577_v52 = vld [vmem:[#allocation10 + $0xc5c] sm:$0xf0]  ;;  %v6063_v34 = vor.u32 %v8237_v21, %v6060_v22  ;;  %v6284_v45 = vld [vmem:[#allocation10 + $0x3a0] sm:$0xf0] }
  0xe5   : > { %4082 = vmatpush.bf16.msra.mxu3 %v7243_v16  ;;  %v7403_v54 = vor.u32 %v8577_v52, %v7402_v51  ;;  %v7658_v55 = vld [vmem:[#allocation10 + $0xe40] sm:$0xf]  ;;  %v8357_v46 = vld [vmem:[#allocation10 + $0x584] sm:$0xf] }
  0xe6   : > { %4060 = vmatpush.bf16.msra.mxu1 %v6603_v37  ;;  %v8521_v37 = vld [vmem:[#allocation10 + $0xa9c] sm:$0xf0]  ;;  %v8221_v52 = vld [vmem:[#allocation10 + $0x144] sm:$0xf] }
  0xe7   : > { %v7179_v40 = vor.u32 %v8521_v37, %v7178_v35  ;;  %v8641_v56 = vld [vmem:[#allocation10 + $0xe5c] sm:$0xf0]  ;;  %v8333_v22 = vld [vmem:[#allocation10 + $0x4c4] sm:$0xf] }
  0xe8   : > { %4069 = vmatpush.bf16.msra.mxu2 %v6987_v12  ;;  %4095 = vmatpush.bf16.msrb.mxu0 %v7499_v17  ;;  %v6858_v57 = vld [vmem:[#allocation10 + $0x800] sm:$0xf]  ;;  %v7659_v58 = vor.u32 %v8641_v56, %v7658_v55  ;;  %v8285_v56 = vld [vmem:[#allocation10 + $0x344] sm:$0xf] }
  0xe9   : > { %4083 = vmatpush.bf16.msra.mxu3 %v7211_v28  ;;  %v8441_v59 = vld [vmem:[#allocation10 + $0x81c] sm:$0xf0]  ;;  %v8429_v28 = vld [vmem:[#allocation10 + $0x7c4] sm:$0xf] }
  0xea   : > { %4105 = vmatpush.bf16.msrb.mxu1 %v7851_v50  ;;  %v8513_v50 = vld [vmem:[#allocation10 + $0xa5c] sm:$0xf0]  ;;  %v6859_v1 = vor.u32 %v8441_v59, %v6858_v57  ;;  %v6831_v43 = vor.u32 %v8429_v28, %v6828_v33  ;;  %v6252_v57 = vld [vmem:[#allocation10 + $0x360] sm:$0xf0] }
  0xeb   : > { %v7147_v53 = vor.u32 %v8513_v50, %v7146_v47  ;;  %v8505_v61 = vld [vmem:[#allocation10 + $0xa1c] sm:$0xf0]  ;;  %v6540_v47 = vld [vmem:[#allocation10 + $0x5a0] sm:$0xf0] }
  0xec   : > { %4070 = vmatpush.bf16.msra.mxu2 %v6955_v24  ;;  %4096 = vmatpush.bf16.msrb.mxu0 %v7467_v29  ;;  %v7370_v62 = vld [vmem:[#allocation10 + $0xc00] sm:$0xf]  ;;  %v8301_v24 = vld [vmem:[#allocation10 + $0x3c4] sm:$0xf] }
  0xed   : > { %4084 = vmatpush.bf16.msra.mxu3 %v7179_v40  ;;  %v8569_v63 = vld [vmem:[#allocation10 + $0xc1c] sm:$0xf0]  ;;  %v6319_v35 = vor.u32 %v8301_v24, %v6316_v25  ;;  %v8229_v40 = vld [vmem:[#allocation10 + $0x184] sm:$0xf] }
  0xee   : > { %4106 = vmatpush.bf16.msrb.mxu1 %v7819_v60  ;;  %v7114_v60 = vld [vmem:[#allocation10 + $0xa00] sm:$0xf]  ;;  %v7371_v4 = vor.u32 %v8569_v63, %v7370_v62  ;;  %v6508_v59 = vld [vmem:[#allocation10 + $0x560] sm:$0xf0]  ;;  %v6255_v63 = vor.u32 %v8285_v56, %v6252_v57 }
  0xef   : > { %v7626_v0 = vld [vmem:[#allocation10 + $0xe00] sm:$0xf]  ;;  %v7115_v2 = vor.u32 %v8505_v61, %v7114_v60  ;;  %v8413_v60 = vld [vmem:[#allocation10 + $0x744] sm:$0xf] }
  0xf0   : > { %4071 = vmatpush.bf16.msra.mxu2 %v6923_v36  ;;  %4097 = vmatpush.bf16.msrb.mxu0 %v7435_v41  ;;  %v7627_v5 = vor.u32 %v8633_v3, %v7626_v0  ;;  %v6028_v41 = vld [vmem:[#allocation10 + $0x1a0] sm:$0xf0] }
  0xf1   : > { %4085 = vmatpush.bf16.msra.mxu3 %v7147_v53  ;;  %v6031_v50 = vor.u32 %v8229_v40, %v6028_v41  ;;  %v5996_v53 = vld [vmem:[#allocation10 + $0x160] sm:$0xf0] }
  0xf2   : > { %4107 = vmatpush.bf16.msrb.mxu1 %v7787_v8  ;;  %v6764_v61 = vld [vmem:[#allocation10 + $0x760] sm:$0xf0]  ;;  %v5999_v62 = vor.u32 %v8221_v52, %v5996_v53 }
  0xf3   : > { %v8213_v0 = vld [vmem:[#allocation10 + $0x104] sm:$0xf]  ;;  %v6767_v3 = vor.u32 %v8413_v60, %v6764_v61 }
  0xf4   : > { %4072 = vmatpush.bf16.msra.mxu2 %v6891_v49  ;;  %4098 = vmatpush.bf16.msrb.mxu0 %v7403_v54  ;;  %v6796_v49 = vld [vmem:[#allocation10 + $0x7a0] sm:$0xf0]  ;;  %v6543_v54 = vor.u32 %v8357_v46, %v6540_v47 }
  0xf5   : > { %4086 = vmatpush.bf16.msra.mxu3 %v7115_v2  ;;  %v6444_v24 = vld [vmem:[#allocation10 + $0x4e0] sm:$0xf0] }
  0xf6   : > { %4108 = vmatpush.bf16.msrb.mxu1 %v7755_v20  ;;  %v8397_v25 = vld [vmem:[#allocation10 + $0x6c4] sm:$0xf] }
  0xf7   : > { %v5900_v33 = vld [vmem:[#allocation10 + $0xa0] sm:$0xf0] }
  0xf8   : > { %4073 = vmatpush.bf16.msra.mxu2 %v6859_v1  ;;  %4099 = vmatpush.bf16.msrb.mxu0 %v7371_v4  ;;  %v5964_v1 = vld [vmem:[#allocation10 + $0x120] sm:$0xf0] }
  0xf9   : > { %v8277_v4 = vld [vmem:[#allocation10 + $0x304] sm:$0xf] }
  0xfa   : > { %4109 = vmatpush.bf16.msrb.mxu1 %v7723_v32  ;;  %v8261_v40 = vld [vmem:[#allocation10 + $0x284] sm:$0xf] }
  0xfb   : > { %v6156_v41 = vld [vmem:[#allocation10 + $0x2a0] sm:$0xf0] }
  0xfc   : > { %v6159_v47 = vor.u32 %v8261_v40, %v6156_v41  ;;  %v8253_v52 = vld [vmem:[#allocation10 + $0x244] sm:$0xf] }
  0xfd   : > { %v6124_v53 = vld [vmem:[#allocation10 + $0x260] sm:$0xf0] }
  0xfe   : > { %4110 = vmatpush.bf16.msrb.mxu1 %v7691_v44  ;;  %v8293_v44 = vld [vmem:[#allocation10 + $0x384] sm:$0xf]  ;;  %v6127_v60 = vor.u32 %v8253_v52, %v6124_v53 }
  0xff   : > { %v6287_v51 = vor.u32 %v8293_v44, %v6284_v45  ;;  %v8389_v44 = vld [vmem:[#allocation10 + $0x684] sm:$0xf] }
 0x100   : > { %v6668_v45 = vld [vmem:[#allocation10 + $0x6a0] sm:$0xf0] }
 0x101   : > { %v8381_v56 = vld [vmem:[#allocation10 + $0x644] sm:$0xf] }
 0x102   : > { %4111 = vmatpush.bf16.msrb.mxu1 %v7659_v58  ;;  %v8349_v58 = vld [vmem:[#allocation10 + $0x544] sm:$0xf] }
 0x103   : > { %v6511_v2 = vor.u32 %v8349_v58, %v6508_v59  ;;  %v6636_v57 = vld [vmem:[#allocation10 + $0x660] sm:$0xf0] }
 0x104   : > { %v8181_v58 = vld [vmem:[#allocation10 + $0x4] sm:$0xf] }
 0x105   : > { %v5836_v61 = vld [vmem:[#allocation10 + $0x20] sm:$0xf0] }
 0x106   : > { %4112 = vmatpush.bf16.msrb.mxu1 %v7627_v5  ;;  %v6220_v5 = vld [vmem:[#allocation10 + $0x320] sm:$0xf0] }
 0x107   : > { %v8477_v40 = vld [vmem:[#allocation10 + $0x944] sm:$0xf] }
 0x108   : > { %v7020_v41 = vld [vmem:[#allocation10 + $0x960] sm:$0xf0] }
 0x109   : > { %v8469_v52 = vld [vmem:[#allocation10 + $0x904] sm:$0xf] }
 0x10a   : > { %v6988_v53 = vld [vmem:[#allocation10 + $0x920] sm:$0xf0] }
 0x146   : > { %v842_v48 = vpop.f32.mrf.mxu1 }
 0x147   : > { %v843_v11 = vadd.f32 %v8877_v9, %v842_v48  ;;  %v8421_v48 = vld [vmem:[#allocation10 + $0x784] sm:$0xf] }
 0x148   : > { %v6799_v55 = vor.u32 %v8421_v48, %v6796_v49  ;;  %v6732_v9 = vld [vmem:[#allocation10 + $0x720] sm:$0xf0] }
 0x149   : > { %v8189_v48 = vld [vmem:[#allocation10 + $0x44] sm:$0xf] }
 0x14a   : > { %v5868_v49 = vld [vmem:[#allocation10 + $0x60] sm:$0xf0] }
 0x14b   : > { %v5871_v59 = vor.u32 %v8189_v48, %v5868_v49  ;;  %v8669_v48 = vld [vmem:[#allocation10 + $0xf44] sm:$0xf] }
 0x14c   : > { %v7788_v49 = vld [vmem:[#allocation10 + $0xf60] sm:$0xf0] }
 0x14e   : > { %v844_v6 = vpop.f32.mrf.mxu1 }
 0x14f   : > { %v8341_v6 = vld [vmem:[#allocation10 + $0x504] sm:$0xf] }
 0x156   : > { %v894_v7 = vpop.f32.mrf.mxu1 }
 0x158   : > { %v881_v8 = vpop.f32.mrf.mxu0 }
 0x15a   : > { %v868_v10 = vpop.f32.mrf.mxu3 }
 0x15e   : > { %v855_v12 = vpop.f32.mrf.mxu2  ;;  %v896_v13 = vpop.f32.mrf.mxu1 }
 0x15f   : > { %v856_v14 = vadd.f32 %v855_v12, %v843_v11  ;;  %v5932_v11 = vld [vmem:[#allocation10 + $0xe0] sm:$0xf0]  ;;  %v5967_v12 = vor.u32 %v8213_v0, %v5964_v1  ;;  %v6223_v13 = vor.u32 %v8277_v4, %v6220_v5  ;;  %v6639_v1 = vor.u32 %v8381_v56, %v6636_v57 }
 0x160   : > { %v883_v15 = vpop.f32.mrf.mxu0  ;;  %v8373_v4 = vld [vmem:[#allocation10 + $0x604] sm:$0xf] }
 0x161   : > { %v869_v16 = vadd.f32 %v868_v10, %v856_v14  ;;  %v8205_v10 = vld [vmem:[#allocation10 + $0xc4] sm:$0xf] }
 0x162   : > { %v870_v17 = vpop.f32.mrf.mxu3  ;;  %v5935_v27 = vor.u32 %v8205_v10, %v5932_v11  ;;  %v6604_v5 = vld [vmem:[#allocation10 + $0x620] sm:$0xf0]  ;;  %v5839_v11 = vor.u32 %v8181_v58, %v5836_v61 }
 0x163   : > { %v882_v18 = vadd.f32 %v881_v8, %v869_v16  ;;  %v8405_v8 = vld [vmem:[#allocation10 + $0x704] sm:$0xf] }
 0x164   : > { %v8269_v16 = vld [vmem:[#allocation10 + $0x2c4] sm:$0xf] }
 0x165   : > { %v895_v19 = vadd.f32 %v894_v7, %v882_v18  ;;  %v6476_v7 = vld [vmem:[#allocation10 + $0x520] sm:$0xf0] }
 0x166   : > { %v857_v20 = vpop.f32.mrf.mxu2  ;;  %v6188_v17 = vld [vmem:[#allocation10 + $0x2e0] sm:$0xf0]  ;;  %v6479_v18 = vor.u32 %v8341_v6, %v6476_v7 }
 0x167   : > { %v9355_v23 = vmax.f32 %v895_v19, 0.0  ;;  %v6735_v19 = vor.u32 %v8405_v8, %v6732_v9  ;;  %v6191_v28 = vor.u32 %v8269_v16, %v6188_v17  ;;  %v8493_v6 = vld [vmem:[#allocation10 + $0x9c4] sm:$0xf]  ;;  %v6607_v17 = vor.u32 %v8373_v4, %v6604_v5 }
 0x168   : > { %v7084_v7 = vld [vmem:[#allocation10 + $0x9e0] sm:$0xf0] }
 0x169   : > { %v900_v29 = vperm.slane %v9355_v23, 0  ;;  %v901_v30 = vperm.slane %v9355_v23, 1  ;;  %v902_v31 = vperm.slane %v9355_v23, 2  ;;  %v903_v32 = vperm.slane %v9355_v23, 3  ;;  %v8557_v8 = vld [vmem:[#allocation10 + $0xbc4] sm:$0xf] }
 0x16a   : > { %v904_v14 = vperm.slane %v9355_v23, 4  ;;  %v905_v15 = vperm.slane %v9355_v23, 5  ;;  %v906_v20 = vperm.slane %v9355_v23, 6  ;;  %v907_v21 = vperm.slane %v9355_v23, 7  ;;  %v7340_v9 = vld [vmem:[#allocation10 + $0xbe0] sm:$0xf0] }
 0x16b   : > { %v9361_v36 = vpack.c.bf16 %v900_v29, %v900_v29  ;;  %v9363_v37 = vpack.c.bf16 %v901_v30, %v901_v30  ;;  %v9365_v38 = vpack.c.bf16 %v902_v31, %v902_v31  ;;  %v9367_v39 = vpack.c.bf16 %v903_v32, %v903_v32  ;;  %v8197_v32 = vld [vmem:[#allocation10 + $0x84] sm:$0xf] }
 0x16c   : > { %v9377_v29 = vpack.c.bf16 %v904_v14, %v904_v14  ;;  %v9379_v30 = vpack.c.bf16 %v905_v15, %v905_v15  ;;  %v6447_v31 = vor.u32 %v8333_v22, %v6444_v24  ;;  %v9383_v23 = vpack.c.bf16 %v907_v21, %v907_v21  ;;  %v8621_v10 = vld [vmem:[#allocation10 + $0xdc4] sm:$0xf] }
 0x16d   : > { %4022 = vmatmul.bf16.vlgmr.msrb.gmra.mxu2 %v9361_v36  ;;  %4035 = vmatmul.bf16.vlgmr.msrb.gmra.mxu3 %v9363_v37  ;;  %v5903_v46 = vor.u32 %v8197_v32, %v5900_v33  ;;  %v8685_v14 = vld [vmem:[#allocation10 + $0xfc4] sm:$0xf] }
 0x16e   : > { %4048 = vmatmul.bf16.vlgmr.msra.gmra.mxu0 %v9365_v38  ;;  %4061 = vmatmul.bf16.vlgmr.msra.gmra.mxu1 %v9367_v39  ;;  %v7852_v15 = vld [vmem:[#allocation10 + $0xfe0] sm:$0xf0] }
 0x16f   : > { %4118 = vmatpush.bf16.msrb.mxu2 %v6063_v34  ;;  %4131 = vmatpush.bf16.msrb.mxu3 %v6319_v35  ;;  %v9381_v34 = vpack.c.bf16 %v906_v20, %v906_v20  ;;  %v6703_v35 = vor.u32 %v8397_v25, %v6700_v26  ;;  %v8485_v20 = vld [vmem:[#allocation10 + $0x984] sm:$0xf]  ;;  %v7855_v24 = vor.u32 %v8685_v14, %v7852_v15 }
 0x170   : > { %4144 = vmatpush.bf16.msra.mxu0 %v6575_v42  ;;  %4157 = vmatpush.bf16.msra.mxu1 %v6831_v43  ;;  %v8325_v42 = vld [vmem:[#allocation10 + $0x484] sm:$0xf] }
 0x171   : > { %v6412_v43 = vld [vmem:[#allocation10 + $0x4a0] sm:$0xf0] }
 0x172   : > { %v7052_v21 = vld [vmem:[#allocation10 + $0x9a0] sm:$0xf0] }
 0x173   : > { %4119 = vmatpush.bf16.msrb.mxu2 %v6031_v50  ;;  %4132 = vmatpush.bf16.msrb.mxu3 %v6287_v51  ;;  %v6415_v50 = vor.u32 %v8325_v42, %v6412_v43  ;;  %v6671_v51 = vor.u32 %v8389_v44, %v6668_v45  ;;  %v8549_v25 = vld [vmem:[#allocation10 + $0xb84] sm:$0xf]  ;;  %v7055_v33 = vor.u32 %v8485_v20, %v7052_v21 }
 0x174   : > { %4145 = vmatpush.bf16.msra.mxu0 %v6543_v54  ;;  %4158 = vmatpush.bf16.msra.mxu1 %v6799_v55  ;;  %v8317_v54 = vld [vmem:[#allocation10 + $0x444] sm:$0xf] }
 0x175   : > { %v6380_v55 = vld [vmem:[#allocation10 + $0x460] sm:$0xf0] }
 0x176   : > { %v6383_v0 = vor.u32 %v8317_v54, %v6380_v55  ;;  %v7308_v26 = vld [vmem:[#allocation10 + $0xba0] sm:$0xf0]  ;;  %v7791_v55 = vor.u32 %v8669_v48, %v7788_v49 }
 0x177   : > { %4120 = vmatpush.bf16.msrb.mxu2 %v5999_v62  ;;  %4133 = vmatpush.bf16.msrb.mxu3 %v6255_v63  ;;  %v8245_v62 = vld [vmem:[#allocation10 + $0x204] sm:$0xf] }
 0x178   : > { %4146 = vmatpush.bf16.msra.mxu0 %v6511_v2  ;;  %4159 = vmatpush.bf16.msra.mxu1 %v6767_v3  ;;  %v6092_v63 = vld [vmem:[#allocation10 + $0x220] sm:$0xf0] }
 0x179   : > { %v8309_v2 = vld [vmem:[#allocation10 + $0x404] sm:$0xf] }
 0x17a   : > { %v6348_v3 = vld [vmem:[#allocation10 + $0x420] sm:$0xf0] }
 0x17b   : > { %4121 = vmatpush.bf16.msrb.mxu2 %v5967_v12  ;;  %4134 = vmatpush.bf16.msrb.mxu3 %v6223_v13  ;;  %v6095_v12 = vor.u32 %v8245_v62, %v6092_v63  ;;  %v7596_v13 = vld [vmem:[#allocation10 + $0xde0] sm:$0xf0]  ;;  %v6351_v16 = vor.u32 %v8309_v2, %v6348_v3  ;;  %v6991_v62 = vor.u32 %v8469_v52, %v6988_v53 }
 0x17c   : > { %4147 = vmatpush.bf16.msra.mxu0 %v6479_v18  ;;  %4160 = vmatpush.bf16.msra.mxu1 %v6735_v19  ;;  %v7087_v18 = vor.u32 %v8493_v6, %v7084_v7  ;;  %v7343_v19 = vor.u32 %v8557_v8, %v7340_v9  ;;  %v7599_v22 = vor.u32 %v8621_v10, %v7596_v13  ;;  %v7820_v32 = vld [vmem:[#allocation10 + $0xfa0] sm:$0xf0] }
 0x17d   : > { %4074 = vmatmul.bf16.vlgmr.msra.gmra.mxu2 %v9377_v29  ;;  %4087 = vmatmul.bf16.vlgmr.msra.gmra.mxu3 %v9379_v30  ;;  %v8541_v44 = vld [vmem:[#allocation10 + $0xb44] sm:$0xf] }
 0x17e   : > { %4100 = vmatmul.bf16.vlgmr.msrb.gmra.mxu0 %v9381_v34  ;;  %4113 = vmatmul.bf16.vlgmr.msrb.gmra.mxu1 %v9383_v23  ;;  %v7276_v45 = vld [vmem:[#allocation10 + $0xb60] sm:$0xf0] }
 0x17f   : > { %4122 = vmatpush.bf16.msrb.mxu2 %v5935_v27  ;;  %4135 = vmatpush.bf16.msrb.mxu3 %v6191_v28  ;;  %v8613_v27 = vld [vmem:[#allocation10 + $0xd84] sm:$0xf] }
 0x180   : > { %4148 = vmatpush.bf16.msra.mxu0 %v6447_v31  ;;  %4161 = vmatpush.bf16.msra.mxu1 %v6703_v35  ;;  %v7564_v28 = vld [vmem:[#allocation10 + $0xda0] sm:$0xf0]  ;;  %v7311_v35 = vor.u32 %v8549_v25, %v7308_v26 }
 0x181   : > { %v8677_v31 = vld [vmem:[#allocation10 + $0xf84] sm:$0xf]  ;;  %v7567_v42 = vor.u32 %v8613_v27, %v7564_v28 }
 0x182   : > { %v7823_v43 = vor.u32 %v8677_v31, %v7820_v32  ;;  %v8533_v56 = vld [vmem:[#allocation10 + $0xb04] sm:$0xf] }
 0x183   : > { %4123 = vmatpush.bf16.msrb.mxu2 %v5903_v46  ;;  %4136 = vmatpush.bf16.msrb.mxu3 %v6159_v47  ;;  %v8605_v46 = vld [vmem:[#allocation10 + $0xd44] sm:$0xf] }
 0x184   : > { %4149 = vmatpush.bf16.msra.mxu0 %v6415_v50  ;;  %4162 = vmatpush.bf16.msra.mxu1 %v6671_v51  ;;  %v7532_v47 = vld [vmem:[#allocation10 + $0xd60] sm:$0xf0]  ;;  %v7023_v50 = vor.u32 %v8477_v40, %v7020_v41  ;;  %v7279_v51 = vor.u32 %v8541_v44, %v7276_v45 }
 0x185   : > { %v7535_v54 = vor.u32 %v8605_v46, %v7532_v47  ;;  %v7244_v57 = vld [vmem:[#allocation10 + $0xb20] sm:$0xf0] }
 0x186   : > { %v8597_v58 = vld [vmem:[#allocation10 + $0xd04] sm:$0xf]  ;;  %v7247_v63 = vor.u32 %v8533_v56, %v7244_v57  ;;  %v6322_v56 = vld [vmem:[#allocation10 + $0x3c8] sm:$0xf] }
 0x187   : > { %4124 = vmatpush.bf16.msrb.mxu2 %v5871_v59  ;;  %4137 = vmatpush.bf16.msrb.mxu3 %v6127_v60  ;;  %v7500_v59 = vld [vmem:[#allocation10 + $0xd20] sm:$0xf0]  ;;  %v8306_v57 = vld [vmem:[#allocation10 + $0x3e4] sm:$0xf0] }
 0x188   : > { %4150 = vmatpush.bf16.msra.mxu0 %v6383_v0  ;;  %4163 = vmatpush.bf16.msra.mxu1 %v6639_v1  ;;  %v8661_v60 = vld [vmem:[#allocation10 + $0xf04] sm:$0xf]  ;;  %v7503_v2 = vor.u32 %v8597_v58, %v7500_v59  ;;  %v6578_v58 = vld [vmem:[#allocation10 + $0x5c8] sm:$0xf] }
 0x189   : > { %v7756_v61 = vld [vmem:[#allocation10 + $0xf20] sm:$0xf0] }
 0x18a   : > { %v8461_v0 = vld [vmem:[#allocation10 + $0x8c4] sm:$0xf]  ;;  %v7759_v3 = vor.u32 %v8661_v60, %v7756_v61  ;;  %v8370_v61 = vld [vmem:[#allocation10 + $0x5e4] sm:$0xf0] }
 0x18b   : > { %4125 = vmatpush.bf16.msrb.mxu2 %v5839_v11  ;;  %4138 = vmatpush.bf16.msrb.mxu3 %v6095_v12  ;;  %v6956_v1 = vld [vmem:[#allocation10 + $0x8e0] sm:$0xf0] }
 0x18c   : > { %4151 = vmatpush.bf16.msra.mxu0 %v6351_v16  ;;  %4164 = vmatpush.bf16.msra.mxu1 %v6607_v17  ;;  %v8525_v4 = vld [vmem:[#allocation10 + $0xac4] sm:$0xf]  ;;  %v6959_v10 = vor.u32 %v8461_v0, %v6956_v1 }
 0x18d   : > { %v7212_v5 = vld [vmem:[#allocation10 + $0xae0] sm:$0xf0] }
 0x18e   : > { %4126 = vmatmul.bf16.vlgmr.msrb.gmra.mxu2 %v9361_v36  ;;  %4139 = vmatmul.bf16.vlgmr.msrb.gmra.mxu3 %v9363_v37  ;;  %v8589_v6 = vld [vmem:[#allocation10 + $0xcc4] sm:$0xf]  ;;  %v7215_v11 = vor.u32 %v8525_v4, %v7212_v5  ;;  %v6034_v4 = vld [vmem:[#allocation10 + $0x188] sm:$0xf] }
 0x18f   : > { %4170 = vmatpush.bf16.msra.mxu2 %v7087_v18  ;;  %4183 = vmatpush.bf16.msra.mxu3 %v7343_v19  ;;  %v7468_v7 = vld [vmem:[#allocation10 + $0xce0] sm:$0xf0]  ;;  %v8234_v5 = vld [vmem:[#allocation10 + $0x1a4] sm:$0xf0] }
 0x190   : > { %4196 = vmatpush.bf16.msrb.mxu0 %v7599_v22  ;;  %4209 = vmatpush.bf16.msrb.mxu1 %v7855_v24  ;;  %v8653_v8 = vld [vmem:[#allocation10 + $0xec4] sm:$0xf]  ;;  %v7471_v14 = vor.u32 %v8589_v6, %v7468_v7  ;;  %v6579_v6 = vor.u32 %v8370_v61, %v6578_v58  ;;  %v8202_v61 = vld [vmem:[#allocation10 + $0xa4] sm:$0xf0] }
 0x191   : > { %4152 = vmatmul.bf16.vlgmr.msra.gmra.mxu0 %v9365_v38  ;;  %4165 = vmatmul.bf16.vlgmr.msra.gmra.mxu1 %v9367_v39  ;;  %v7724_v9 = vld [vmem:[#allocation10 + $0xee0] sm:$0xf0] }
 0x192   : > { %v8453_v12 = vld [vmem:[#allocation10 + $0x884] sm:$0xf]  ;;  %v7727_v15 = vor.u32 %v8653_v8, %v7724_v9  ;;  %v6290_v8 = vld [vmem:[#allocation10 + $0x388] sm:$0xf] }
 0x193   : > { %4171 = vmatpush.bf16.msra.mxu2 %v7055_v33  ;;  %4184 = vmatpush.bf16.msra.mxu3 %v7311_v35  ;;  %v6924_v13 = vld [vmem:[#allocation10 + $0x8a0] sm:$0xf0]  ;;  %v8298_v9 = vld [vmem:[#allocation10 + $0x3a4] sm:$0xf0] }
 0x194   : > { %4197 = vmatpush.bf16.msrb.mxu0 %v7567_v42  ;;  %4210 = vmatpush.bf16.msrb.mxu1 %v7823_v43  ;;  %v8517_v16 = vld [vmem:[#allocation10 + $0xa84] sm:$0xf]  ;;  %v6927_v22 = vor.u32 %v8453_v12, %v6924_v13  ;;  %v6802_v12 = vld [vmem:[#allocation10 + $0x788] sm:$0xf] }
 0x195   : > { %v7180_v17 = vld [vmem:[#allocation10 + $0xaa0] sm:$0xf0]  ;;  %v8426_v13 = vld [vmem:[#allocation10 + $0x7a4] sm:$0xf0] }
 0x196   : > { %v8581_v18 = vld [vmem:[#allocation10 + $0xc84] sm:$0xf]  ;;  %v7183_v24 = vor.u32 %v8517_v16, %v7180_v17  ;;  %v6002_v16 = vld [vmem:[#allocation10 + $0x148] sm:$0xf] }
 0x197   : > { %4172 = vmatpush.bf16.msra.mxu2 %v7023_v50  ;;  %4185 = vmatpush.bf16.msra.mxu3 %v7279_v51  ;;  %v7436_v19 = vld [vmem:[#allocation10 + $0xca0] sm:$0xf0]  ;;  %v8226_v17 = vld [vmem:[#allocation10 + $0x164] sm:$0xf0] }
 0x198   : > { %4198 = vmatpush.bf16.msrb.mxu0 %v7535_v54  ;;  %4211 = vmatpush.bf16.msrb.mxu1 %v7791_v55  ;;  %v8645_v20 = vld [vmem:[#allocation10 + $0xe84] sm:$0xf]  ;;  %v7439_v27 = vor.u32 %v8581_v18, %v7436_v19  ;;  %v6066_v54 = vld [vmem:[#allocation10 + $0x1c8] sm:$0xf]  ;;  %v6803_v19 = vor.u32 %v8426_v13, %v6802_v12 }
 0x199   : > { %v7692_v21 = vld [vmem:[#allocation10 + $0xea0] sm:$0xf0]  ;;  %v8242_v55 = vld [vmem:[#allocation10 + $0x1e4] sm:$0xf0] }
 0x19a   : > { %v8445_v25 = vld [vmem:[#allocation10 + $0x844] sm:$0xf]  ;;  %v7695_v28 = vor.u32 %v8645_v20, %v7692_v21  ;;  %v6258_v20 = vld [vmem:[#allocation10 + $0x348] sm:$0xf] }
 0x19b   : > { %4173 = vmatpush.bf16.msra.mxu2 %v6991_v62  ;;  %4186 = vmatpush.bf16.msra.mxu3 %v7247_v63  ;;  %v6892_v26 = vld [vmem:[#allocation10 + $0x860] sm:$0xf0]  ;;  %v6834_v62 = vld [vmem:[#allocation10 + $0x7c8] sm:$0xf] }
 0x19c   : > { %4199 = vmatpush.bf16.msrb.mxu0 %v7503_v2  ;;  %4212 = vmatpush.bf16.msrb.mxu1 %v7759_v3  ;;  %v8509_v31 = vld [vmem:[#allocation10 + $0xa44] sm:$0xf]  ;;  %v6895_v43 = vor.u32 %v8445_v25, %v6892_v26  ;;  %v8434_v63 = vld [vmem:[#allocation10 + $0x7e4] sm:$0xf0]  ;;  %v6067_v2 = vor.u32 %v8242_v55, %v6066_v54  ;;  %v6323_v3 = vor.u32 %v8306_v57, %v6322_v56 }
 0x19d   : > { %v7148_v32 = vld [vmem:[#allocation10 + $0xa60] sm:$0xf0]  ;;  %v6835_v7 = vor.u32 %v8434_v63, %v6834_v62  ;;  %v8290_v21 = vld [vmem:[#allocation10 + $0x364] sm:$0xf0] }
 0x19e   : > { %v8573_v33 = vld [vmem:[#allocation10 + $0xc44] sm:$0xf]  ;;  %v7151_v44 = vor.u32 %v8509_v31, %v7148_v32  ;;  %v6770_v25 = vld [vmem:[#allocation10 + $0x748] sm:$0xf] }
 0x19f   : > { %4174 = vmatpush.bf16.msra.mxu2 %v6959_v10  ;;  %4187 = vmatpush.bf16.msra.mxu3 %v7215_v11  ;;  %v7404_v35 = vld [vmem:[#allocation10 + $0xc60] sm:$0xf0]  ;;  %v6546_v10 = vld [vmem:[#allocation10 + $0x588] sm:$0xf] }
 0x1a0   : > { %4200 = vmatpush.bf16.msrb.mxu0 %v7471_v14  ;;  %4213 = vmatpush.bf16.msrb.mxu1 %v7727_v15  ;;  %v8637_v40 = vld [vmem:[#allocation10 + $0xe44] sm:$0xf]  ;;  %v7407_v48 = vor.u32 %v8573_v33, %v7404_v35  ;;  %v8362_v11 = vld [vmem:[#allocation10 + $0x5a4] sm:$0xf0]  ;;  %v6035_v14 = vor.u32 %v8234_v5, %v6034_v4  ;;  %v6291_v15 = vor.u32 %v8298_v9, %v6290_v8 }
 0x1a1   : > { %v7660_v41 = vld [vmem:[#allocation10 + $0xe60] sm:$0xf0]  ;;  %v6547_v18 = vor.u32 %v8362_v11, %v6546_v10  ;;  %v8418_v26 = vld [vmem:[#allocation10 + $0x764] sm:$0xf0] }
 0x1a2   : > { %v8437_v42 = vld [vmem:[#allocation10 + $0x804] sm:$0xf]  ;;  %v7663_v49 = vor.u32 %v8637_v40, %v7660_v41  ;;  %v5970_v31 = vld [vmem:[#allocation10 + $0x108] sm:$0xf]  ;;  %v6771_v35 = vor.u32 %v8418_v26, %v6770_v25 }
 0x1a3   : > { %4175 = vmatpush.bf16.msra.mxu2 %v6927_v22  ;;  %4188 = vmatpush.bf16.msra.mxu3 %v7183_v24  ;;  %v6860_v45 = vld [vmem:[#allocation10 + $0x820] sm:$0xf0]  ;;  %v6514_v22 = vld [vmem:[#allocation10 + $0x548] sm:$0xf] }
 0x1a4   : > { %v8501_v46 = vld [vmem:[#allocation10 + $0xa04] sm:$0xf]  ;;  %4201 = vmatpush.bf16.msrb.mxu0 %v7439_v27  ;;  %4214 = vmatpush.bf16.msrb.mxu1 %v7695_v28  ;;  %v6863_v59 = vor.u32 %v8437_v42, %v6860_v45  ;;  %v8354_v24 = vld [vmem:[#allocation10 + $0x564] sm:$0xf0]  ;;  %v6003_v27 = vor.u32 %v8226_v17, %v6002_v16  ;;  %v6259_v28 = vor.u32 %v8290_v21, %v6258_v20 }
 0x1a5   : > { %v7116_v47 = vld [vmem:[#allocation10 + $0xa20] sm:$0xf0]  ;;  %v8218_v32 = vld [vmem:[#allocation10 + $0x124] sm:$0xf0]  ;;  %v6515_v33 = vor.u32 %v8354_v24, %v6514_v22 }
 0x1a6   : > { %v8565_v50 = vld [vmem:[#allocation10 + $0xc04] sm:$0xf]  ;;  %v7119_v60 = vor.u32 %v8501_v46, %v7116_v47  ;;  %v6226_v40 = vld [vmem:[#allocation10 + $0x308] sm:$0xf]  ;;  %v5971_v46 = vor.u32 %v8218_v32, %v5970_v31 }
 0x1a7   : > { %v7372_v51 = vld [vmem:[#allocation10 + $0xc20] sm:$0xf0]  ;;  %4176 = vmatpush.bf16.msra.mxu2 %v6895_v43  ;;  %4189 = vmatpush.bf16.msra.mxu3 %v7151_v44  ;;  %v8282_v41 = vld [vmem:[#allocation10 + $0x324] sm:$0xf0] }
 0x1a8   : > { %v8629_v52 = vld [vmem:[#allocation10 + $0xe04] sm:$0xf]  ;;  %4202 = vmatpush.bf16.msrb.mxu0 %v7407_v48  ;;  %4215 = vmatpush.bf16.msrb.mxu1 %v7663_v49  ;;  %v7375_v0 = vor.u32 %v8565_v50, %v7372_v51  ;;  %v6482_v42 = vld [vmem:[#allocation10 + $0x508] sm:$0xf]  ;;  %v6227_v47 = vor.u32 %v8282_v41, %v6226_v40 }
 0x1a9   : > { %v7628_v53 = vld [vmem:[#allocation10 + $0xe20] sm:$0xf0]  ;;  %v8346_v43 = vld [vmem:[#allocation10 + $0x524] sm:$0xf0] }
 0x1aa   : > { %v7631_v1 = vor.u32 %v8629_v52, %v7628_v53  ;;  %v6738_v44 = vld [vmem:[#allocation10 + $0x708] sm:$0xf]  ;;  %v6483_v50 = vor.u32 %v8346_v43, %v6482_v42 }
 0x1ab   : > { %4177 = vmatpush.bf16.msra.mxu2 %v6863_v59  ;;  %4190 = vmatpush.bf16.msra.mxu3 %v7119_v60  ;;  %v8410_v45 = vld [vmem:[#allocation10 + $0x724] sm:$0xf0] }
 0x1ac   : > { %4203 = vmatpush.bf16.msrb.mxu0 %v7375_v0  ;;  %4216 = vmatpush.bf16.msrb.mxu1 %v7631_v1  ;;  %v5938_v48 = vld [vmem:[#allocation10 + $0xc8] sm:$0xf]  ;;  %v6739_v51 = vor.u32 %v8410_v45, %v6738_v44 }
 0x1ad   : > { %v8210_v49 = vld [vmem:[#allocation10 + $0xe4] sm:$0xf0] }
 0x1ae   : > { %4178 = vmatmul.bf16.vlgmr.msra.gmra.mxu2 %v9377_v29  ;;  %4191 = vmatmul.bf16.vlgmr.msra.gmra.mxu3 %v9379_v30  ;;  %v6194_v52 = vld [vmem:[#allocation10 + $0x2c8] sm:$0xf]  ;;  %v5939_v58 = vor.u32 %v8210_v49, %v5938_v48 }
 0x1af   : > { %4222 = vmatpush.bf16.msrb.mxu2 %v6067_v2  ;;  %4235 = vmatpush.bf16.msrb.mxu3 %v6323_v3  ;;  %v8274_v53 = vld [vmem:[#allocation10 + $0x2e4] sm:$0xf0] }
 0x1b0   : > { %4248 = vmatpush.bf16.msra.mxu0 %v6579_v6  ;;  %4261 = vmatpush.bf16.msra.mxu1 %v6835_v7  ;;  %v6450_v54 = vld [vmem:[#allocation10 + $0x4c8] sm:$0xf]  ;;  %v6195_v59 = vor.u32 %v8274_v53, %v6194_v52 }
 0x1b1   : > { %4204 = vmatmul.bf16.vlgmr.msrb.gmra.mxu0 %v9381_v34  ;;  %4217 = vmatmul.bf16.vlgmr.msrb.gmra.mxu1 %v9383_v23  ;;  %v8338_v55 = vld [vmem:[#allocation10 + $0x4e4] sm:$0xf0] }
 0x1b2   : > { %v6706_v56 = vld [vmem:[#allocation10 + $0x6c8] sm:$0xf]  ;;  %v6451_v62 = vor.u32 %v8338_v55, %v6450_v54 }
 0x1b3   : > { %4223 = vmatpush.bf16.msrb.mxu2 %v6035_v14  ;;  %4236 = vmatpush.bf16.msrb.mxu3 %v6291_v15  ;;  %v8402_v57 = vld [vmem:[#allocation10 + $0x6e4] sm:$0xf0] }
 0x1b4   : > { %4249 = vmatpush.bf16.msra.mxu0 %v6547_v18  ;;  %4262 = vmatpush.bf16.msra.mxu1 %v6803_v19  ;;  %v5906_v60 = vld [vmem:[#allocation10 + $0x88] sm:$0xf]  ;;  %v6707_v63 = vor.u32 %v8402_v57, %v6706_v56 }
 0x1b5   : > { %v6162_v0 = vld [vmem:[#allocation10 + $0x288] sm:$0xf]  ;;  %v5907_v6 = vor.u32 %v8202_v61, %v5906_v60 }
 0x1b6   : > { %v8266_v1 = vld [vmem:[#allocation10 + $0x2a4] sm:$0xf0] }
 0x1b7   : > { %4224 = vmatpush.bf16.msrb.mxu2 %v6003_v27  ;;  %4237 = vmatpush.bf16.msrb.mxu3 %v6259_v28  ;;  %v6418_v2 = vld [vmem:[#allocation10 + $0x488] sm:$0xf]  ;;  %v6163_v7 = vor.u32 %v8266_v1, %v6162_v0 }
 0x1b8   : > { %4250 = vmatpush.bf16.msra.mxu0 %v6515_v33  ;;  %4263 = vmatpush.bf16.msra.mxu1 %v6771_v35  ;;  %v8330_v3 = vld [vmem:[#allocation10 + $0x4a4] sm:$0xf0] }
 0x1b9   : > { %v6674_v4 = vld [vmem:[#allocation10 + $0x688] sm:$0xf]  ;;  %v6419_v10 = vor.u32 %v8330_v3, %v6418_v2 }
 0x1ba   : > { %v8394_v5 = vld [vmem:[#allocation10 + $0x6a4] sm:$0xf0] }
 0x1bb   : > { %4225 = vmatpush.bf16.msrb.mxu2 %v5971_v46  ;;  %4238 = vmatpush.bf16.msrb.mxu3 %v6227_v47  ;;  %v5874_v8 = vld [vmem:[#allocation10 + $0x48] sm:$0xf]  ;;  %v6675_v11 = vor.u32 %v8394_v5, %v6674_v4 }
 0x1bc   : > { %4251 = vmatpush.bf16.msra.mxu0 %v6483_v50  ;;  %4264 = vmatpush.bf16.msra.mxu1 %v6739_v51  ;;  %v8194_v9 = vld [vmem:[#allocation10 + $0x64] sm:$0xf0] }
 0x1bd   : > { %v6130_v12 = vld [vmem:[#allocation10 + $0x248] sm:$0xf]  ;;  %v5875_v19 = vor.u32 %v8194_v9, %v5874_v8 }
 0x1be   : > { %v8258_v13 = vld [vmem:[#allocation10 + $0x264] sm:$0xf0] }
 0x1bf   : > { %4226 = vmatpush.bf16.msrb.mxu2 %v5939_v58  ;;  %4239 = vmatpush.bf16.msrb.mxu3 %v6195_v59  ;;  %v6386_v14 = vld [vmem:[#allocation10 + $0x448] sm:$0xf]  ;;  %v6131_v20 = vor.u32 %v8258_v13, %v6130_v12 }
 0x1c0   : > { %4252 = vmatpush.bf16.msra.mxu0 %v6451_v62  ;;  %4265 = vmatpush.bf16.msra.mxu1 %v6707_v63  ;;  %v8322_v15 = vld [vmem:[#allocation10 + $0x464] sm:$0xf0] }
 0x1c1   : > { %v6642_v16 = vld [vmem:[#allocation10 + $0x648] sm:$0xf]  ;;  %v6387_v25 = vor.u32 %v8322_v15, %v6386_v14 }
 0x1c2   : > { %v8386_v17 = vld [vmem:[#allocation10 + $0x664] sm:$0xf0] }
 0x1c3   : > { %v5842_v18 = vld [vmem:[#allocation10 + $0x8] sm:$0xf]  ;;  %4227 = vmatpush.bf16.msrb.mxu2 %v5907_v6  ;;  %4240 = vmatpush.bf16.msrb.mxu3 %v6163_v7  ;;  %v6643_v26 = vor.u32 %v8386_v17, %v6642_v16 }
 0x1c4   : > { %v8186_v21 = vld [vmem:[#allocation10 + $0x24] sm:$0xf0]  ;;  %4253 = vmatpush.bf16.msra.mxu0 %v6419_v10  ;;  %4266 = vmatpush.bf16.msra.mxu1 %v6675_v11 }
 0x1c5   : > { %v6098_v22 = vld [vmem:[#allocation10 + $0x208] sm:$0xf]  ;;  %v5843_v43 = vor.u32 %v8186_v21, %v5842_v18 }
 0x1c6   : > { %v8250_v24 = vld [vmem:[#allocation10 + $0x224] sm:$0xf0] }
 0x1c7   : > { %v6354_v27 = vld [vmem:[#allocation10 + $0x408] sm:$0xf]  ;;  %4228 = vmatpush.bf16.msrb.mxu2 %v5875_v19  ;;  %4241 = vmatpush.bf16.msrb.mxu3 %v6131_v20  ;;  %v6099_v44 = vor.u32 %v8250_v24, %v6098_v22 }
 0x1c8   : > { %v8314_v28 = vld [vmem:[#allocation10 + $0x424] sm:$0xf0]  ;;  %4254 = vmatpush.bf16.msra.mxu0 %v6387_v25  ;;  %4267 = vmatpush.bf16.msra.mxu1 %v6643_v26 }
 0x1c9   : > { %v6610_v31 = vld [vmem:[#allocation10 + $0x608] sm:$0xf]  ;;  %v6355_v48 = vor.u32 %v8314_v28, %v6354_v27 }
 0x1ca   : > { %v8378_v32 = vld [vmem:[#allocation10 + $0x624] sm:$0xf0] }
 0x1cb   : > { %v7090_v33 = vld [vmem:[#allocation10 + $0x9c8] sm:$0xf]  ;;  %v6611_v49 = vor.u32 %v8378_v32, %v6610_v31  ;;  %4229 = vmatpush.bf16.msrb.mxu2 %v5843_v43  ;;  %4242 = vmatpush.bf16.msrb.mxu3 %v6099_v44 }
 0x1cc   : > { %v8498_v35 = vld [vmem:[#allocation10 + $0x9e4] sm:$0xf0]  ;;  %4255 = vmatpush.bf16.msra.mxu0 %v6355_v48 }
 0x1cd   : > { %v7346_v40 = vld [vmem:[#allocation10 + $0xbc8] sm:$0xf]  ;;  %v7091_v50 = vor.u32 %v8498_v35, %v7090_v33  ;;  %4268 = vmatpush.bf16.msra.mxu1 %v6611_v49 }
 0x1ce   : > { %v8562_v41 = vld [vmem:[#allocation10 + $0xbe4] sm:$0xf0]  ;;  %4230 = vmatmul.bf16.vlgmr.msrb.gmra.mxu2 %v9361_v36  ;;  %4243 = vmatmul.bf16.vlgmr.msrb.gmra.mxu3 %v9363_v37 }
 0x1cf   : > { %v7602_v42 = vld [vmem:[#allocation10 + $0xdc8] sm:$0xf]  ;;  %v7347_v51 = vor.u32 %v8562_v41, %v7346_v40  ;;  %4274 = vmatpush.bf16.msra.mxu2 %v7091_v50  ;;  %4256 = vmatmul.bf16.vlgmr.msra.gmra.mxu0 %v9365_v38 }
 0x1d0   : > { %v8626_v45 = vld [vmem:[#allocation10 + $0xde4] sm:$0xf0]  ;;  %4269 = vmatmul.bf16.vlgmr.msra.gmra.mxu1 %v9367_v39 }
 0x1d1   : > { %v7858_v46 = vld [vmem:[#allocation10 + $0xfc8] sm:$0xf]  ;;  %v7603_v54 = vor.u32 %v8626_v45, %v7602_v42  ;;  %4287 = vmatpush.bf16.msra.mxu3 %v7347_v51 }
 0x1d2   : > { %v8690_v47 = vld [vmem:[#allocation10 + $0xfe4] sm:$0xf0] }
 0x1d3   : > { %v7058_v52 = vld [vmem:[#allocation10 + $0x988] sm:$0xf]  ;;  %v7859_v55 = vor.u32 %v8690_v47, %v7858_v46  ;;  %4300 = vmatpush.bf16.msrb.mxu0 %v7603_v54 }
 0x1d4   : > { %v8490_v53 = vld [vmem:[#allocation10 + $0x9a4] sm:$0xf0] }
 0x1d5   : > { %v7314_v56 = vld [vmem:[#allocation10 + $0xb88] sm:$0xf]  ;;  %v7059_v62 = vor.u32 %v8490_v53, %v7058_v52  ;;  %4313 = vmatpush.bf16.msrb.mxu1 %v7859_v55 }
 0x1d6   : > { %v8554_v57 = vld [vmem:[#allocation10 + $0xba4] sm:$0xf0] }
 0x1d7   : > { %v7570_v58 = vld [vmem:[#allocation10 + $0xd88] sm:$0xf]  ;;  %v7315_v63 = vor.u32 %v8554_v57, %v7314_v56  ;;  %4275 = vmatpush.bf16.msra.mxu2 %v7059_v62 }
 0x1d8   : > { %v8618_v59 = vld [vmem:[#allocation10 + $0xda4] sm:$0xf0] }
 0x1d9   : > { %v7826_v60 = vld [vmem:[#allocation10 + $0xf88] sm:$0xf]  ;;  %v7571_v2 = vor.u32 %v8618_v59, %v7570_v58  ;;  %4288 = vmatpush.bf16.msra.mxu3 %v7315_v63 }
 0x1da   : > { %v8682_v61 = vld [vmem:[#allocation10 + $0xfa4] sm:$0xf0] }
 0x1db   : > { %v7026_v0 = vld [vmem:[#allocation10 + $0x948] sm:$0xf]  ;;  %v7827_v3 = vor.u32 %v8682_v61, %v7826_v60  ;;  %4301 = vmatpush.bf16.msrb.mxu0 %v7571_v2 }
 0x1dc   : > { %v8482_v1 = vld [vmem:[#allocation10 + $0x964] sm:$0xf0] }
 0x1dd   : > { %v7282_v4 = vld [vmem:[#allocation10 + $0xb48] sm:$0xf]  ;;  %v7027_v10 = vor.u32 %v8482_v1, %v7026_v0  ;;  %4314 = vmatpush.bf16.msrb.mxu1 %v7827_v3 }
 0x1de   : > { %v8546_v5 = vld [vmem:[#allocation10 + $0xb64] sm:$0xf0] }
 0x1df   : > { %v7538_v6 = vld [vmem:[#allocation10 + $0xd48] sm:$0xf]  ;;  %v7283_v11 = vor.u32 %v8546_v5, %v7282_v4  ;;  %4276 = vmatpush.bf16.msra.mxu2 %v7027_v10 }
 0x1e0   : > { %v8610_v7 = vld [vmem:[#allocation10 + $0xd64] sm:$0xf0] }
 0x1e1   : > { %v7794_v8 = vld [vmem:[#allocation10 + $0xf48] sm:$0xf]  ;;  %v7539_v14 = vor.u32 %v8610_v7, %v7538_v6  ;;  %4289 = vmatpush.bf16.msra.mxu3 %v7283_v11 }
 0x1e2   : > { %v8674_v9 = vld [vmem:[#allocation10 + $0xf64] sm:$0xf0] }
 0x1e3   : > { %v6994_v12 = vld [vmem:[#allocation10 + $0x908] sm:$0xf]  ;;  %v7795_v15 = vor.u32 %v8674_v9, %v7794_v8  ;;  %4302 = vmatpush.bf16.msrb.mxu0 %v7539_v14  ;;  %v8238_v14 = vld [vmem:[#allocation10 + $0x1cc] sm:$0xf] }
 0x1e4   : > { %v8474_v13 = vld [vmem:[#allocation10 + $0x924] sm:$0xf0] }
 0x1e5   : > { %v7250_v16 = vld [vmem:[#allocation10 + $0xb08] sm:$0xf]  ;;  %v6995_v22 = vor.u32 %v8474_v13, %v6994_v12  ;;  %4315 = vmatpush.bf16.msrb.mxu1 %v7795_v15  ;;  %v6068_v15 = vld [vmem:[#allocation10 + $0x1e8] sm:$0xf0] }
 0x1e6   : > { %v8538_v17 = vld [vmem:[#allocation10 + $0xb24] sm:$0xf0] }
 0x1e7   : > { %v7506_v18 = vld [vmem:[#allocation10 + $0xd08] sm:$0xf]  ;;  %v7251_v24 = vor.u32 %v8538_v17, %v7250_v16  ;;  %4277 = vmatpush.bf16.msra.mxu2 %v6995_v22  ;;  %v8302_v16 = vld [vmem:[#allocation10 + $0x3cc] sm:$0xf] }
 0x1e8   : > { %v8602_v19 = vld [vmem:[#allocation10 + $0xd24] sm:$0xf0]  ;;  %v6324_v17 = vld [vmem:[#allocation10 + $0x3e8] sm:$0xf0] }
 0x1e9   : > { %v7762_v20 = vld [vmem:[#allocation10 + $0xf08] sm:$0xf]  ;;  %v7507_v27 = vor.u32 %v8602_v19, %v7506_v18  ;;  %4290 = vmatpush.bf16.msra.mxu3 %v7251_v24  ;;  %v8366_v18 = vld [vmem:[#allocation10 + $0x5cc] sm:$0xf] }
 0x1ea   : > { %v8666_v21 = vld [vmem:[#allocation10 + $0xf24] sm:$0xf0]  ;;  %v8430_v22 = vld [vmem:[#allocation10 + $0x7cc] sm:$0xf] }
 0x1eb   : > { %v6962_v25 = vld [vmem:[#allocation10 + $0x8c8] sm:$0xf]  ;;  %v7763_v28 = vor.u32 %v8666_v21, %v7762_v20  ;;  %4303 = vmatpush.bf16.msrb.mxu0 %v7507_v27  ;;  %v6580_v21 = vld [vmem:[#allocation10 + $0x5e8] sm:$0xf0]  ;;  %v6071_v27 = vor.u32 %v8238_v14, %v6068_v15 }
 0x1ec   : > { %v8466_v26 = vld [vmem:[#allocation10 + $0x8e4] sm:$0xf0]  ;;  %v6836_v24 = vld [vmem:[#allocation10 + $0x7e8] sm:$0xf0] }
 0x1ed   : > { %v7218_v31 = vld [vmem:[#allocation10 + $0xac8] sm:$0xf]  ;;  %v6963_v42 = vor.u32 %v8466_v26, %v6962_v25  ;;  %4316 = vmatpush.bf16.msrb.mxu1 %v7763_v28  ;;  %v6327_v28 = vor.u32 %v8302_v16, %v6324_v17 }
 0x1ee   : > { %v8530_v32 = vld [vmem:[#allocation10 + $0xae4] sm:$0xf0] }
 0x1ef   : > { %v7474_v33 = vld [vmem:[#allocation10 + $0xcc8] sm:$0xf]  ;;  %v7219_v43 = vor.u32 %v8530_v32, %v7218_v31  ;;  %4278 = vmatpush.bf16.msra.mxu2 %v6963_v42  ;;  %v8230_v31 = vld [vmem:[#allocation10 + $0x18c] sm:$0xf] }
 0x1f0   : > { %v8594_v35 = vld [vmem:[#allocation10 + $0xce4] sm:$0xf0]  ;;  %v6036_v32 = vld [vmem:[#allocation10 + $0x1a8] sm:$0xf0]  ;;  %v4023_v16 = vpop.f32.mrf.mxu2  ;;  %v4036_v17 = vpop.f32.mrf.mxu3 }
 0x1f1   : > { %v7730_v40 = vld [vmem:[#allocation10 + $0xec8] sm:$0xf]  ;;  %v7475_v46 = vor.u32 %v8594_v35, %v7474_v33  ;;  %4291 = vmatpush.bf16.msra.mxu3 %v7219_v43  ;;  %v6583_v33 = vor.u32 %v8366_v18, %v6580_v21  ;;  %v6839_v35 = vor.u32 %v8430_v22, %v6836_v24  ;;  %v8358_v42 = vld [vmem:[#allocation10 + $0x58c] sm:$0xf] }
 0x1f2   : > { %v8658_v41 = vld [vmem:[#allocation10 + $0xee4] sm:$0xf0]  ;;  %v6548_v43 = vld [vmem:[#allocation10 + $0x5a8] sm:$0xf0] }
 0x1f3   : > { %v6930_v44 = vld [vmem:[#allocation10 + $0x888] sm:$0xf]  ;;  %v7731_v47 = vor.u32 %v8658_v41, %v7730_v40  ;;  %4304 = vmatpush.bf16.msrb.mxu0 %v7475_v46  ;;  %v8294_v40 = vld [vmem:[#allocation10 + $0x38c] sm:$0xf]  ;;  %v6039_v46 = vor.u32 %v8230_v31, %v6036_v32 }
 0x1f4   : > { %v8458_v45 = vld [vmem:[#allocation10 + $0x8a4] sm:$0xf0]  ;;  %v6292_v41 = vld [vmem:[#allocation10 + $0x3a8] sm:$0xf0] }
 0x1f5   : > { %v7186_v48 = vld [vmem:[#allocation10 + $0xa88] sm:$0xf]  ;;  %v6931_v54 = vor.u32 %v8458_v45, %v6930_v44  ;;  %4317 = vmatpush.bf16.msrb.mxu1 %v7731_v47  ;;  %v8422_v44 = vld [vmem:[#allocation10 + $0x78c] sm:$0xf]  ;;  %v6295_v47 = vor.u32 %v8294_v40, %v6292_v41 }
 0x1f6   : > { %v8522_v49 = vld [vmem:[#allocation10 + $0xaa4] sm:$0xf0]  ;;  %v6804_v45 = vld [vmem:[#allocation10 + $0x7a8] sm:$0xf0] }
 0x1f7   : > { %v7442_v50 = vld [vmem:[#allocation10 + $0xc88] sm:$0xf]  ;;  %v7187_v55 = vor.u32 %v8522_v49, %v7186_v48  ;;  %4279 = vmatpush.bf16.msra.mxu2 %v6931_v54  ;;  %v8222_v48 = vld [vmem:[#allocation10 + $0x14c] sm:$0xf] }
 0x1f8   : > { %v8586_v51 = vld [vmem:[#allocation10 + $0xca4] sm:$0xf0]  ;;  %v6004_v49 = vld [vmem:[#allocation10 + $0x168] sm:$0xf0] }
 0x1f9   : > { %v7698_v52 = vld [vmem:[#allocation10 + $0xe88] sm:$0xf]  ;;  %v7443_v58 = vor.u32 %v8586_v51, %v7442_v50  ;;  %4292 = vmatpush.bf16.msra.mxu3 %v7187_v55  ;;  %v6551_v50 = vor.u32 %v8358_v42, %v6548_v43  ;;  %v6807_v51 = vor.u32 %v8422_v44, %v6804_v45  ;;  %v8350_v54 = vld [vmem:[#allocation10 + $0x54c] sm:$0xf] }
 0x1fa   : > { %v8650_v53 = vld [vmem:[#allocation10 + $0xea4] sm:$0xf0]  ;;  %v6516_v55 = vld [vmem:[#allocation10 + $0x568] sm:$0xf0] }
 0x1fb   : > { %v6898_v56 = vld [vmem:[#allocation10 + $0x848] sm:$0xf]  ;;  %v7699_v59 = vor.u32 %v8650_v53, %v7698_v52  ;;  %4305 = vmatpush.bf16.msrb.mxu0 %v7443_v58  ;;  %v8286_v52 = vld [vmem:[#allocation10 + $0x34c] sm:$0xf]  ;;  %v9405_v58 = vld [vmem:[#allocation11] sm:$0xff] }
 0x1fc   : > { %v8450_v57 = vld [vmem:[#allocation10 + $0x864] sm:$0xf0]  ;;  %v6260_v53 = vld [vmem:[#allocation10 + $0x368] sm:$0xf0] }
 0x1fd   : > { %v7154_v60 = vld [vmem:[#allocation10 + $0xa48] sm:$0xf]  ;;  %v6899_v3 = vor.u32 %v8450_v57, %v6898_v56  ;;  %4318 = vmatpush.bf16.msrb.mxu1 %v7699_v59  ;;  %v8414_v56 = vld [vmem:[#allocation10 + $0x74c] sm:$0xf]  ;;  %v6007_v59 = vor.u32 %v8222_v48, %v6004_v49 }
 0x1fe   : > { %v8514_v61 = vld [vmem:[#allocation10 + $0xa64] sm:$0xf0]  ;;  %v6772_v57 = vld [vmem:[#allocation10 + $0x768] sm:$0xf0] }
 0x1ff   : > { %v7410_v62 = vld [vmem:[#allocation10 + $0xc48] sm:$0xf]  ;;  %v7155_v4 = vor.u32 %v8514_v61, %v7154_v60  ;;  %4280 = vmatpush.bf16.msra.mxu2 %v6899_v3  ;;  %v6263_v60 = vor.u32 %v8286_v52, %v6260_v53  ;;  %v4049_v61 = vpop.f32.mrf.mxu0  ;;  %v6775_v3 = vor.u32 %v8414_v56, %v6772_v57  ;;  %v8270_v18 = vld [vmem:[#allocation10 + $0x2cc] sm:$0xf]  ;;  %v4025_v56 = vpop.f32.mrf.mxu2 }
 0x200   : > { %v8578_v63 = vld [vmem:[#allocation10 + $0xc64] sm:$0xf0]  ;;  %v6452_v22 = vld [vmem:[#allocation10 + $0x4e8] sm:$0xf0]  ;;  %v4038_v57 = vpop.f32.mrf.mxu3 }
 0x201   : > { %v7666_v0 = vld [vmem:[#allocation10 + $0xe48] sm:$0xf]  ;;  %v7411_v8 = vor.u32 %v8578_v63, %v7410_v62  ;;  %4293 = vmatpush.bf16.msra.mxu3 %v7155_v4  ;;  %v4062_v62 = vpop.f32.mrf.mxu1  ;;  %v8214_v63 = vld [vmem:[#allocation10 + $0x10c] sm:$0xf] }
 0x202   : > { %v8642_v1 = vld [vmem:[#allocation10 + $0xe64] sm:$0xf0]  ;;  %v6228_v4 = vld [vmem:[#allocation10 + $0x328] sm:$0xf0] }
 0x203   : > { %v6866_v2 = vld [vmem:[#allocation10 + $0x808] sm:$0xf]  ;;  %v7667_v9 = vor.u32 %v8642_v1, %v7666_v0  ;;  %4306 = vmatpush.bf16.msrb.mxu0 %v7411_v8  ;;  %v5972_v0 = vld [vmem:[#allocation10 + $0x128] sm:$0xf0] }
 0x204   : > { %v8442_v5 = vld [vmem:[#allocation10 + $0x824] sm:$0xf0]  ;;  %v8278_v1 = vld [vmem:[#allocation10 + $0x30c] sm:$0xf] }
 0x205   : > { %v7122_v6 = vld [vmem:[#allocation10 + $0xa08] sm:$0xf]  ;;  %v6867_v19 = vor.u32 %v8442_v5, %v6866_v2  ;;  %4319 = vmatpush.bf16.msrb.mxu1 %v7667_v9  ;;  %v6519_v2 = vor.u32 %v8350_v54, %v6516_v55  ;;  %v8342_v5 = vld [vmem:[#allocation10 + $0x50c] sm:$0xf]  ;;  %v3998_v9 = vperm.slane %v9405_v58, 0 }
 0x206   : > { %v8506_v7 = vld [vmem:[#allocation10 + $0xa24] sm:$0xf0]  ;;  %v6740_v8 = vld [vmem:[#allocation10 + $0x728] sm:$0xf0] }
 0x207   : > { %v7378_v10 = vld [vmem:[#allocation10 + $0xc08] sm:$0xf]  ;;  %v7123_v20 = vor.u32 %v8506_v7, %v7122_v6  ;;  %4281 = vmatpush.bf16.msra.mxu2 %v6867_v19  ;;  %v6484_v6 = vld [vmem:[#allocation10 + $0x528] sm:$0xf0]  ;;  %v4024_v21 = vadd.f32 %v4023_v16, %v3998_v9  ;;  %v4051_v31 = vpop.f32.mrf.mxu0 }
 0x208   : > { %v8570_v11 = vld [vmem:[#allocation10 + $0xc24] sm:$0xf0]  ;;  %v8406_v7 = vld [vmem:[#allocation10 + $0x70c] sm:$0xf]  ;;  %v6487_v14 = vor.u32 %v8342_v5, %v6484_v6  ;;  %v4088_v31 = vpop.f32.mrf.mxu3 }
 0x209   : > { %v7634_v12 = vld [vmem:[#allocation10 + $0xe08] sm:$0xf]  ;;  %v7379_v25 = vor.u32 %v8570_v11, %v7378_v10  ;;  %4294 = vmatpush.bf16.msra.mxu3 %v7123_v20  ;;  %v5975_v10 = vor.u32 %v8214_v63, %v5972_v0  ;;  %v6231_v11 = vor.u32 %v8278_v1, %v6228_v4  ;;  %v6743_v15 = vor.u32 %v8406_v7, %v6740_v8  ;;  %v6196_v19 = vld [vmem:[#allocation10 + $0x2e8] sm:$0xf0]  ;;  %v4064_v32 = vpop.f32.mrf.mxu1 }
 0x20a   : > { %v8634_v13 = vld [vmem:[#allocation10 + $0xe24] sm:$0xf0]  ;;  %4282 = vmatmul.bf16.vlgmr.msra.gmra.mxu2 %v9377_v29  ;;  %v8334_v20 = vld [vmem:[#allocation10 + $0x4cc] sm:$0xf] }
 0x20b   : > { %v7635_v26 = vor.u32 %v8634_v13, %v7634_v12  ;;  %4307 = vmatpush.bf16.msrb.mxu0 %v7379_v25  ;;  %4326 = vmatpush.bf16.msrb.mxu2 %v6071_v27  ;;  %v8206_v12 = vld [vmem:[#allocation10 + $0xcc] sm:$0xf]  ;;  %v6455_v40 = vor.u32 %v8334_v20, %v6452_v22 }
 0x20c   : > { %4295 = vmatmul.bf16.vlgmr.msra.gmra.mxu3 %v9379_v30  ;;  %v5940_v13 = vld [vmem:[#allocation10 + $0xe8] sm:$0xf0] }
 0x20d   : > { %4320 = vmatpush.bf16.msrb.mxu1 %v7635_v26  ;;  %4339 = vmatpush.bf16.msrb.mxu3 %v6327_v28  ;;  %v8398_v24 = vld [vmem:[#allocation10 + $0x6cc] sm:$0xf]  ;;  %v4037_v26 = vadd.f32 %v4036_v17, %v4024_v21  ;;  %v5943_v27 = vor.u32 %v8206_v12, %v5940_v13  ;;  %v6199_v28 = vor.u32 %v8270_v18, %v6196_v19 }
 0x20e   : > { %4308 = vmatmul.bf16.vlgmr.msrb.gmra.mxu0 %v9381_v34  ;;  %v6708_v25 = vld [vmem:[#allocation10 + $0x6e8] sm:$0xf0] }
 0x20f   : > { %4352 = vmatpush.bf16.msra.mxu0 %v6583_v33  ;;  %4327 = vmatpush.bf16.msrb.mxu2 %v6039_v46  ;;  %v8198_v33 = vld [vmem:[#allocation10 + $0x8c] sm:$0xf]  ;;  %v6711_v41 = vor.u32 %v8398_v24, %v6708_v25  ;;  %v4050_v45 = vadd.f32 %v4049_v61, %v4037_v26  ;;  %v4101_v5 = vpop.f32.mrf.mxu0 }
 0x210   : > { %4321 = vmatmul.bf16.vlgmr.msrb.gmra.mxu1 %v9383_v23  ;;  %v8262_v42 = vld [vmem:[#allocation10 + $0x28c] sm:$0xf] }
 0x211   : > { %4365 = vmatpush.bf16.msra.mxu1 %v6839_v35  ;;  %4340 = vmatpush.bf16.msrb.mxu3 %v6295_v47  ;;  %v5908_v35 = vld [vmem:[#allocation10 + $0xa8] sm:$0xf0]  ;;  %v4063_v53 = vadd.f32 %v4062_v62, %v4050_v45  ;;  %v9408_v6 = vpop.f32.mrf.mxu1 }
 0x212   : > { %v6164_v43 = vld [vmem:[#allocation10 + $0x2a8] sm:$0xf0]  ;;  %v5911_v49 = vor.u32 %v8198_v33, %v5908_v35 }
 0x213   : > { %4353 = vmatpush.bf16.msra.mxu0 %v6551_v50  ;;  %4328 = vmatpush.bf16.msrb.mxu2 %v6007_v59  ;;  %v8326_v44 = vld [vmem:[#allocation10 + $0x48c] sm:$0xf]  ;;  %v6167_v50 = vor.u32 %v8262_v42, %v6164_v43 }
 0x214   : > { %v6420_v46 = vld [vmem:[#allocation10 + $0x4a8] sm:$0xf0] }
 0x215   : > { %4366 = vmatpush.bf16.msra.mxu1 %v6807_v51  ;;  %4341 = vmatpush.bf16.msrb.mxu3 %v6263_v60  ;;  %v8390_v47 = vld [vmem:[#allocation10 + $0x68c] sm:$0xf]  ;;  %v6423_v54 = vor.u32 %v8326_v44, %v6420_v46 }
 0x216   : > { %v6676_v48 = vld [vmem:[#allocation10 + $0x6a8] sm:$0xf0] }
 0x217   : > { %4354 = vmatpush.bf16.msra.mxu0 %v6519_v2  ;;  %4329 = vmatpush.bf16.msrb.mxu2 %v5975_v10  ;;  %v8190_v51 = vld [vmem:[#allocation10 + $0x4c] sm:$0xf]  ;;  %v6679_v55 = vor.u32 %v8390_v47, %v6676_v48  ;;  %v4103_v48 = vpop.f32.mrf.mxu0 }
 0x218   : > { %v5876_v52 = vld [vmem:[#allocation10 + $0x68] sm:$0xf0] }
 0x219   : > { %4367 = vmatpush.bf16.msra.mxu1 %v6775_v3  ;;  %4342 = vmatpush.bf16.msrb.mxu3 %v6231_v11  ;;  %v8254_v59 = vld [vmem:[#allocation10 + $0x24c] sm:$0xf]  ;;  %v5879_v3 = vor.u32 %v8190_v51, %v5876_v52 }
 0x21a   : > { %v6132_v60 = vld [vmem:[#allocation10 + $0x268] sm:$0xf0] }
 0x21b   : > { %4355 = vmatpush.bf16.msra.mxu0 %v6487_v14  ;;  %4330 = vmatpush.bf16.msrb.mxu2 %v5943_v27  ;;  %v8318_v63 = vld [vmem:[#allocation10 + $0x44c] sm:$0xf]  ;;  %v6135_v4 = vor.u32 %v8254_v59, %v6132_v60 }
 0x21c   : > { %v6388_v61 = vld [vmem:[#allocation10 + $0x468] sm:$0xf0] }
 0x21d   : > { %4368 = vmatpush.bf16.msra.mxu1 %v6743_v15  ;;  %4343 = vmatpush.bf16.msrb.mxu3 %v6199_v28  ;;  %v8382_v0 = vld [vmem:[#allocation10 + $0x64c] sm:$0xf]  ;;  %v6391_v9 = vor.u32 %v8318_v63, %v6388_v61  ;;  %v4075_v28 = vpop.f32.mrf.mxu2 }
 0x21e   : > { %v6644_v1 = vld [vmem:[#allocation10 + $0x668] sm:$0xf0]  ;;  %v4076_v35 = vadd.f32 %v4075_v28, %v4063_v53 }
 0x21f   : > { %4356 = vmatpush.bf16.msra.mxu0 %v6455_v40  ;;  %v8182_v2 = vld [vmem:[#allocation10 + $0xc] sm:$0xf]  ;;  %4331 = vmatpush.bf16.msrb.mxu2 %v5911_v49  ;;  %v6647_v10 = vor.u32 %v8382_v0, %v6644_v1  ;;  %v4116_v49 = vpop.f32.mrf.mxu1 }
 0x220   : > { %v5844_v62 = vld [vmem:[#allocation10 + $0x28] sm:$0xf0]  ;;  %v4089_v47 = vadd.f32 %v4088_v31, %v4076_v35 }
 0x221   : > { %4369 = vmatpush.bf16.msra.mxu1 %v6711_v41  ;;  %4344 = vmatpush.bf16.msrb.mxu3 %v6167_v50  ;;  %v8246_v7 = vld [vmem:[#allocation10 + $0x20c] sm:$0xf]  ;;  %v5847_v20 = vor.u32 %v8182_v2, %v5844_v62  ;;  %v4090_v62 = vpop.f32.mrf.mxu3 }
 0x222   : > { %v6100_v8 = vld [vmem:[#allocation10 + $0x228] sm:$0xf0]  ;;  %v4102_v53 = vadd.f32 %v4101_v5, %v4089_v47 }
 0x223   : > { %4357 = vmatpush.bf16.msra.mxu0 %v6423_v54  ;;  %v8310_v11 = vld [vmem:[#allocation10 + $0x40c] sm:$0xf]  ;;  %4332 = vmatpush.bf16.msrb.mxu2 %v5879_v3  ;;  %v6103_v21 = vor.u32 %v8246_v7, %v6100_v8 }
 0x224   : > { %v6356_v12 = vld [vmem:[#allocation10 + $0x428] sm:$0xf0]  ;;  %v9411_v1 = vadd.f32 %v9408_v6, %v4102_v53 }
 0x225   : > { %4370 = vmatpush.bf16.msra.mxu1 %v6679_v55  ;;  %v8374_v13 = vld [vmem:[#allocation10 + $0x60c] sm:$0xf]  ;;  %4345 = vmatpush.bf16.msrb.mxu3 %v6135_v4  ;;  %v6359_v26 = vor.u32 %v8310_v11, %v6356_v12  ;;  %v4077_v5 = vpop.f32.mrf.mxu2 }
 0x226   : > { %v6612_v14 = vld [vmem:[#allocation10 + $0x628] sm:$0xf0] }
 0x227   : > { %v8494_v15 = vld [vmem:[#allocation10 + $0x9cc] sm:$0xf]  ;;  %4358 = vmatpush.bf16.msra.mxu0 %v6391_v9  ;;  %v6615_v27 = vor.u32 %v8374_v13, %v6612_v14  ;;  %4333 = vmatpush.bf16.msrb.mxu2 %v5847_v20 }
 0x228   : > { %v7092_v16 = vld [vmem:[#allocation10 + $0x9e8] sm:$0xf0] }
 0x229   : > { %v8558_v17 = vld [vmem:[#allocation10 + $0xbcc] sm:$0xf]  ;;  %4371 = vmatpush.bf16.msra.mxu1 %v6647_v10  ;;  %v7095_v32 = vor.u32 %v8494_v15, %v7092_v16  ;;  %4346 = vmatpush.bf16.msrb.mxu3 %v6103_v21  ;;  %v4140_v48 = vpop.f32.mrf.mxu3 }
 0x22a   : > { %v7348_v18 = vld [vmem:[#allocation10 + $0xbe8] sm:$0xf0]  ;;  %4334 = vmatmul.bf16.vlgmr.msrb.gmra.mxu2 %v9361_v36 }
 0x22b   : > { %v8622_v19 = vld [vmem:[#allocation10 + $0xdcc] sm:$0xf]  ;;  %v7351_v33 = vor.u32 %v8558_v17, %v7348_v18  ;;  %4359 = vmatpush.bf16.msra.mxu0 %v6359_v26  ;;  %4378 = vmatpush.bf16.msra.mxu2 %v7095_v32  ;;  %v4153_v18 = vpop.f32.mrf.mxu0 }
 0x22c   : > { %v7604_v22 = vld [vmem:[#allocation10 + $0xde8] sm:$0xf0]  ;;  %4347 = vmatmul.bf16.vlgmr.msrb.gmra.mxu3 %v9363_v37 }
 0x22d   : > { %v8686_v24 = vld [vmem:[#allocation10 + $0xfcc] sm:$0xf]  ;;  %v7607_v42 = vor.u32 %v8622_v19, %v7604_v22  ;;  %4372 = vmatpush.bf16.msra.mxu1 %v6615_v27  ;;  %4391 = vmatpush.bf16.msra.mxu3 %v7351_v33  ;;  %v9417_v19 = vpop.f32.mrf.mxu1  ;;  %v4127_v47 = vpop.f32.mrf.mxu2 }
 0x22e   : > { %v7860_v25 = vld [vmem:[#allocation10 + $0xfe8] sm:$0xf0]  ;;  %4360 = vmatmul.bf16.vlgmr.msra.gmra.mxu0 %v9365_v38 }
 0x22f   : > { %v8486_v40 = vld [vmem:[#allocation10 + $0x98c] sm:$0xf]  ;;  %v7863_v43 = vor.u32 %v8686_v24, %v7860_v25  ;;  %4404 = vmatpush.bf16.msrb.mxu0 %v7607_v42 }
 0x230   : > { %v7060_v41 = vld [vmem:[#allocation10 + $0x9a8] sm:$0xf0]  ;;  %4373 = vmatmul.bf16.vlgmr.msra.gmra.mxu1 %v9367_v39 }
 0x231   : > { %v8550_v44 = vld [vmem:[#allocation10 + $0xb8c] sm:$0xf]  ;;  %v7063_v54 = vor.u32 %v8486_v40, %v7060_v41  ;;  %4417 = vmatpush.bf16.msrb.mxu1 %v7863_v43  ;;  %v3999_v40 = vperm.slane %v9405_v58, 1 }
 0x232   : > { %v7316_v45 = vld [vmem:[#allocation10 + $0xba8] sm:$0xf0] }
 0x233   : > { %v8614_v46 = vld [vmem:[#allocation10 + $0xd8c] sm:$0xf]  ;;  %v7319_v55 = vor.u32 %v8550_v44, %v7316_v45  ;;  %4379 = vmatpush.bf16.msra.mxu2 %v7063_v54 }
 0x234   : > { %v7572_v50 = vld [vmem:[#allocation10 + $0xda8] sm:$0xf0] }
 0x235   : > { %v8678_v51 = vld [vmem:[#allocation10 + $0xf8c] sm:$0xf]  ;;  %v7575_v59 = vor.u32 %v8614_v46, %v7572_v50  ;;  %4392 = vmatpush.bf16.msra.mxu3 %v7319_v55 }
 0x236   : > { %v7828_v52 = vld [vmem:[#allocation10 + $0xfa8] sm:$0xf0] }
 0x237   : > { %v8478_v56 = vld [vmem:[#allocation10 + $0x94c] sm:$0xf]  ;;  %v7831_v60 = vor.u32 %v8678_v51, %v7828_v52  ;;  %4405 = vmatpush.bf16.msrb.mxu0 %v7575_v59  ;;  %v4128_v52 = vadd.f32 %v4127_v47, %v3999_v40  ;;  %v4168_v59 = vpop.f32.mrf.mxu1  ;;  %v8371_v40 = vld [vmem:[#allocation10 + $0x5ec] sm:$0xf0] }
 0x238   : > { %v7028_v57 = vld [vmem:[#allocation10 + $0x968] sm:$0xf0]  ;;  %v6042_v47 = vld [vmem:[#allocation10 + $0x190] sm:$0xf] }
 0x239   : > { %v8542_v63 = vld [vmem:[#allocation10 + $0xb4c] sm:$0xf]  ;;  %v7031_v7 = vor.u32 %v8478_v56, %v7028_v57  ;;  %4418 = vmatpush.bf16.msrb.mxu1 %v7831_v60  ;;  %v4141_v56 = vadd.f32 %v4140_v48, %v4128_v52  ;;  %v4155_v57 = vpop.f32.mrf.mxu0  ;;  %v8235_v48 = vld [vmem:[#allocation10 + $0x1ac] sm:$0xf0] }
 0x23a   : > { %v7284_v61 = vld [vmem:[#allocation10 + $0xb68] sm:$0xf0]  ;;  %v8299_v52 = vld [vmem:[#allocation10 + $0x3ac] sm:$0xf0]  ;;  %v6043_v57 = vor.u32 %v8235_v48, %v6042_v47 }
 0x23b   : > { %v8606_v0 = vld [vmem:[#allocation10 + $0xd4c] sm:$0xf]  ;;  %v7287_v8 = vor.u32 %v8542_v63, %v7284_v61  ;;  %4380 = vmatpush.bf16.msra.mxu2 %v7031_v7  ;;  %v4154_v7 = vadd.f32 %v4153_v18, %v4141_v56  ;;  %v4142_v18 = vpop.f32.mrf.mxu3  ;;  %v8427_v56 = vld [vmem:[#allocation10 + $0x7ac] sm:$0xf0] }
 0x23c   : > { %v7540_v2 = vld [vmem:[#allocation10 + $0xd68] sm:$0xf0] }
 0x23d   : > { %v8670_v3 = vld [vmem:[#allocation10 + $0xf4c] sm:$0xf]  ;;  %v7543_v10 = vor.u32 %v8606_v0, %v7540_v2  ;;  %4393 = vmatpush.bf16.msra.mxu3 %v7287_v8 }
 0x23e   : > { %v7796_v4 = vld [vmem:[#allocation10 + $0xf68] sm:$0xf0] }
 0x23f   : > { %v8470_v9 = vld [vmem:[#allocation10 + $0x90c] sm:$0xf]  ;;  %v7799_v11 = vor.u32 %v8670_v3, %v7796_v4  ;;  %4406 = vmatpush.bf16.msrb.mxu0 %v7543_v10 }
 0x240   : > { %v6996_v6 = vld [vmem:[#allocation10 + $0x928] sm:$0xf0] }
 0x241   : > { %v8534_v12 = vld [vmem:[#allocation10 + $0xb0c] sm:$0xf]  ;;  %v6999_v20 = vor.u32 %v8470_v9, %v6996_v6  ;;  %4419 = vmatpush.bf16.msrb.mxu1 %v7799_v11  ;;  %v4205_v18 = vpop.f32.mrf.mxu0 }
 0x242   : > { %v7252_v13 = vld [vmem:[#allocation10 + $0xb28] sm:$0xf0] }
 0x243   : > { %v8598_v14 = vld [vmem:[#allocation10 + $0xd0c] sm:$0xf]  ;;  %v7255_v21 = vor.u32 %v8534_v12, %v7252_v13  ;;  %4381 = vmatpush.bf16.msra.mxu2 %v6999_v20 }
 0x244   : > { %v7508_v15 = vld [vmem:[#allocation10 + $0xd28] sm:$0xf0] }
 0x245   : > { %v8662_v16 = vld [vmem:[#allocation10 + $0xf0c] sm:$0xf]  ;;  %v7511_v26 = vor.u32 %v8598_v14, %v7508_v15  ;;  %4394 = vmatpush.bf16.msra.mxu3 %v7255_v21  ;;  %v4129_v21 = vpop.f32.mrf.mxu2 }
 0x246   : > { %v7764_v17 = vld [vmem:[#allocation10 + $0xf28] sm:$0xf0]  ;;  %v8411_v21 = vld [vmem:[#allocation10 + $0x72c] sm:$0xf0] }
 0x247   : > { %v8462_v22 = vld [vmem:[#allocation10 + $0x8cc] sm:$0xf]  ;;  %v7767_v27 = vor.u32 %v8662_v16, %v7764_v17  ;;  %4407 = vmatpush.bf16.msrb.mxu0 %v7511_v26  ;;  %v9421_v16 = vadd.f32 %v9417_v19, %v4154_v7  ;;  %v8419_v7 = vld [vmem:[#allocation10 + $0x76c] sm:$0xf0] }
 0x248   : > { %v6964_v24 = vld [vmem:[#allocation10 + $0x8e8] sm:$0xf0] }
 0x249   : > { %v8526_v25 = vld [vmem:[#allocation10 + $0xacc] sm:$0xf]  ;;  %v6967_v41 = vor.u32 %v8462_v22, %v6964_v24  ;;  %4420 = vmatpush.bf16.msrb.mxu1 %v7767_v27  ;;  %v6074_v27 = vld [vmem:[#allocation10 + $0x1d0] sm:$0xf] }
 0x24a   : > { %v7220_v28 = vld [vmem:[#allocation10 + $0xae8] sm:$0xf0] }
 0x24b   : > { %v8590_v31 = vld [vmem:[#allocation10 + $0xccc] sm:$0xf]  ;;  %v7223_v42 = vor.u32 %v8526_v25, %v7220_v28  ;;  %4382 = vmatpush.bf16.msra.mxu2 %v6967_v41  ;;  %v8243_v28 = vld [vmem:[#allocation10 + $0x1ec] sm:$0xf0] }
 0x24c   : > { %v7476_v32 = vld [vmem:[#allocation10 + $0xce8] sm:$0xf0]  ;;  %v6842_v41 = vld [vmem:[#allocation10 + $0x7d0] sm:$0xf] }
 0x24d   : > { %v8654_v33 = vld [vmem:[#allocation10 + $0xecc] sm:$0xf]  ;;  %v7479_v45 = vor.u32 %v8590_v31, %v7476_v32  ;;  %4395 = vmatpush.bf16.msra.mxu3 %v7223_v42  ;;  %v6330_v31 = vld [vmem:[#allocation10 + $0x3d0] sm:$0xf]  ;;  %v4179_v48 = vpop.f32.mrf.mxu2 }
 0x24e   : > { %v7732_v35 = vld [vmem:[#allocation10 + $0xee8] sm:$0xf0]  ;;  %v8307_v32 = vld [vmem:[#allocation10 + $0x3ec] sm:$0xf0] }
 0x24f   : > { %v8454_v43 = vld [vmem:[#allocation10 + $0x88c] sm:$0xf]  ;;  %v7735_v46 = vor.u32 %v8654_v33, %v7732_v35  ;;  %4408 = vmatpush.bf16.msrb.mxu0 %v7479_v45  ;;  %v6586_v33 = vld [vmem:[#allocation10 + $0x5d0] sm:$0xf]  ;;  %v6075_v45 = vor.u32 %v8243_v28, %v6074_v27 }
 0x250   : > { %v6932_v44 = vld [vmem:[#allocation10 + $0x8a8] sm:$0xf0]  ;;  %v8435_v42 = vld [vmem:[#allocation10 + $0x7ec] sm:$0xf0] }
 0x251   : > { %v8518_v49 = vld [vmem:[#allocation10 + $0xa8c] sm:$0xf]  ;;  %v6935_v60 = vor.u32 %v8454_v43, %v6932_v44  ;;  %4421 = vmatpush.bf16.msrb.mxu1 %v7735_v46  ;;  %v6331_v46 = vor.u32 %v8307_v32, %v6330_v31  ;;  %v8211_v27 = vld [vmem:[#allocation10 + $0xec] sm:$0xf0] }
 0x252   : > { %v7188_v50 = vld [vmem:[#allocation10 + $0xaa8] sm:$0xf0]  ;;  %v6202_v32 = vld [vmem:[#allocation10 + $0x2d0] sm:$0xf] }
 0x253   : > { %v8582_v51 = vld [vmem:[#allocation10 + $0xc8c] sm:$0xf]  ;;  %v7191_v63 = vor.u32 %v8518_v49, %v7188_v50  ;;  %4383 = vmatpush.bf16.msra.mxu2 %v6935_v60  ;;  %v6587_v49 = vor.u32 %v8371_v40, %v6586_v33  ;;  %v6843_v50 = vor.u32 %v8435_v42, %v6842_v41  ;;  %v6010_v60 = vld [vmem:[#allocation10 + $0x150] sm:$0xf] }
 0x254   : > { %v7444_v53 = vld [vmem:[#allocation10 + $0xca8] sm:$0xf0]  ;;  %v8275_v33 = vld [vmem:[#allocation10 + $0x2ec] sm:$0xf0] }
 0x255   : > { %v8646_v54 = vld [vmem:[#allocation10 + $0xe8c] sm:$0xf]  ;;  %v7447_v2 = vor.u32 %v8582_v51, %v7444_v53  ;;  %4396 = vmatpush.bf16.msra.mxu3 %v7191_v63  ;;  %v6298_v51 = vld [vmem:[#allocation10 + $0x390] sm:$0xf] }
 0x256   : > { %v7700_v55 = vld [vmem:[#allocation10 + $0xea8] sm:$0xf0]  ;;  %v6554_v53 = vld [vmem:[#allocation10 + $0x590] sm:$0xf]  ;;  %v6299_v59 = vor.u32 %v8299_v52, %v6298_v51 }
 0x257   : > { %v8446_v61 = vld [vmem:[#allocation10 + $0x84c] sm:$0xf]  ;;  %v7703_v3 = vor.u32 %v8646_v54, %v7700_v55  ;;  %4409 = vmatpush.bf16.msrb.mxu0 %v7447_v2  ;;  %v8363_v54 = vld [vmem:[#allocation10 + $0x5ac] sm:$0xf0] }
 0x258   : > { %v6900_v0 = vld [vmem:[#allocation10 + $0x868] sm:$0xf0]  ;;  %v6810_v55 = vld [vmem:[#allocation10 + $0x790] sm:$0xf] }
 0x259   : > { %v8510_v4 = vld [vmem:[#allocation10 + $0xa4c] sm:$0xf]  ;;  %v6903_v11 = vor.u32 %v8446_v61, %v6900_v0  ;;  %4422 = vmatpush.bf16.msrb.mxu1 %v7703_v3  ;;  %v8227_v63 = vld [vmem:[#allocation10 + $0x16c] sm:$0xf0]  ;;  %v6555_v61 = vor.u32 %v8363_v54, %v6554_v53  ;;  %v6811_v0 = vor.u32 %v8427_v56, %v6810_v55  ;;  %v4180_v53 = vadd.f32 %v4179_v48, %v9421_v16 }
 0x25a   : > { %v7156_v5 = vld [vmem:[#allocation10 + $0xa68] sm:$0xf0]  ;;  %v6266_v2 = vld [vmem:[#allocation10 + $0x350] sm:$0xf] }
 0x25b   : > { %v8574_v62 = vld [vmem:[#allocation10 + $0xc4c] sm:$0xf]  ;;  %v7159_v12 = vor.u32 %v8510_v4, %v7156_v5  ;;  %4384 = vmatpush.bf16.msra.mxu2 %v6903_v11  ;;  %v8291_v3 = vld [vmem:[#allocation10 + $0x36c] sm:$0xf0] }
 0x25c   : > { %v7412_v8 = vld [vmem:[#allocation10 + $0xc68] sm:$0xf0]  ;;  %v6522_v4 = vld [vmem:[#allocation10 + $0x550] sm:$0xf] }
 0x25d   : > { %v8638_v9 = vld [vmem:[#allocation10 + $0xe4c] sm:$0xf]  ;;  %v7415_v17 = vor.u32 %v8574_v62, %v7412_v8  ;;  %4397 = vmatpush.bf16.msra.mxu3 %v7159_v12  ;;  %v8355_v5 = vld [vmem:[#allocation10 + $0x56c] sm:$0xf0]  ;;  %v6011_v8 = vor.u32 %v8227_v63, %v6010_v60 }
 0x25e   : > { %v7668_v6 = vld [vmem:[#allocation10 + $0xe68] sm:$0xf0]  ;;  %v6778_v62 = vld [vmem:[#allocation10 + $0x750] sm:$0xf]  ;;  %v6523_v11 = vor.u32 %v8355_v5, %v6522_v4 }
 0x25f   : > { %v8438_v10 = vld [vmem:[#allocation10 + $0x80c] sm:$0xf]  ;;  %v7671_v20 = vor.u32 %v8638_v9, %v7668_v6  ;;  %4410 = vmatpush.bf16.msrb.mxu0 %v7415_v17  ;;  %v6267_v9 = vor.u32 %v8291_v3, %v6266_v2  ;;  %v5978_v6 = vld [vmem:[#allocation10 + $0x110] sm:$0xf]  ;;  %v6779_v12 = vor.u32 %v8419_v7, %v6778_v62 }
 0x260   : > { %v6868_v13 = vld [vmem:[#allocation10 + $0x828] sm:$0xf0]  ;;  %v8347_v17 = vld [vmem:[#allocation10 + $0x52c] sm:$0xf0] }
 0x261   : > { %v8502_v14 = vld [vmem:[#allocation10 + $0xa0c] sm:$0xf]  ;;  %v6871_v35 = vor.u32 %v8438_v10, %v6868_v13  ;;  %4423 = vmatpush.bf16.msrb.mxu1 %v7671_v20  ;;  %v8219_v10 = vld [vmem:[#allocation10 + $0x12c] sm:$0xf0] }
 0x262   : > { %v7124_v15 = vld [vmem:[#allocation10 + $0xa28] sm:$0xf0]  ;;  %v6234_v13 = vld [vmem:[#allocation10 + $0x310] sm:$0xf] }
 0x263   : > { %v8566_v22 = vld [vmem:[#allocation10 + $0xc0c] sm:$0xf]  ;;  %v7127_v19 = vor.u32 %v8502_v14, %v7124_v15  ;;  %4385 = vmatpush.bf16.msra.mxu2 %v6871_v35  ;;  %v8283_v14 = vld [vmem:[#allocation10 + $0x32c] sm:$0xf0] }
 0x264   : > { %v7380_v24 = vld [vmem:[#allocation10 + $0xc28] sm:$0xf0]  ;;  %v6490_v15 = vld [vmem:[#allocation10 + $0x510] sm:$0xf] }
 0x265   : > { %v8630_v25 = vld [vmem:[#allocation10 + $0xe0c] sm:$0xf]  ;;  %v7383_v43 = vor.u32 %v8566_v22, %v7380_v24  ;;  %4398 = vmatpush.bf16.msra.mxu3 %v7127_v19  ;;  %v6746_v20 = vld [vmem:[#allocation10 + $0x710] sm:$0xf]  ;;  %v4218_v22 = vpop.f32.mrf.mxu1  ;;  %v5979_v24 = vor.u32 %v8219_v10, %v5978_v6  ;;  %v6491_v28 = vor.u32 %v8347_v17, %v6490_v15 }
 0x266   : > { %v7636_v26 = vld [vmem:[#allocation10 + $0xe28] sm:$0xf0]  ;;  %4386 = vmatmul.bf16.vlgmr.msra.gmra.mxu2 %v9377_v29  ;;  %v6747_v31 = vor.u32 %v8411_v21, %v6746_v20  ;;  %v6458_v35 = vld [vmem:[#allocation10 + $0x4d0] sm:$0xf] }
 0x267   : > { %v7639_v44 = vor.u32 %v8630_v25, %v7636_v26  ;;  %4411 = vmatpush.bf16.msrb.mxu0 %v7383_v43  ;;  %4430 = vmatpush.bf16.msrb.mxu2 %v6075_v45  ;;  %v6235_v25 = vor.u32 %v8283_v14, %v6234_v13  ;;  %v5946_v26 = vld [vmem:[#allocation10 + $0xd0] sm:$0xf]  ;;  %v6203_v43 = vor.u32 %v8275_v33, %v6202_v32 }
 0x268   : > { %4399 = vmatmul.bf16.vlgmr.msra.gmra.mxu3 %v9379_v30  ;;  %v8339_v19 = vld [vmem:[#allocation10 + $0x4ec] sm:$0xf0]  ;;  %v5947_v42 = vor.u32 %v8211_v27, %v5946_v26 }
 0x269   : > { %4424 = vmatpush.bf16.msrb.mxu1 %v7639_v44  ;;  %4443 = vmatpush.bf16.msrb.mxu3 %v6331_v46  ;;  %v6714_v40 = vld [vmem:[#allocation10 + $0x6d0] sm:$0xf]  ;;  %v6459_v46 = vor.u32 %v8339_v19, %v6458_v35 }
 0x26a   : > { %4412 = vmatmul.bf16.vlgmr.msrb.gmra.mxu0 %v9381_v34  ;;  %v8403_v41 = vld [vmem:[#allocation10 + $0x6ec] sm:$0xf0] }
 0x26b   : > { %4456 = vmatpush.bf16.msra.mxu0 %v6587_v49  ;;  %4431 = vmatpush.bf16.msrb.mxu2 %v6043_v57  ;;  %v5914_v44 = vld [vmem:[#allocation10 + $0x90] sm:$0xf]  ;;  %v6715_v47 = vor.u32 %v8403_v41, %v6714_v40  ;;  %v4192_v49 = vpop.f32.mrf.mxu3 }
 0x26c   : > { %4425 = vmatmul.bf16.vlgmr.msrb.gmra.mxu1 %v9383_v23  ;;  %v8203_v45 = vld [vmem:[#allocation10 + $0xac] sm:$0xf0]  ;;  %v4193_v57 = vadd.f32 %v4192_v49, %v4180_v53 }
 0x26d   : > { %4469 = vmatpush.bf16.msra.mxu1 %v6843_v50  ;;  %4444 = vmatpush.bf16.msrb.mxu3 %v6299_v59  ;;  %v6170_v50 = vld [vmem:[#allocation10 + $0x290] sm:$0xf]  ;;  %v4207_v59 = vpop.f32.mrf.mxu0  ;;  %v4220_v60 = vpop.f32.mrf.mxu1  ;;  %v5915_v63 = vor.u32 %v8203_v45, %v5914_v44 }
 0x26e   : > { %v8267_v51 = vld [vmem:[#allocation10 + $0x2ac] sm:$0xf0]  ;;  %v4206_v16 = vadd.f32 %v4205_v18, %v4193_v57 }
 0x26f   : > { %4457 = vmatpush.bf16.msra.mxu0 %v6555_v61  ;;  %4432 = vmatpush.bf16.msrb.mxu2 %v6011_v8  ;;  %v6426_v52 = vld [vmem:[#allocation10 + $0x490] sm:$0xf]  ;;  %v6171_v61 = vor.u32 %v8267_v51, %v6170_v50 }
 0x270   : > { %v8331_v54 = vld [vmem:[#allocation10 + $0x4ac] sm:$0xf0] }
 0x271   : > { %4470 = vmatpush.bf16.msra.mxu1 %v6811_v0  ;;  %4445 = vmatpush.bf16.msrb.mxu3 %v6267_v9  ;;  %v6682_v55 = vld [vmem:[#allocation10 + $0x690] sm:$0xf]  ;;  %v6427_v3 = vor.u32 %v8331_v54, %v6426_v52 }
 0x272   : > { %v8395_v56 = vld [vmem:[#allocation10 + $0x6ac] sm:$0xf0] }
 0x273   : > { %4458 = vmatpush.bf16.msra.mxu0 %v6523_v11  ;;  %4433 = vmatpush.bf16.msrb.mxu2 %v5979_v24  ;;  %v5882_v0 = vld [vmem:[#allocation10 + $0x50] sm:$0xf]  ;;  %v6683_v4 = vor.u32 %v8395_v56, %v6682_v55  ;;  %v9428_v11 = vadd.f32 %v4218_v22, %v4206_v16  ;;  %v4181_v24 = vpop.f32.mrf.mxu2 }
 0x274   : > { %v8195_v2 = vld [vmem:[#allocation10 + $0x6c] sm:$0xf0] }
 0x275   : > { %4471 = vmatpush.bf16.msra.mxu1 %v6779_v12  ;;  %4446 = vmatpush.bf16.msrb.mxu3 %v6235_v25  ;;  %v6138_v5 = vld [vmem:[#allocation10 + $0x250] sm:$0xf]  ;;  %v5883_v12 = vor.u32 %v8195_v2, %v5882_v0  ;;  %v4194_v25 = vpop.f32.mrf.mxu3 }
 0x276   : > { %v8259_v62 = vld [vmem:[#allocation10 + $0x26c] sm:$0xf0]  ;;  %v4257_v25 = vpop.f32.mrf.mxu0 }
 0x277   : > { %4459 = vmatpush.bf16.msra.mxu0 %v6491_v28  ;;  %4434 = vmatpush.bf16.msrb.mxu2 %v5947_v42  ;;  %v6394_v7 = vld [vmem:[#allocation10 + $0x450] sm:$0xf]  ;;  %v6139_v13 = vor.u32 %v8259_v62, %v6138_v5 }
 0x278   : > { %v8323_v8 = vld [vmem:[#allocation10 + $0x46c] sm:$0xf0] }
 0x279   : > { %4472 = vmatpush.bf16.msra.mxu1 %v6747_v31  ;;  %4447 = vmatpush.bf16.msrb.mxu3 %v6203_v43  ;;  %v6650_v9 = vld [vmem:[#allocation10 + $0x650] sm:$0xf]  ;;  %v6395_v20 = vor.u32 %v8323_v8, %v6394_v7 }
 0x27a   : > { %v8387_v6 = vld [vmem:[#allocation10 + $0x66c] sm:$0xf0] }
 0x27b   : > { %4460 = vmatpush.bf16.msra.mxu0 %v6459_v46  ;;  %v5850_v10 = vld [vmem:[#allocation10 + $0x10] sm:$0xf]  ;;  %4435 = vmatpush.bf16.msrb.mxu2 %v5915_v63  ;;  %v6651_v21 = vor.u32 %v8387_v6, %v6650_v9 }
 0x27c   : > { %v8187_v14 = vld [vmem:[#allocation10 + $0x2c] sm:$0xf0] }
 0x27d   : > { %4473 = vmatpush.bf16.msra.mxu1 %v6715_v47  ;;  %4448 = vmatpush.bf16.msrb.mxu3 %v6171_v61  ;;  %v6106_v15 = vld [vmem:[#allocation10 + $0x210] sm:$0xf]  ;;  %v5851_v19 = vor.u32 %v8187_v14, %v5850_v10 }
 0x27e   : > { %v8251_v17 = vld [vmem:[#allocation10 + $0x22c] sm:$0xf0] }
 0x27f   : > { %4461 = vmatpush.bf16.msra.mxu0 %v6427_v3  ;;  %v6362_v18 = vld [vmem:[#allocation10 + $0x410] sm:$0xf]  ;;  %4436 = vmatpush.bf16.msrb.mxu2 %v5883_v12  ;;  %v6107_v40 = vor.u32 %v8251_v17, %v6106_v15 }
 0x280   : > { %v8315_v26 = vld [vmem:[#allocation10 + $0x42c] sm:$0xf0] }
 0x281   : > { %4474 = vmatpush.bf16.msra.mxu1 %v6683_v4  ;;  %v6618_v27 = vld [vmem:[#allocation10 + $0x610] sm:$0xf]  ;;  %4449 = vmatpush.bf16.msrb.mxu3 %v6139_v13  ;;  %v6363_v44 = vor.u32 %v8315_v26, %v6362_v18  ;;  %v9434_v18 = vpop.f32.mrf.mxu1 }
 0x282   : > { %v8379_v28 = vld [vmem:[#allocation10 + $0x62c] sm:$0xf0] }
 0x283   : > { %v7098_v31 = vld [vmem:[#allocation10 + $0x9d0] sm:$0xf]  ;;  %4462 = vmatpush.bf16.msra.mxu0 %v6395_v20  ;;  %v6619_v45 = vor.u32 %v8379_v28, %v6618_v27  ;;  %4437 = vmatpush.bf16.msrb.mxu2 %v5851_v19 }
 0x284   : > { %v8499_v22 = vld [vmem:[#allocation10 + $0x9ec] sm:$0xf0] }
 0x285   : > { %v7354_v32 = vld [vmem:[#allocation10 + $0xbd0] sm:$0xf]  ;;  %4475 = vmatpush.bf16.msra.mxu1 %v6651_v21  ;;  %v7099_v46 = vor.u32 %v8499_v22, %v7098_v31  ;;  %4450 = vmatpush.bf16.msrb.mxu3 %v6107_v40 }
 0x286   : > { %v8563_v33 = vld [vmem:[#allocation10 + $0xbec] sm:$0xf0]  ;;  %4438 = vmatmul.bf16.vlgmr.msrb.gmra.mxu2 %v9361_v36 }
 0x287   : > { %v7610_v35 = vld [vmem:[#allocation10 + $0xdd0] sm:$0xf]  ;;  %v7355_v47 = vor.u32 %v8563_v33, %v7354_v32  ;;  %4463 = vmatpush.bf16.msra.mxu0 %v6363_v44  ;;  %4482 = vmatpush.bf16.msra.mxu2 %v7099_v46 }
 0x288   : > { %v8627_v41 = vld [vmem:[#allocation10 + $0xdec] sm:$0xf0]  ;;  %4451 = vmatmul.bf16.vlgmr.msrb.gmra.mxu3 %v9363_v37 }
 0x289   : > { %v7866_v42 = vld [vmem:[#allocation10 + $0xfd0] sm:$0xf]  ;;  %v7611_v50 = vor.u32 %v8627_v41, %v7610_v35  ;;  %4476 = vmatpush.bf16.msra.mxu1 %v6619_v45  ;;  %4495 = vmatpush.bf16.msra.mxu3 %v7355_v47 }
 0x28a   : > { %v8691_v43 = vld [vmem:[#allocation10 + $0xfec] sm:$0xf0]  ;;  %4464 = vmatmul.bf16.vlgmr.msra.gmra.mxu0 %v9365_v38 }
 0x28b   : > { %v7066_v48 = vld [vmem:[#allocation10 + $0x990] sm:$0xf]  ;;  %v7867_v51 = vor.u32 %v8691_v43, %v7866_v42  ;;  %4508 = vmatpush.bf16.msrb.mxu0 %v7611_v50  ;;  %v4000_v43 = vperm.slane %v9405_v58, 2  ;;  %v4231_v50 = vpop.f32.mrf.mxu2 }
 0x28c   : > { %v8491_v49 = vld [vmem:[#allocation10 + $0x9ac] sm:$0xf0]  ;;  %4477 = vmatmul.bf16.vlgmr.msra.gmra.mxu1 %v9367_v39 }
 0x28d   : > { %v7322_v52 = vld [vmem:[#allocation10 + $0xb90] sm:$0xf]  ;;  %v7067_v59 = vor.u32 %v8491_v49, %v7066_v48  ;;  %4521 = vmatpush.bf16.msrb.mxu1 %v7867_v51  ;;  %v4244_v51 = vpop.f32.mrf.mxu3 }
 0x28e   : > { %v8555_v53 = vld [vmem:[#allocation10 + $0xbac] sm:$0xf0] }
 0x28f   : > { %v7578_v54 = vld [vmem:[#allocation10 + $0xd90] sm:$0xf]  ;;  %v7323_v60 = vor.u32 %v8555_v53, %v7322_v52  ;;  %4483 = vmatpush.bf16.msra.mxu2 %v7067_v59 }
 0x290   : > { %v8619_v55 = vld [vmem:[#allocation10 + $0xdac] sm:$0xf0] }
 0x291   : > { %v7834_v56 = vld [vmem:[#allocation10 + $0xf90] sm:$0xf]  ;;  %v7579_v0 = vor.u32 %v8619_v55, %v7578_v54  ;;  %4496 = vmatpush.bf16.msra.mxu3 %v7323_v60  ;;  %v4232_v55 = vadd.f32 %v4231_v50, %v4000_v43  ;;  %v4259_v60 = vpop.f32.mrf.mxu0  ;;  %v6588_v43 = vld [vmem:[#allocation10 + $0x5f0] sm:$0xf0] }
 0x292   : > { %v8683_v57 = vld [vmem:[#allocation10 + $0xfac] sm:$0xf0]  ;;  %v8231_v50 = vld [vmem:[#allocation10 + $0x194] sm:$0xf] }
 0x293   : > { %v7034_v63 = vld [vmem:[#allocation10 + $0x950] sm:$0xf]  ;;  %v7835_v2 = vor.u32 %v8683_v57, %v7834_v56  ;;  %4509 = vmatpush.bf16.msrb.mxu0 %v7579_v0  ;;  %v4245_v58 = vadd.f32 %v4244_v51, %v4232_v55  ;;  %v6044_v51 = vld [vmem:[#allocation10 + $0x1b0] sm:$0xf0] }
 0x294   : > { %v8483_v61 = vld [vmem:[#allocation10 + $0x96c] sm:$0xf0]  ;;  %v6300_v55 = vld [vmem:[#allocation10 + $0x3b0] sm:$0xf0]  ;;  %v6047_v60 = vor.u32 %v8231_v50, %v6044_v51 }
 0x295   : > { %v7290_v3 = vld [vmem:[#allocation10 + $0xb50] sm:$0xf]  ;;  %v7035_v8 = vor.u32 %v8483_v61, %v7034_v63  ;;  %4522 = vmatpush.bf16.msrb.mxu1 %v7835_v2  ;;  %v4272_v63 = vpop.f32.mrf.mxu1 }
 0x296   : > { %v8547_v4 = vld [vmem:[#allocation10 + $0xb6c] sm:$0xf0] }
 0x297   : > { %v7546_v5 = vld [vmem:[#allocation10 + $0xd50] sm:$0xf]  ;;  %v7291_v9 = vor.u32 %v8547_v4, %v7290_v3  ;;  %4484 = vmatpush.bf16.msra.mxu2 %v7035_v8  ;;  %v4258_v8 = vadd.f32 %v4257_v25, %v4245_v58  ;;  %v4246_v25 = vpop.f32.mrf.mxu3  ;;  %v6812_v58 = vld [vmem:[#allocation10 + $0x7b0] sm:$0xf0] }
 0x298   : > { %v8611_v62 = vld [vmem:[#allocation10 + $0xd6c] sm:$0xf0] }
 0x299   : > { %v7802_v7 = vld [vmem:[#allocation10 + $0xf50] sm:$0xf]  ;;  %v7547_v12 = vor.u32 %v8611_v62, %v7546_v5  ;;  %4497 = vmatpush.bf16.msra.mxu3 %v7291_v9  ;;  %v4309_v25 = vpop.f32.mrf.mxu0 }
 0x29a   : > { %v8675_v16 = vld [vmem:[#allocation10 + $0xf6c] sm:$0xf0] }
 0x29b   : > { %v7002_v6 = vld [vmem:[#allocation10 + $0x910] sm:$0xf]  ;;  %v7803_v13 = vor.u32 %v8675_v16, %v7802_v7  ;;  %4510 = vmatpush.bf16.msrb.mxu0 %v7547_v12 }
 0x29c   : > { %v8475_v10 = vld [vmem:[#allocation10 + $0x92c] sm:$0xf0] }
 0x29d   : > { %v7258_v14 = vld [vmem:[#allocation10 + $0xb10] sm:$0xf]  ;;  %v7003_v26 = vor.u32 %v8475_v10, %v7002_v6  ;;  %4523 = vmatpush.bf16.msrb.mxu1 %v7803_v13 }
 0x29e   : > { %v8539_v15 = vld [vmem:[#allocation10 + $0xb2c] sm:$0xf0] }
 0x29f   : > { %v7514_v17 = vld [vmem:[#allocation10 + $0xd10] sm:$0xf]  ;;  %v7259_v27 = vor.u32 %v8539_v15, %v7258_v14  ;;  %4485 = vmatpush.bf16.msra.mxu2 %v7003_v26 }
 0x2a0   : > { %v8603_v20 = vld [vmem:[#allocation10 + $0xd2c] sm:$0xf0] }
 0x2a1   : > { %v7770_v21 = vld [vmem:[#allocation10 + $0xf10] sm:$0xf]  ;;  %v7515_v32 = vor.u32 %v8603_v20, %v7514_v17  ;;  %4498 = vmatpush.bf16.msra.mxu3 %v7259_v27  ;;  %v4233_v27 = vpop.f32.mrf.mxu2 }
 0x2a2   : > { %v8667_v24 = vld [vmem:[#allocation10 + $0xf2c] sm:$0xf0]  ;;  %v6748_v27 = vld [vmem:[#allocation10 + $0x730] sm:$0xf0] }
 0x2a3   : > { %v6970_v28 = vld [vmem:[#allocation10 + $0x8d0] sm:$0xf]  ;;  %v7771_v33 = vor.u32 %v8667_v24, %v7770_v21  ;;  %4511 = vmatpush.bf16.msrb.mxu0 %v7515_v32  ;;  %v9438_v21 = vadd.f32 %v9434_v18, %v4258_v8  ;;  %v6780_v8 = vld [vmem:[#allocation10 + $0x770] sm:$0xf0] }
 0x2a4   : > { %v8467_v31 = vld [vmem:[#allocation10 + $0x8ec] sm:$0xf0] }
 0x2a5   : > { %v7226_v22 = vld [vmem:[#allocation10 + $0xad0] sm:$0xf]  ;;  %v6971_v44 = vor.u32 %v8467_v31, %v6970_v28  ;;  %4524 = vmatpush.bf16.msrb.mxu1 %v7771_v33  ;;  %v8239_v33 = vld [vmem:[#allocation10 + $0x1d4] sm:$0xf] }
 0x2a6   : > { %v8531_v35 = vld [vmem:[#allocation10 + $0xaec] sm:$0xf0] }
 0x2a7   : > { %v7482_v19 = vld [vmem:[#allocation10 + $0xcd0] sm:$0xf]  ;;  %v7227_v45 = vor.u32 %v8531_v35, %v7226_v22  ;;  %4486 = vmatpush.bf16.msra.mxu2 %v6971_v44  ;;  %v6076_v35 = vld [vmem:[#allocation10 + $0x1f0] sm:$0xf0] }
 0x2a8   : > { %v8595_v40 = vld [vmem:[#allocation10 + $0xcec] sm:$0xf0]  ;;  %v8431_v44 = vld [vmem:[#allocation10 + $0x7d4] sm:$0xf] }
 0x2a9   : > { %v7738_v41 = vld [vmem:[#allocation10 + $0xed0] sm:$0xf]  ;;  %v7483_v48 = vor.u32 %v8595_v40, %v7482_v19  ;;  %4499 = vmatpush.bf16.msra.mxu3 %v7227_v45  ;;  %v8303_v19 = vld [vmem:[#allocation10 + $0x3d4] sm:$0xf]  ;;  %v4283_v51 = vpop.f32.mrf.mxu2 }
 0x2aa   : > { %v8659_v42 = vld [vmem:[#allocation10 + $0xeec] sm:$0xf0]  ;;  %v6332_v40 = vld [vmem:[#allocation10 + $0x3f0] sm:$0xf0] }
 0x2ab   : > { %v6938_v46 = vld [vmem:[#allocation10 + $0x890] sm:$0xf]  ;;  %v7739_v49 = vor.u32 %v8659_v42, %v7738_v41  ;;  %4512 = vmatpush.bf16.msrb.mxu0 %v7483_v48  ;;  %v8367_v41 = vld [vmem:[#allocation10 + $0x5d4] sm:$0xf]  ;;  %v6079_v48 = vor.u32 %v8239_v33, %v6076_v35 }
 0x2ac   : > { %v8459_v47 = vld [vmem:[#allocation10 + $0x8ac] sm:$0xf0]  ;;  %v6844_v45 = vld [vmem:[#allocation10 + $0x7f0] sm:$0xf0] }
 0x2ad   : > { %v7194_v52 = vld [vmem:[#allocation10 + $0xa90] sm:$0xf]  ;;  %v6939_v61 = vor.u32 %v8459_v47, %v6938_v46  ;;  %4525 = vmatpush.bf16.msrb.mxu1 %v7739_v49  ;;  %v6335_v49 = vor.u32 %v8303_v19, %v6332_v40  ;;  %v5948_v33 = vld [vmem:[#allocation10 + $0xf0] sm:$0xf0] }
 0x2ae   : > { %v8523_v53 = vld [vmem:[#allocation10 + $0xaac] sm:$0xf0]  ;;  %v8271_v40 = vld [vmem:[#allocation10 + $0x2d4] sm:$0xf] }
 0x2af   : > { %v7450_v54 = vld [vmem:[#allocation10 + $0xc90] sm:$0xf]  ;;  %v7195_v0 = vor.u32 %v8523_v53, %v7194_v52  ;;  %4487 = vmatpush.bf16.msra.mxu2 %v6939_v61  ;;  %v6591_v52 = vor.u32 %v8367_v41, %v6588_v43  ;;  %v6847_v53 = vor.u32 %v8431_v44, %v6844_v45  ;;  %v8223_v61 = vld [vmem:[#allocation10 + $0x154] sm:$0xf] }
 0x2b0   : > { %v8587_v56 = vld [vmem:[#allocation10 + $0xcac] sm:$0xf0]  ;;  %v6204_v41 = vld [vmem:[#allocation10 + $0x2f0] sm:$0xf0] }
 0x2b1   : > { %v7706_v57 = vld [vmem:[#allocation10 + $0xe90] sm:$0xf]  ;;  %v7451_v4 = vor.u32 %v8587_v56, %v7450_v54  ;;  %4500 = vmatpush.bf16.msra.mxu3 %v7195_v0  ;;  %v8295_v54 = vld [vmem:[#allocation10 + $0x394] sm:$0xf] }
 0x2b2   : > { %v8651_v59 = vld [vmem:[#allocation10 + $0xeac] sm:$0xf0]  ;;  %v8359_v56 = vld [vmem:[#allocation10 + $0x594] sm:$0xf]  ;;  %v6303_v63 = vor.u32 %v8295_v54, %v6300_v55 }
 0x2b3   : > { %v6906_v2 = vld [vmem:[#allocation10 + $0x850] sm:$0xf]  ;;  %v7707_v5 = vor.u32 %v8651_v59, %v7706_v57  ;;  %4513 = vmatpush.bf16.msrb.mxu0 %v7451_v4  ;;  %v6556_v57 = vld [vmem:[#allocation10 + $0x5b0] sm:$0xf0] }
 0x2b4   : > { %v8451_v3 = vld [vmem:[#allocation10 + $0x86c] sm:$0xf0]  ;;  %v8423_v59 = vld [vmem:[#allocation10 + $0x794] sm:$0xf] }
 0x2b5   : > { %v7162_v62 = vld [vmem:[#allocation10 + $0xa50] sm:$0xf]  ;;  %v6907_v13 = vor.u32 %v8451_v3, %v6906_v2  ;;  %4526 = vmatpush.bf16.msrb.mxu1 %v7707_v5  ;;  %v6012_v0 = vld [vmem:[#allocation10 + $0x170] sm:$0xf0]  ;;  %v6559_v2 = vor.u32 %v8359_v56, %v6556_v57  ;;  %v6815_v3 = vor.u32 %v8423_v59, %v6812_v58  ;;  %v4284_v56 = vadd.f32 %v4283_v51, %v9438_v21 }
 0x2b6   : > { %v8515_v7 = vld [vmem:[#allocation10 + $0xa6c] sm:$0xf0]  ;;  %v8287_v4 = vld [vmem:[#allocation10 + $0x354] sm:$0xf] }
 0x2b7   : > { %v7418_v16 = vld [vmem:[#allocation10 + $0xc50] sm:$0xf]  ;;  %v7163_v14 = vor.u32 %v8515_v7, %v7162_v62  ;;  %4488 = vmatpush.bf16.msra.mxu2 %v6907_v13  ;;  %v6268_v5 = vld [vmem:[#allocation10 + $0x370] sm:$0xf0] }
 0x2b8   : > { %v8579_v9 = vld [vmem:[#allocation10 + $0xc6c] sm:$0xf0]  ;;  %v8351_v62 = vld [vmem:[#allocation10 + $0x554] sm:$0xf] }
 0x2b9   : > { %v7674_v6 = vld [vmem:[#allocation10 + $0xe50] sm:$0xf]  ;;  %v7419_v24 = vor.u32 %v8579_v9, %v7418_v16  ;;  %4501 = vmatpush.bf16.msra.mxu3 %v7163_v14  ;;  %v6524_v7 = vld [vmem:[#allocation10 + $0x570] sm:$0xf0]  ;;  %v6015_v9 = vor.u32 %v8223_v61, %v6012_v0 }
 0x2ba   : > { %v8643_v10 = vld [vmem:[#allocation10 + $0xe6c] sm:$0xf0]  ;;  %v8415_v16 = vld [vmem:[#allocation10 + $0x754] sm:$0xf]  ;;  %v6527_v13 = vor.u32 %v8351_v62, %v6524_v7 }
 0x2bb   : > { %v6874_v12 = vld [vmem:[#allocation10 + $0x810] sm:$0xf]  ;;  %v7675_v26 = vor.u32 %v8643_v10, %v7674_v6  ;;  %4514 = vmatpush.bf16.msrb.mxu0 %v7419_v24  ;;  %v6271_v6 = vor.u32 %v8287_v4, %v6268_v5  ;;  %v8215_v10 = vld [vmem:[#allocation10 + $0x114] sm:$0xf]  ;;  %v6783_v14 = vor.u32 %v8415_v16, %v6780_v8 }
 0x2bc   : > { %v8443_v15 = vld [vmem:[#allocation10 + $0x82c] sm:$0xf0]  ;;  %v6492_v24 = vld [vmem:[#allocation10 + $0x530] sm:$0xf0] }
 0x2bd   : > { %v7130_v17 = vld [vmem:[#allocation10 + $0xa10] sm:$0xf]  ;;  %v6875_v42 = vor.u32 %v8443_v15, %v6874_v12  ;;  %4527 = vmatpush.bf16.msrb.mxu1 %v7675_v26  ;;  %v5980_v12 = vld [vmem:[#allocation10 + $0x130] sm:$0xf0] }
 0x2be   : > { %v8507_v20 = vld [vmem:[#allocation10 + $0xa2c] sm:$0xf0]  ;;  %v8279_v15 = vld [vmem:[#allocation10 + $0x314] sm:$0xf] }
 0x2bf   : > { %v7386_v28 = vld [vmem:[#allocation10 + $0xc10] sm:$0xf]  ;;  %v7131_v18 = vor.u32 %v8507_v20, %v7130_v17  ;;  %4489 = vmatpush.bf16.msra.mxu2 %v6875_v42  ;;  %v6236_v17 = vld [vmem:[#allocation10 + $0x330] sm:$0xf0] }
 0x2c0   : > { %v8571_v31 = vld [vmem:[#allocation10 + $0xc2c] sm:$0xf0]  ;;  %v8343_v20 = vld [vmem:[#allocation10 + $0x514] sm:$0xf] }
 0x2c1   : > { %v7642_v22 = vld [vmem:[#allocation10 + $0xe10] sm:$0xf]  ;;  %v7387_v46 = vor.u32 %v8571_v31, %v7386_v28  ;;  %4502 = vmatpush.bf16.msra.mxu3 %v7131_v18  ;;  %v8407_v26 = vld [vmem:[#allocation10 + $0x714] sm:$0xf]  ;;  %v4322_v28 = vpop.f32.mrf.mxu1  ;;  %v5983_v31 = vor.u32 %v8215_v10, %v5980_v12  ;;  %v6495_v35 = vor.u32 %v8343_v20, %v6492_v24 }
 0x2c2   : > { %v8635_v32 = vld [vmem:[#allocation10 + $0xe2c] sm:$0xf0]  ;;  %4490 = vmatmul.bf16.vlgmr.msra.gmra.mxu2 %v9377_v29  ;;  %v6751_v19 = vor.u32 %v8407_v26, %v6748_v27  ;;  %v8335_v42 = vld [vmem:[#allocation10 + $0x4d4] sm:$0xf] }
 0x2c3   : > { %v7643_v47 = vor.u32 %v8635_v32, %v7642_v22  ;;  %4515 = vmatpush.bf16.msrb.mxu0 %v7387_v46  ;;  %4534 = vmatpush.bf16.msrb.mxu2 %v6079_v48  ;;  %v6239_v22 = vor.u32 %v8279_v15, %v6236_v17  ;;  %v8207_v32 = vld [vmem:[#allocation10 + $0xd4] sm:$0xf]  ;;  %v6207_v46 = vor.u32 %v8271_v40, %v6204_v41 }
 0x2c4   : > { %4503 = vmatmul.bf16.vlgmr.msra.gmra.mxu3 %v9379_v30  ;;  %v6460_v18 = vld [vmem:[#allocation10 + $0x4f0] sm:$0xf0]  ;;  %v5951_v45 = vor.u32 %v8207_v32, %v5948_v33 }
 0x2c5   : > { %4528 = vmatpush.bf16.msrb.mxu1 %v7643_v47  ;;  %4547 = vmatpush.bf16.msrb.mxu3 %v6335_v49  ;;  %v8399_v43 = vld [vmem:[#allocation10 + $0x6d4] sm:$0xf]  ;;  %v6463_v49 = vor.u32 %v8335_v42, %v6460_v18 }
 0x2c6   : > { %4516 = vmatmul.bf16.vlgmr.msrb.gmra.mxu0 %v9381_v34  ;;  %v6716_v44 = vld [vmem:[#allocation10 + $0x6f0] sm:$0xf0] }
 0x2c7   : > { %4560 = vmatpush.bf16.msra.mxu0 %v6591_v52  ;;  %4535 = vmatpush.bf16.msrb.mxu2 %v6047_v60  ;;  %v8199_v47 = vld [vmem:[#allocation10 + $0x94] sm:$0xf]  ;;  %v6719_v50 = vor.u32 %v8399_v43, %v6716_v44  ;;  %v4296_v52 = vpop.f32.mrf.mxu3 }
 0x2c8   : > { %4529 = vmatmul.bf16.vlgmr.msrb.gmra.mxu1 %v9383_v23  ;;  %v5916_v48 = vld [vmem:[#allocation10 + $0xb0] sm:$0xf0]  ;;  %v4297_v60 = vadd.f32 %v4296_v52, %v4284_v56 }
 0x2c9   : > { %4573 = vmatpush.bf16.msra.mxu1 %v6847_v53  ;;  %4548 = vmatpush.bf16.msrb.mxu3 %v6303_v63  ;;  %v8263_v53 = vld [vmem:[#allocation10 + $0x294] sm:$0xf]  ;;  %v4311_v63 = vpop.f32.mrf.mxu0  ;;  %v4324_v61 = vpop.f32.mrf.mxu1  ;;  %v5919_v0 = vor.u32 %v8199_v47, %v5916_v48 }
 0x2ca   : > { %v6172_v54 = vld [vmem:[#allocation10 + $0x2b0] sm:$0xf0]  ;;  %v4310_v21 = vadd.f32 %v4309_v25, %v4297_v60 }
 0x2cb   : > { %4561 = vmatpush.bf16.msra.mxu0 %v6559_v2  ;;  %4536 = vmatpush.bf16.msrb.mxu2 %v6015_v9  ;;  %v8327_v55 = vld [vmem:[#allocation10 + $0x494] sm:$0xf]  ;;  %v6175_v2 = vor.u32 %v8263_v53, %v6172_v54 }
 0x2cc   : > { %v6428_v57 = vld [vmem:[#allocation10 + $0x4b0] sm:$0xf0] }
 0x2cd   : > { %4574 = vmatpush.bf16.msra.mxu1 %v6815_v3  ;;  %4549 = vmatpush.bf16.msrb.mxu3 %v6271_v6  ;;  %v8391_v59 = vld [vmem:[#allocation10 + $0x694] sm:$0xf]  ;;  %v6431_v5 = vor.u32 %v8327_v55, %v6428_v57 }
 0x2ce   : > { %v6684_v58 = vld [vmem:[#allocation10 + $0x6b0] sm:$0xf0] }
 0x2cf   : > { %4562 = vmatpush.bf16.msra.mxu0 %v6527_v13  ;;  %4537 = vmatpush.bf16.msrb.mxu2 %v5983_v31  ;;  %v8191_v3 = vld [vmem:[#allocation10 + $0x54] sm:$0xf]  ;;  %v6687_v62 = vor.u32 %v8391_v59, %v6684_v58  ;;  %v9445_v13 = vadd.f32 %v4322_v28, %v4310_v21  ;;  %v4285_v31 = vpop.f32.mrf.mxu2 }
 0x2d0   : > { %v5884_v4 = vld [vmem:[#allocation10 + $0x70] sm:$0xf0] }
 0x2d1   : > { %4575 = vmatpush.bf16.msra.mxu1 %v6783_v14  ;;  %4550 = vmatpush.bf16.msrb.mxu3 %v6239_v22  ;;  %v8255_v7 = vld [vmem:[#allocation10 + $0x254] sm:$0xf]  ;;  %v5887_v14 = vor.u32 %v8191_v3, %v5884_v4  ;;  %v4298_v22 = vpop.f32.mrf.mxu3 }
 0x2d2   : > { %v6140_v16 = vld [vmem:[#allocation10 + $0x270] sm:$0xf0]  ;;  %v4361_v22 = vpop.f32.mrf.mxu0 }
 0x2d3   : > { %4563 = vmatpush.bf16.msra.mxu0 %v6495_v35  ;;  %4538 = vmatpush.bf16.msrb.mxu2 %v5951_v45  ;;  %v8319_v8 = vld [vmem:[#allocation10 + $0x454] sm:$0xf]  ;;  %v6143_v15 = vor.u32 %v8255_v7, %v6140_v16 }
 0x2d4   : > { %v6396_v9 = vld [vmem:[#allocation10 + $0x470] sm:$0xf0] }
 0x2d5   : > { %4576 = vmatpush.bf16.msra.mxu1 %v6751_v19  ;;  %4551 = vmatpush.bf16.msrb.mxu3 %v6207_v46  ;;  %v8383_v6 = vld [vmem:[#allocation10 + $0x654] sm:$0xf]  ;;  %v6399_v26 = vor.u32 %v8319_v8, %v6396_v9 }
 0x2d6   : > { %v6652_v10 = vld [vmem:[#allocation10 + $0x670] sm:$0xf0] }
 0x2d7   : > { %4564 = vmatpush.bf16.msra.mxu0 %v6463_v49  ;;  %v8183_v12 = vld [vmem:[#allocation10 + $0x14] sm:$0xf]  ;;  %4539 = vmatpush.bf16.msrb.mxu2 %v5919_v0  ;;  %v6655_v27 = vor.u32 %v8383_v6, %v6652_v10 }
 0x2d8   : > { %v5852_v17 = vld [vmem:[#allocation10 + $0x30] sm:$0xf0] }
 0x2d9   : > { %4577 = vmatpush.bf16.msra.mxu1 %v6719_v50  ;;  %4552 = vmatpush.bf16.msrb.mxu3 %v6175_v2  ;;  %v8247_v20 = vld [vmem:[#allocation10 + $0x214] sm:$0xf]  ;;  %v5855_v18 = vor.u32 %v8183_v12, %v5852_v17 }
 0x2da   : > { %v6108_v24 = vld [vmem:[#allocation10 + $0x230] sm:$0xf0] }
 0x2db   : > { %4565 = vmatpush.bf16.msra.mxu0 %v6431_v5  ;;  %v8311_v25 = vld [vmem:[#allocation10 + $0x414] sm:$0xf]  ;;  %4540 = vmatpush.bf16.msrb.mxu2 %v5887_v14  ;;  %v6111_v43 = vor.u32 %v8247_v20, %v6108_v24 }
 0x2dc   : > { %v6364_v32 = vld [vmem:[#allocation10 + $0x430] sm:$0xf0] }
 0x2dd   : > { %4578 = vmatpush.bf16.msra.mxu1 %v6687_v62  ;;  %v8375_v33 = vld [vmem:[#allocation10 + $0x614] sm:$0xf]  ;;  %4553 = vmatpush.bf16.msrb.mxu3 %v6143_v15  ;;  %v6367_v47 = vor.u32 %v8311_v25, %v6364_v32  ;;  %v9451_v25 = vpop.f32.mrf.mxu1 }
 0x2de   : > { %v6620_v35 = vld [vmem:[#allocation10 + $0x630] sm:$0xf0] }
 0x2df   : > { %v8495_v19 = vld [vmem:[#allocation10 + $0x9d4] sm:$0xf]  ;;  %4566 = vmatpush.bf16.msra.mxu0 %v6399_v26  ;;  %v6623_v48 = vor.u32 %v8375_v33, %v6620_v35  ;;  %4541 = vmatpush.bf16.msrb.mxu2 %v5855_v18 }
 0x2e0   : > { %v7100_v28 = vld [vmem:[#allocation10 + $0x9f0] sm:$0xf0] }
 0x2e1   : > { %v8559_v40 = vld [vmem:[#allocation10 + $0xbd4] sm:$0xf]  ;;  %4579 = vmatpush.bf16.msra.mxu1 %v6655_v27  ;;  %v7103_v49 = vor.u32 %v8495_v19, %v7100_v28  ;;  %4554 = vmatpush.bf16.msrb.mxu3 %v6111_v43 }
 0x2e2   : > { %v7356_v41 = vld [vmem:[#allocation10 + $0xbf0] sm:$0xf0]  ;;  %4542 = vmatmul.bf16.vlgmr.msrb.gmra.mxu2 %v9361_v36 }
 0x2e3   : > { %v8623_v42 = vld [vmem:[#allocation10 + $0xdd4] sm:$0xf]  ;;  %v7359_v50 = vor.u32 %v8559_v40, %v7356_v41  ;;  %4567 = vmatpush.bf16.msra.mxu0 %v6367_v47  ;;  %4586 = vmatpush.bf16.msra.mxu2 %v7103_v49 }
 0x2e4   : > { %v7612_v44 = vld [vmem:[#allocation10 + $0xdf0] sm:$0xf0]  ;;  %4555 = vmatmul.bf16.vlgmr.msrb.gmra.mxu3 %v9363_v37 }
 0x2e5   : > { %v8687_v45 = vld [vmem:[#allocation10 + $0xfd4] sm:$0xf]  ;;  %v7615_v53 = vor.u32 %v8623_v42, %v7612_v44  ;;  %4580 = vmatpush.bf16.msra.mxu1 %v6623_v48  ;;  %4599 = vmatpush.bf16.msra.mxu3 %v7359_v50 }
 0x2e6   : > { %v7868_v46 = vld [vmem:[#allocation10 + $0xff0] sm:$0xf0]  ;;  %4568 = vmatmul.bf16.vlgmr.msra.gmra.mxu0 %v9365_v38 }
 0x2e7   : > { %v8487_v51 = vld [vmem:[#allocation10 + $0x994] sm:$0xf]  ;;  %v7871_v54 = vor.u32 %v8687_v45, %v7868_v46  ;;  %4612 = vmatpush.bf16.msrb.mxu0 %v7615_v53  ;;  %v9453_v46 = vld [vmem:[#allocation11] sm:$0xff] }
 0x2e8   : > { %v7068_v52 = vld [vmem:[#allocation10 + $0x9b0] sm:$0xf0]  ;;  %4581 = vmatmul.bf16.vlgmr.msra.gmra.mxu1 %v9367_v39  ;;  %v4001_v47 = vperm.slane %v9453_v46, 3 }
 0x2e9   : > { %v8551_v55 = vld [vmem:[#allocation10 + $0xb94] sm:$0xf]  ;;  %v7071_v63 = vor.u32 %v8487_v51, %v7068_v52  ;;  %4625 = vmatpush.bf16.msrb.mxu1 %v7871_v54  ;;  %v4335_v54 = vpop.f32.mrf.mxu2 }
 0x2ea   : > { %v7324_v56 = vld [vmem:[#allocation10 + $0xbb0] sm:$0xf0] }
 0x2eb   : > { %v8615_v57 = vld [vmem:[#allocation10 + $0xd94] sm:$0xf]  ;;  %v7327_v61 = vor.u32 %v8551_v55, %v7324_v56  ;;  %4587 = vmatpush.bf16.msra.mxu2 %v7071_v63  ;;  %v4348_v55 = vpop.f32.mrf.mxu3 }
 0x2ec   : > { %v7580_v59 = vld [vmem:[#allocation10 + $0xdb0] sm:$0xf0] }
 0x2ed   : > { %v8679_v58 = vld [vmem:[#allocation10 + $0xf94] sm:$0xf]  ;;  %v7583_v3 = vor.u32 %v8615_v57, %v7580_v59  ;;  %4600 = vmatpush.bf16.msra.mxu3 %v7327_v61 }
 0x2ee   : > { %v7836_v60 = vld [vmem:[#allocation10 + $0xfb0] sm:$0xf0] }
 0x2ef   : > { %v8479_v0 = vld [vmem:[#allocation10 + $0x954] sm:$0xf]  ;;  %v7839_v4 = vor.u32 %v8679_v58, %v7836_v60  ;;  %4613 = vmatpush.bf16.msrb.mxu0 %v7583_v3  ;;  %v4336_v58 = vadd.f32 %v4335_v54, %v4001_v47  ;;  %v4376_v3 = vpop.f32.mrf.mxu1  ;;  %v6594_v47 = vld [vmem:[#allocation10 + $0x5d8] sm:$0xf] }
 0x2f0   : > { %v7036_v2 = vld [vmem:[#allocation10 + $0x970] sm:$0xf0]  ;;  %v8428_v3 = vld [vmem:[#allocation10 + $0x7b4] sm:$0xf0] }
 0x2f1   : > { %v8543_v5 = vld [vmem:[#allocation10 + $0xb54] sm:$0xf]  ;;  %v7039_v9 = vor.u32 %v8479_v0, %v7036_v2  ;;  %4626 = vmatpush.bf16.msrb.mxu1 %v7839_v4  ;;  %v4349_v0 = vadd.f32 %v4348_v55, %v4336_v58  ;;  %v4363_v2 = vpop.f32.mrf.mxu0 }
 0x2f2   : > { %v7292_v62 = vld [vmem:[#allocation10 + $0xb70] sm:$0xf0]  ;;  %v6818_v2 = vld [vmem:[#allocation10 + $0x798] sm:$0xf] }
 0x2f3   : > { %v8607_v7 = vld [vmem:[#allocation10 + $0xd54] sm:$0xf]  ;;  %v7295_v6 = vor.u32 %v8543_v5, %v7292_v62  ;;  %4588 = vmatpush.bf16.msra.mxu2 %v7039_v9 }
 0x2f4   : > { %v7548_v16 = vld [vmem:[#allocation10 + $0xd70] sm:$0xf0] }
 0x2f5   : > { %v8671_v8 = vld [vmem:[#allocation10 + $0xf54] sm:$0xf]  ;;  %v7551_v14 = vor.u32 %v8607_v7, %v7548_v16  ;;  %4601 = vmatpush.bf16.msra.mxu3 %v7295_v6 }
 0x2f6   : > { %v7804_v21 = vld [vmem:[#allocation10 + $0xf70] sm:$0xf0] }
 0x2f7   : > { %v8471_v10 = vld [vmem:[#allocation10 + $0x914] sm:$0xf]  ;;  %v7807_v15 = vor.u32 %v8671_v8, %v7804_v21  ;;  %4614 = vmatpush.bf16.msrb.mxu0 %v7551_v14 }
 0x2f8   : > { %v7004_v12 = vld [vmem:[#allocation10 + $0x930] sm:$0xf0] }
 0x2f9   : > { %v8535_v17 = vld [vmem:[#allocation10 + $0xb14] sm:$0xf]  ;;  %v7007_v32 = vor.u32 %v8471_v10, %v7004_v12  ;;  %4627 = vmatpush.bf16.msrb.mxu1 %v7807_v15  ;;  %v4362_v10 = vadd.f32 %v4361_v22, %v4349_v0  ;;  %v4350_v22 = vpop.f32.mrf.mxu3  ;;  %v8364_v0 = vld [vmem:[#allocation10 + $0x5b4] sm:$0xf0] }
 0x2fa   : > { %v7260_v20 = vld [vmem:[#allocation10 + $0xb30] sm:$0xf0]  ;;  %v6754_v22 = vld [vmem:[#allocation10 + $0x718] sm:$0xf] }
 0x2fb   : > { %v8599_v24 = vld [vmem:[#allocation10 + $0xd14] sm:$0xf]  ;;  %v7263_v33 = vor.u32 %v8535_v17, %v7260_v20  ;;  %4589 = vmatpush.bf16.msra.mxu2 %v7007_v32  ;;  %v9457_v32 = vadd.f32 %v9451_v25, %v4362_v10  ;;  %v8356_v10 = vld [vmem:[#allocation10 + $0x574] sm:$0xf0] }
 0x2fc   : > { %v7516_v26 = vld [vmem:[#allocation10 + $0xd30] sm:$0xf0] }
 0x2fd   : > { %v8663_v27 = vld [vmem:[#allocation10 + $0xf14] sm:$0xf]  ;;  %v7519_v40 = vor.u32 %v8599_v24, %v7516_v26  ;;  %4602 = vmatpush.bf16.msra.mxu3 %v7263_v33 }
 0x2fe   : > { %v7772_v31 = vld [vmem:[#allocation10 + $0xf30] sm:$0xf0] }
 0x2ff   : > { %v8463_v35 = vld [vmem:[#allocation10 + $0x8d4] sm:$0xf]  ;;  %v7775_v41 = vor.u32 %v8663_v27, %v7772_v31  ;;  %4615 = vmatpush.bf16.msrb.mxu0 %v7519_v40 }
 0x300   : > { %v6972_v19 = vld [vmem:[#allocation10 + $0x8f0] sm:$0xf0] }
 0x301   : > { %v8527_v28 = vld [vmem:[#allocation10 + $0xad4] sm:$0xf]  ;;  %v6975_v48 = vor.u32 %v8463_v35, %v6972_v19  ;;  %4628 = vmatpush.bf16.msrb.mxu1 %v7775_v41  ;;  %v4337_v19 = vpop.f32.mrf.mxu2 }
 0x302   : > { %v7228_v42 = vld [vmem:[#allocation10 + $0xaf0] sm:$0xf0]  ;;  %v8348_v19 = vld [vmem:[#allocation10 + $0x534] sm:$0xf0] }
 0x303   : > { %v8591_v18 = vld [vmem:[#allocation10 + $0xcd4] sm:$0xf]  ;;  %v7231_v49 = vor.u32 %v8527_v28, %v7228_v42  ;;  %4590 = vmatpush.bf16.msra.mxu2 %v6975_v48 }
 0x304   : > { %v7484_v43 = vld [vmem:[#allocation10 + $0xcf0] sm:$0xf0] }
 0x305   : > { %v8655_v44 = vld [vmem:[#allocation10 + $0xed4] sm:$0xf]  ;;  %v7487_v52 = vor.u32 %v8591_v18, %v7484_v43  ;;  %4603 = vmatpush.bf16.msra.mxu3 %v7231_v49  ;;  %v6082_v18 = vld [vmem:[#allocation10 + $0x1d8] sm:$0xf] }
 0x306   : > { %v7740_v45 = vld [vmem:[#allocation10 + $0xef0] sm:$0xf0]  ;;  %v8244_v43 = vld [vmem:[#allocation10 + $0x1f4] sm:$0xf0] }
 0x307   : > { %v8455_v50 = vld [vmem:[#allocation10 + $0x894] sm:$0xf]  ;;  %v7743_v53 = vor.u32 %v8655_v44, %v7740_v45  ;;  %4616 = vmatpush.bf16.msrb.mxu0 %v7487_v52  ;;  %v6338_v44 = vld [vmem:[#allocation10 + $0x3d8] sm:$0xf]  ;;  %v6083_v54 = vor.u32 %v8244_v43, %v6082_v18 }
 0x308   : > { %v6940_v51 = vld [vmem:[#allocation10 + $0x8b0] sm:$0xf0]  ;;  %v8308_v45 = vld [vmem:[#allocation10 + $0x3f4] sm:$0xf0] }
 0x309   : > { %v8519_v56 = vld [vmem:[#allocation10 + $0xa94] sm:$0xf]  ;;  %v6943_v4 = vor.u32 %v8455_v50, %v6940_v51  ;;  %4629 = vmatpush.bf16.msrb.mxu1 %v7743_v53  ;;  %v8372_v49 = vld [vmem:[#allocation10 + $0x5f4] sm:$0xf0]  ;;  %v6339_v55 = vor.u32 %v8308_v45, %v6338_v44 }
 0x30a   : > { %v7196_v57 = vld [vmem:[#allocation10 + $0xab0] sm:$0xf0]  ;;  %v6850_v50 = vld [vmem:[#allocation10 + $0x7d8] sm:$0xf] }
 0x30b   : > { %v8583_v59 = vld [vmem:[#allocation10 + $0xc94] sm:$0xf]  ;;  %v7199_v5 = vor.u32 %v8519_v56, %v7196_v57  ;;  %4591 = vmatpush.bf16.msra.mxu2 %v6943_v4  ;;  %v8436_v51 = vld [vmem:[#allocation10 + $0x7f4] sm:$0xf0] }
 0x30c   : > { %v7452_v60 = vld [vmem:[#allocation10 + $0xcb0] sm:$0xf0]  ;;  %v6050_v56 = vld [vmem:[#allocation10 + $0x198] sm:$0xf]  ;;  %v6851_v58 = vor.u32 %v8436_v51, %v6850_v50 }
 0x30d   : > { %v8647_v63 = vld [vmem:[#allocation10 + $0xe94] sm:$0xf]  ;;  %v7455_v16 = vor.u32 %v8583_v59, %v7452_v60  ;;  %4604 = vmatpush.bf16.msra.mxu3 %v7199_v5  ;;  %v8236_v57 = vld [vmem:[#allocation10 + $0x1b4] sm:$0xf0]  ;;  %v6595_v59 = vor.u32 %v8372_v49, %v6594_v47 }
 0x30e   : > { %v7708_v61 = vld [vmem:[#allocation10 + $0xeb0] sm:$0xf0]  ;;  %v6306_v60 = vld [vmem:[#allocation10 + $0x398] sm:$0xf]  ;;  %v6051_v4 = vor.u32 %v8236_v57, %v6050_v56 }
 0x30f   : > { %v8447_v62 = vld [vmem:[#allocation10 + $0x854] sm:$0xf]  ;;  %v7711_v8 = vor.u32 %v8647_v63, %v7708_v61  ;;  %4617 = vmatpush.bf16.msrb.mxu0 %v7455_v16  ;;  %v8300_v63 = vld [vmem:[#allocation10 + $0x3b4] sm:$0xf0] }
 0x310   : > { %v6908_v7 = vld [vmem:[#allocation10 + $0x870] sm:$0xf0]  ;;  %v6562_v61 = vld [vmem:[#allocation10 + $0x598] sm:$0xf]  ;;  %v6307_v5 = vor.u32 %v8300_v63, %v6306_v60  ;;  %v4400_v60 = vpop.f32.mrf.mxu3 }
 0x311   : > { %v8511_v21 = vld [vmem:[#allocation10 + $0xa54] sm:$0xf]  ;;  %v6911_v20 = vor.u32 %v8447_v62, %v6908_v7  ;;  %4630 = vmatpush.bf16.msrb.mxu1 %v7711_v8  ;;  %v6018_v62 = vld [vmem:[#allocation10 + $0x158] sm:$0xf]  ;;  %v6563_v16 = vor.u32 %v8364_v0, %v6562_v61  ;;  %v6819_v8 = vor.u32 %v8428_v3, %v6818_v2 }
 0x312   : > { %v7164_v9 = vld [vmem:[#allocation10 + $0xa70] sm:$0xf0]  ;;  %v8228_v7 = vld [vmem:[#allocation10 + $0x174] sm:$0xf0] }
 0x313   : > { %v8575_v6 = vld [vmem:[#allocation10 + $0xc54] sm:$0xf]  ;;  %v7167_v24 = vor.u32 %v8511_v21, %v7164_v9  ;;  %4592 = vmatpush.bf16.msra.mxu2 %v6911_v20  ;;  %v6274_v21 = vld [vmem:[#allocation10 + $0x358] sm:$0xf] }
 0x314   : > { %v7420_v12 = vld [vmem:[#allocation10 + $0xc70] sm:$0xf0]  ;;  %v8292_v9 = vld [vmem:[#allocation10 + $0x374] sm:$0xf0] }
 0x315   : > { %v8639_v14 = vld [vmem:[#allocation10 + $0xe54] sm:$0xf]  ;;  %v7423_v33 = vor.u32 %v8575_v6, %v7420_v12  ;;  %4605 = vmatpush.bf16.msra.mxu3 %v7167_v24  ;;  %v6530_v6 = vld [vmem:[#allocation10 + $0x558] sm:$0xf] }
 0x316   : > { %v7676_v15 = vld [vmem:[#allocation10 + $0xe70] sm:$0xf0]  ;;  %v6786_v12 = vld [vmem:[#allocation10 + $0x758] sm:$0xf] }
 0x317   : > { %v8439_v17 = vld [vmem:[#allocation10 + $0x814] sm:$0xf]  ;;  %v7679_v35 = vor.u32 %v8639_v14, %v7676_v15  ;;  %4618 = vmatpush.bf16.msrb.mxu0 %v7423_v33  ;;  %v8420_v14 = vld [vmem:[#allocation10 + $0x774] sm:$0xf0]  ;;  %v6019_v15 = vor.u32 %v8228_v7, %v6018_v62 }
 0x318   : > { %v6876_v26 = vld [vmem:[#allocation10 + $0x830] sm:$0xf0]  ;;  %v5986_v20 = vld [vmem:[#allocation10 + $0x118] sm:$0xf] }
 0x319   : > { %v8503_v27 = vld [vmem:[#allocation10 + $0xa14] sm:$0xf]  ;;  %v6879_v48 = vor.u32 %v8439_v17, %v6876_v26  ;;  %4631 = vmatpush.bf16.msrb.mxu1 %v7679_v35  ;;  %v6275_v17 = vor.u32 %v8292_v9, %v6274_v21  ;;  %v8220_v24 = vld [vmem:[#allocation10 + $0x134] sm:$0xf0]  ;;  %v6531_v26 = vor.u32 %v8356_v10, %v6530_v6 }
 0x31a   : > { %v7132_v31 = vld [vmem:[#allocation10 + $0xa30] sm:$0xf0]  ;;  %v8284_v33 = vld [vmem:[#allocation10 + $0x334] sm:$0xf0] }
 0x31b   : > { %v8567_v28 = vld [vmem:[#allocation10 + $0xc14] sm:$0xf]  ;;  %v7135_v25 = vor.u32 %v8503_v27, %v7132_v31  ;;  %4593 = vmatpush.bf16.msra.mxu2 %v6879_v48  ;;  %v6787_v27 = vor.u32 %v8420_v14, %v6786_v12  ;;  %v6242_v31 = vld [vmem:[#allocation10 + $0x318] sm:$0xf] }
 0x31c   : > { %v7388_v40 = vld [vmem:[#allocation10 + $0xc30] sm:$0xf0]  ;;  %v6498_v35 = vld [vmem:[#allocation10 + $0x518] sm:$0xf]  ;;  %v6243_v18 = vor.u32 %v8284_v33, %v6242_v31 }
 0x31d   : > { %v8631_v41 = vld [vmem:[#allocation10 + $0xe14] sm:$0xf]  ;;  %v7391_v52 = vor.u32 %v8567_v28, %v7388_v40  ;;  %4606 = vmatpush.bf16.msra.mxu3 %v7135_v25  ;;  %v8412_v28 = vld [vmem:[#allocation10 + $0x734] sm:$0xf0]  ;;  %v4413_v40 = vpop.f32.mrf.mxu0  ;;  %v6499_v45 = vor.u32 %v8348_v19, %v6498_v35 }
 0x31e   : > { %v7644_v42 = vld [vmem:[#allocation10 + $0xe30] sm:$0xf0]  ;;  %4594 = vmatmul.bf16.vlgmr.msra.gmra.mxu2 %v9377_v29  ;;  %v5954_v43 = vld [vmem:[#allocation10 + $0xd8] sm:$0xf]  ;;  %v6755_v47 = vor.u32 %v8412_v28, %v6754_v22 }
 0x31f   : > { %v7647_v53 = vor.u32 %v8631_v41, %v7644_v42  ;;  %4619 = vmatpush.bf16.msrb.mxu0 %v7391_v52  ;;  %4638 = vmatpush.bf16.msrb.mxu2 %v6083_v54  ;;  %v4426_v41 = vpop.f32.mrf.mxu1  ;;  %v5987_v42 = vor.u32 %v8220_v24, %v5986_v20  ;;  %v8212_v44 = vld [vmem:[#allocation10 + $0xf4] sm:$0xf0] }
 0x320   : > { %4607 = vmatmul.bf16.vlgmr.msra.gmra.mxu3 %v9379_v30  ;;  %v6210_v48 = vld [vmem:[#allocation10 + $0x2d8] sm:$0xf] }
 0x321   : > { %4632 = vmatpush.bf16.msrb.mxu1 %v7647_v53  ;;  %4651 = vmatpush.bf16.msrb.mxu3 %v6339_v55  ;;  %v8276_v25 = vld [vmem:[#allocation10 + $0x2f4] sm:$0xf0]  ;;  %v5955_v53 = vor.u32 %v8212_v44, %v5954_v43  ;;  %v4402_v44 = vpop.f32.mrf.mxu3 }
 0x322   : > { %4620 = vmatmul.bf16.vlgmr.msrb.gmra.mxu0 %v9381_v34  ;;  %v6466_v49 = vld [vmem:[#allocation10 + $0x4d8] sm:$0xf]  ;;  %v6211_v54 = vor.u32 %v8276_v25, %v6210_v48 }
 0x323   : > { %4664 = vmatpush.bf16.msra.mxu0 %v6595_v59  ;;  %4639 = vmatpush.bf16.msrb.mxu2 %v6051_v4  ;;  %v8340_v50 = vld [vmem:[#allocation10 + $0x4f4] sm:$0xf0] }
 0x324   : > { %4633 = vmatmul.bf16.vlgmr.msrb.gmra.mxu1 %v9383_v23  ;;  %v6722_v51 = vld [vmem:[#allocation10 + $0x6d8] sm:$0xf]  ;;  %v6467_v57 = vor.u32 %v8340_v50, %v6466_v49 }
 0x325   : > { %4677 = vmatpush.bf16.msra.mxu1 %v6851_v58  ;;  %4652 = vmatpush.bf16.msrb.mxu3 %v6307_v5  ;;  %v8404_v52 = vld [vmem:[#allocation10 + $0x6f4] sm:$0xf0]  ;;  %v4387_v58 = vpop.f32.mrf.mxu2  ;;  %v4415_v7 = vpop.f32.mrf.mxu0 }
 0x326   : > { %v5922_v55 = vld [vmem:[#allocation10 + $0x98] sm:$0xf]  ;;  %v6723_v59 = vor.u32 %v8404_v52, %v6722_v51  ;;  %v4388_v2 = vadd.f32 %v4387_v58, %v9457_v32 }
 0x327   : > { %4665 = vmatpush.bf16.msra.mxu0 %v6563_v16  ;;  %4640 = vmatpush.bf16.msrb.mxu2 %v6019_v15  ;;  %v8204_v56 = vld [vmem:[#allocation10 + $0xb4] sm:$0xf0]  ;;  %v4428_v16 = vpop.f32.mrf.mxu1 }
 0x328   : > { %v6178_v63 = vld [vmem:[#allocation10 + $0x298] sm:$0xf]  ;;  %v4401_v62 = vadd.f32 %v4400_v60, %v4388_v2 }
 0x329   : > { %4678 = vmatpush.bf16.msra.mxu1 %v6819_v8  ;;  %4653 = vmatpush.bf16.msrb.mxu3 %v6275_v17  ;;  %v8268_v61 = vld [vmem:[#allocation10 + $0x2b4] sm:$0xf0]  ;;  %v5923_v8 = vor.u32 %v8204_v56, %v5922_v55 }
 0x32a   : > { %v6434_v0 = vld [vmem:[#allocation10 + $0x498] sm:$0xf]  ;;  %v6179_v21 = vor.u32 %v8268_v61, %v6178_v63  ;;  %v4414_v32 = vadd.f32 %v4413_v40, %v4401_v62 }
 0x32b   : > { %4666 = vmatpush.bf16.msra.mxu0 %v6531_v26  ;;  %4641 = vmatpush.bf16.msrb.mxu2 %v5987_v42  ;;  %v8332_v3 = vld [vmem:[#allocation10 + $0x4b4] sm:$0xf0] }
 0x32c   : > { %v6690_v4 = vld [vmem:[#allocation10 + $0x698] sm:$0xf]  ;;  %v6435_v10 = vor.u32 %v8332_v3, %v6434_v0  ;;  %v9464_v31 = vadd.f32 %v4426_v41, %v4414_v32 }
 0x32d   : > { %4679 = vmatpush.bf16.msra.mxu1 %v6787_v27  ;;  %4654 = vmatpush.bf16.msrb.mxu3 %v6243_v18  ;;  %v8396_v5 = vld [vmem:[#allocation10 + $0x6b4] sm:$0xf0]  ;;  %v4389_v43 = vpop.f32.mrf.mxu2 }
 0x32e   : > { %v5890_v9 = vld [vmem:[#allocation10 + $0x58] sm:$0xf]  ;;  %v6691_v12 = vor.u32 %v8396_v5, %v6690_v4 }
 0x32f   : > { %4667 = vmatpush.bf16.msra.mxu0 %v6499_v45  ;;  %4642 = vmatpush.bf16.msrb.mxu2 %v5955_v53  ;;  %v8196_v6 = vld [vmem:[#allocation10 + $0x74] sm:$0xf0] }
 0x330   : > { %v6146_v14 = vld [vmem:[#allocation10 + $0x258] sm:$0xf]  ;;  %v5891_v33 = vor.u32 %v8196_v6, %v5890_v9 }
 0x331   : > { %4680 = vmatpush.bf16.msra.mxu1 %v6755_v47  ;;  %4655 = vmatpush.bf16.msrb.mxu3 %v6211_v54  ;;  %v8260_v15 = vld [vmem:[#allocation10 + $0x274] sm:$0xf0] }
 0x332   : > { %v6402_v17 = vld [vmem:[#allocation10 + $0x458] sm:$0xf]  ;;  %v6147_v35 = vor.u32 %v8260_v15, %v6146_v14 }
 0x333   : > { %4668 = vmatpush.bf16.msra.mxu0 %v6467_v57  ;;  %v8324_v20 = vld [vmem:[#allocation10 + $0x474] sm:$0xf0]  ;;  %4643 = vmatpush.bf16.msrb.mxu2 %v5923_v8 }
 0x334   : > { %v6658_v24 = vld [vmem:[#allocation10 + $0x658] sm:$0xf]  ;;  %v6403_v42 = vor.u32 %v8324_v20, %v6402_v17 }
 0x335   : > { %4681 = vmatpush.bf16.msra.mxu1 %v6723_v59  ;;  %v8388_v26 = vld [vmem:[#allocation10 + $0x674] sm:$0xf0]  ;;  %4656 = vmatpush.bf16.msrb.mxu3 %v6179_v21 }
 0x336   : > { %v5858_v27 = vld [vmem:[#allocation10 + $0x18] sm:$0xf]  ;;  %v6659_v18 = vor.u32 %v8388_v26, %v6658_v24 }
 0x337   : > { %v8188_v19 = vld [vmem:[#allocation10 + $0x34] sm:$0xf0]  ;;  %4669 = vmatpush.bf16.msra.mxu0 %v6435_v10  ;;  %4644 = vmatpush.bf16.msrb.mxu2 %v5891_v33 }
 0x338   : > { %v6114_v22 = vld [vmem:[#allocation10 + $0x218] sm:$0xf]  ;;  %v5859_v52 = vor.u32 %v8188_v19, %v5858_v27 }
 0x339   : > { %v8252_v28 = vld [vmem:[#allocation10 + $0x234] sm:$0xf0]  ;;  %4682 = vmatpush.bf16.msra.mxu1 %v6691_v12  ;;  %4657 = vmatpush.bf16.msrb.mxu3 %v6147_v35 }
 0x33a   : > { %v6370_v40 = vld [vmem:[#allocation10 + $0x418] sm:$0xf]  ;;  %v6115_v53 = vor.u32 %v8252_v28, %v6114_v22 }
 0x33b   : > { %v8316_v45 = vld [vmem:[#allocation10 + $0x434] sm:$0xf0]  ;;  %4670 = vmatpush.bf16.msra.mxu0 %v6403_v42  ;;  %4645 = vmatpush.bf16.msrb.mxu2 %v5859_v52 }
 0x33c   : > { %v6626_v47 = vld [vmem:[#allocation10 + $0x618] sm:$0xf]  ;;  %v6371_v57 = vor.u32 %v8316_v45, %v6370_v40  ;;  %v4465_v45 = vpop.f32.mrf.mxu0 }
 0x33d   : > { %v8380_v48 = vld [vmem:[#allocation10 + $0x634] sm:$0xf0]  ;;  %4683 = vmatpush.bf16.msra.mxu1 %v6659_v18  ;;  %4658 = vmatpush.bf16.msrb.mxu3 %v6115_v53 }
 0x33e   : > { %v7106_v25 = vld [vmem:[#allocation10 + $0x9d8] sm:$0xf]  ;;  %v6627_v59 = vor.u32 %v8380_v48, %v6626_v47  ;;  %4646 = vmatmul.bf16.vlgmr.msrb.gmra.mxu2 %v9361_v36  ;;  %v9470_v47 = vpop.f32.mrf.mxu1 }
 0x33f   : > { %v8500_v41 = vld [vmem:[#allocation10 + $0x9f4] sm:$0xf0]  ;;  %4671 = vmatpush.bf16.msra.mxu0 %v6371_v57 }
 0x340   : > { %v7362_v49 = vld [vmem:[#allocation10 + $0xbd8] sm:$0xf]  ;;  %v7107_v58 = vor.u32 %v8500_v41, %v7106_v25  ;;  %4659 = vmatmul.bf16.vlgmr.msrb.gmra.mxu3 %v9363_v37 }
 0x341   : > { %v8564_v50 = vld [vmem:[#allocation10 + $0xbf4] sm:$0xf0]  ;;  %4684 = vmatpush.bf16.msra.mxu1 %v6627_v59  ;;  %v4002_v59 = vperm.slane %v9453_v46, 4 }
 0x342   : > { %v7618_v51 = vld [vmem:[#allocation10 + $0xdd8] sm:$0xf]  ;;  %v7363_v60 = vor.u32 %v8564_v50, %v7362_v49  ;;  %4690 = vmatpush.bf16.msra.mxu2 %v7107_v58  ;;  %4672 = vmatmul.bf16.vlgmr.msra.gmra.mxu0 %v9365_v38 }
 0x343   : > { %v8628_v54 = vld [vmem:[#allocation10 + $0xdf4] sm:$0xf0] }
 0x344   : > { %v7874_v55 = vld [vmem:[#allocation10 + $0xfd8] sm:$0xf]  ;;  %v7619_v0 = vor.u32 %v8628_v54, %v7618_v51  ;;  %4703 = vmatpush.bf16.msra.mxu3 %v7363_v60  ;;  %4685 = vmatmul.bf16.vlgmr.msra.gmra.mxu1 %v9367_v39 }
 0x345   : > { %v8692_v56 = vld [vmem:[#allocation10 + $0xff4] sm:$0xf0] }
 0x346   : > { %v7074_v63 = vld [vmem:[#allocation10 + $0x998] sm:$0xf]  ;;  %v7875_v2 = vor.u32 %v8692_v56, %v7874_v55  ;;  %4716 = vmatpush.bf16.msrb.mxu0 %v7619_v0 }
 0x347   : > { %v8492_v61 = vld [vmem:[#allocation10 + $0x9b4] sm:$0xf0] }
 0x348   : > { %v7330_v3 = vld [vmem:[#allocation10 + $0xb98] sm:$0xf]  ;;  %v7075_v8 = vor.u32 %v8492_v61, %v7074_v63  ;;  %4729 = vmatpush.bf16.msrb.mxu1 %v7875_v2 }
 0x349   : > { %v8556_v4 = vld [vmem:[#allocation10 + $0xbb4] sm:$0xf0] }
 0x34a   : > { %v7586_v5 = vld [vmem:[#allocation10 + $0xd98] sm:$0xf]  ;;  %v7331_v21 = vor.u32 %v8556_v4, %v7330_v3  ;;  %4691 = vmatpush.bf16.msra.mxu2 %v7075_v8  ;;  %v4439_v3 = vpop.f32.mrf.mxu2  ;;  %v4452_v4 = vpop.f32.mrf.mxu3 }
 0x34b   : > { %v8620_v62 = vld [vmem:[#allocation10 + $0xdb4] sm:$0xf0] }
 0x34c   : > { %v7842_v7 = vld [vmem:[#allocation10 + $0xf98] sm:$0xf]  ;;  %v7587_v10 = vor.u32 %v8620_v62, %v7586_v5  ;;  %4704 = vmatpush.bf16.msra.mxu3 %v7331_v21 }
 0x34d   : > { %v8684_v16 = vld [vmem:[#allocation10 + $0xfb4] sm:$0xf0] }
 0x34e   : > { %v7042_v9 = vld [vmem:[#allocation10 + $0x958] sm:$0xf]  ;;  %v7843_v12 = vor.u32 %v8684_v16, %v7842_v7  ;;  %4717 = vmatpush.bf16.msrb.mxu0 %v7587_v10  ;;  %v4440_v16 = vadd.f32 %v4439_v3, %v4002_v59  ;;  %v4480_v10 = vpop.f32.mrf.mxu1  ;;  %v8368_v59 = vld [vmem:[#allocation10 + $0x5dc] sm:$0xf] }
 0x34f   : > { %v8484_v6 = vld [vmem:[#allocation10 + $0x974] sm:$0xf0]  ;;  %v6820_v10 = vld [vmem:[#allocation10 + $0x7b8] sm:$0xf0] }
 0x350   : > { %v7298_v14 = vld [vmem:[#allocation10 + $0xb58] sm:$0xf]  ;;  %v7043_v26 = vor.u32 %v8484_v6, %v7042_v9  ;;  %4730 = vmatpush.bf16.msrb.mxu1 %v7843_v12  ;;  %v4453_v46 = vadd.f32 %v4452_v4, %v4440_v16  ;;  %v4467_v6 = vpop.f32.mrf.mxu0 }
 0x351   : > { %v8548_v15 = vld [vmem:[#allocation10 + $0xb74] sm:$0xf0]  ;;  %v8424_v6 = vld [vmem:[#allocation10 + $0x79c] sm:$0xf] }
 0x352   : > { %v7554_v17 = vld [vmem:[#allocation10 + $0xd58] sm:$0xf]  ;;  %v7299_v27 = vor.u32 %v8548_v15, %v7298_v14  ;;  %4692 = vmatpush.bf16.msra.mxu2 %v7043_v26 }
 0x353   : > { %v8612_v32 = vld [vmem:[#allocation10 + $0xd74] sm:$0xf0] }
 0x354   : > { %v7810_v20 = vld [vmem:[#allocation10 + $0xf58] sm:$0xf]  ;;  %v7555_v19 = vor.u32 %v8612_v32, %v7554_v17  ;;  %4705 = vmatpush.bf16.msra.mxu3 %v7299_v27 }
 0x355   : > { %v8676_v24 = vld [vmem:[#allocation10 + $0xf74] sm:$0xf0] }
 0x356   : > { %v7010_v33 = vld [vmem:[#allocation10 + $0x918] sm:$0xf]  ;;  %v7811_v22 = vor.u32 %v8676_v24, %v7810_v20  ;;  %4718 = vmatpush.bf16.msrb.mxu0 %v7555_v19 }
 0x357   : > { %v8476_v35 = vld [vmem:[#allocation10 + $0x934] sm:$0xf0] }
 0x358   : > { %v7266_v28 = vld [vmem:[#allocation10 + $0xb18] sm:$0xf]  ;;  %v7011_v48 = vor.u32 %v8476_v35, %v7010_v33  ;;  %4731 = vmatpush.bf16.msrb.mxu1 %v7811_v22  ;;  %v4466_v33 = vadd.f32 %v4465_v45, %v4453_v46  ;;  %v4454_v45 = vpop.f32.mrf.mxu3  ;;  %v6564_v46 = vld [vmem:[#allocation10 + $0x5b8] sm:$0xf0] }
 0x359   : > { %v8540_v42 = vld [vmem:[#allocation10 + $0xb34] sm:$0xf0]  ;;  %v8408_v45 = vld [vmem:[#allocation10 + $0x71c] sm:$0xf] }
 0x35a   : > { %v7522_v18 = vld [vmem:[#allocation10 + $0xd18] sm:$0xf]  ;;  %v7267_v25 = vor.u32 %v8540_v42, %v7266_v28  ;;  %4693 = vmatpush.bf16.msra.mxu2 %v7011_v48  ;;  %v9474_v48 = vadd.f32 %v9470_v47, %v4466_v33  ;;  %v6532_v33 = vld [vmem:[#allocation10 + $0x578] sm:$0xf0] }
 0x35b   : > { %v8604_v43 = vld [vmem:[#allocation10 + $0xd34] sm:$0xf0] }
 0x35c   : > { %v7778_v44 = vld [vmem:[#allocation10 + $0xf18] sm:$0xf]  ;;  %v7523_v51 = vor.u32 %v8604_v43, %v7522_v18  ;;  %4706 = vmatpush.bf16.msra.mxu3 %v7267_v25 }
 0x35d   : > { %v8668_v40 = vld [vmem:[#allocation10 + $0xf34] sm:$0xf0] }
 0x35e   : > { %v6978_v41 = vld [vmem:[#allocation10 + $0x8d8] sm:$0xf]  ;;  %v7779_v52 = vor.u32 %v8668_v40, %v7778_v44  ;;  %4719 = vmatpush.bf16.msrb.mxu0 %v7523_v51 }
 0x35f   : > { %v8468_v49 = vld [vmem:[#allocation10 + $0x8f4] sm:$0xf0] }
 0x360   : > { %v7234_v50 = vld [vmem:[#allocation10 + $0xad8] sm:$0xf]  ;;  %v6979_v58 = vor.u32 %v8468_v49, %v6978_v41  ;;  %4732 = vmatpush.bf16.msrb.mxu1 %v7779_v52  ;;  %v4441_v49 = vpop.f32.mrf.mxu2 }
 0x361   : > { %v8532_v53 = vld [vmem:[#allocation10 + $0xaf4] sm:$0xf0]  ;;  %v6500_v49 = vld [vmem:[#allocation10 + $0x538] sm:$0xf0] }
 0x362   : > { %v7490_v54 = vld [vmem:[#allocation10 + $0xcd8] sm:$0xf]  ;;  %v7235_v60 = vor.u32 %v8532_v53, %v7234_v50  ;;  %4694 = vmatpush.bf16.msra.mxu2 %v6979_v58 }
 0x363   : > { %v8596_v55 = vld [vmem:[#allocation10 + $0xcf4] sm:$0xf0] }
 0x364   : > { %v7746_v56 = vld [vmem:[#allocation10 + $0xed8] sm:$0xf]  ;;  %v7491_v0 = vor.u32 %v8596_v55, %v7490_v54  ;;  %4707 = vmatpush.bf16.msra.mxu3 %v7235_v60  ;;  %v8240_v54 = vld [vmem:[#allocation10 + $0x1dc] sm:$0xf] }
 0x365   : > { %v8660_v57 = vld [vmem:[#allocation10 + $0xef4] sm:$0xf0]  ;;  %v6084_v55 = vld [vmem:[#allocation10 + $0x1f8] sm:$0xf0] }
 0x366   : > { %v6946_v63 = vld [vmem:[#allocation10 + $0x898] sm:$0xf]  ;;  %v7747_v2 = vor.u32 %v8660_v57, %v7746_v56  ;;  %4720 = vmatpush.bf16.msrb.mxu0 %v7491_v0  ;;  %v8304_v56 = vld [vmem:[#allocation10 + $0x3dc] sm:$0xf]  ;;  %v6087_v3 = vor.u32 %v8240_v54, %v6084_v55 }
 0x367   : > { %v8460_v61 = vld [vmem:[#allocation10 + $0x8b4] sm:$0xf0]  ;;  %v6340_v57 = vld [vmem:[#allocation10 + $0x3f8] sm:$0xf0] }
 0x368   : > { %v7202_v5 = vld [vmem:[#allocation10 + $0xa98] sm:$0xf]  ;;  %v6947_v12 = vor.u32 %v8460_v61, %v6946_v63  ;;  %4733 = vmatpush.bf16.msrb.mxu1 %v7747_v2  ;;  %v6596_v60 = vld [vmem:[#allocation10 + $0x5f8] sm:$0xf0]  ;;  %v6343_v4 = vor.u32 %v8304_v56, %v6340_v57 }
 0x369   : > { %v8524_v62 = vld [vmem:[#allocation10 + $0xab4] sm:$0xf0]  ;;  %v8432_v63 = vld [vmem:[#allocation10 + $0x7dc] sm:$0xf] }
 0x36a   : > { %v7458_v7 = vld [vmem:[#allocation10 + $0xc98] sm:$0xf]  ;;  %v7203_v14 = vor.u32 %v8524_v62, %v7202_v5  ;;  %4695 = vmatpush.bf16.msra.mxu2 %v6947_v12  ;;  %v6852_v61 = vld [vmem:[#allocation10 + $0x7f8] sm:$0xf0] }
 0x36b   : > { %v8588_v8 = vld [vmem:[#allocation10 + $0xcb4] sm:$0xf0]  ;;  %v8232_v5 = vld [vmem:[#allocation10 + $0x19c] sm:$0xf]  ;;  %v6855_v16 = vor.u32 %v8432_v63, %v6852_v61 }
 0x36c   : > { %v7714_v21 = vld [vmem:[#allocation10 + $0xe98] sm:$0xf]  ;;  %v7459_v32 = vor.u32 %v8588_v8, %v7458_v7  ;;  %4708 = vmatpush.bf16.msra.mxu3 %v7203_v14  ;;  %v6052_v62 = vld [vmem:[#allocation10 + $0x1b8] sm:$0xf0]  ;;  %v6599_v7 = vor.u32 %v8368_v59, %v6596_v60 }
 0x36d   : > { %v8652_v9 = vld [vmem:[#allocation10 + $0xeb4] sm:$0xf0]  ;;  %v8296_v8 = vld [vmem:[#allocation10 + $0x39c] sm:$0xf]  ;;  %v6055_v12 = vor.u32 %v8232_v5, %v6052_v62 }
 0x36e   : > { %v6914_v15 = vld [vmem:[#allocation10 + $0x858] sm:$0xf]  ;;  %v7715_v20 = vor.u32 %v8652_v9, %v7714_v21  ;;  %4721 = vmatpush.bf16.msrb.mxu0 %v7459_v32  ;;  %v6308_v21 = vld [vmem:[#allocation10 + $0x3b8] sm:$0xf0] }
 0x36f   : > { %v8452_v17 = vld [vmem:[#allocation10 + $0x874] sm:$0xf0]  ;;  %v8360_v9 = vld [vmem:[#allocation10 + $0x59c] sm:$0xf]  ;;  %v6311_v14 = vor.u32 %v8296_v8, %v6308_v21  ;;  %v4504_v8 = vpop.f32.mrf.mxu3 }
 0x370   : > { %v7170_v24 = vld [vmem:[#allocation10 + $0xa58] sm:$0xf]  ;;  %v6915_v42 = vor.u32 %v8452_v17, %v6914_v15  ;;  %4734 = vmatpush.bf16.msrb.mxu1 %v7715_v20  ;;  %v8224_v15 = vld [vmem:[#allocation10 + $0x15c] sm:$0xf]  ;;  %v6567_v32 = vor.u32 %v8360_v9, %v6564_v46  ;;  %v6823_v20 = vor.u32 %v8424_v6, %v6820_v10 }
 0x371   : > { %v8516_v26 = vld [vmem:[#allocation10 + $0xa74] sm:$0xf0]  ;;  %v6020_v17 = vld [vmem:[#allocation10 + $0x178] sm:$0xf0] }
 0x372   : > { %v7426_v27 = vld [vmem:[#allocation10 + $0xc58] sm:$0xf]  ;;  %v7171_v18 = vor.u32 %v8516_v26, %v7170_v24  ;;  %4696 = vmatpush.bf16.msra.mxu2 %v6915_v42  ;;  %v8288_v24 = vld [vmem:[#allocation10 + $0x35c] sm:$0xf] }
 0x373   : > { %v8580_v35 = vld [vmem:[#allocation10 + $0xc74] sm:$0xf0]  ;;  %v6276_v26 = vld [vmem:[#allocation10 + $0x378] sm:$0xf0] }
 0x374   : > { %v7682_v19 = vld [vmem:[#allocation10 + $0xe58] sm:$0xf]  ;;  %v7427_v25 = vor.u32 %v8580_v35, %v7426_v27  ;;  %4709 = vmatpush.bf16.msra.mxu3 %v7171_v18  ;;  %v8352_v27 = vld [vmem:[#allocation10 + $0x55c] sm:$0xf] }
 0x375   : > { %v8644_v22 = vld [vmem:[#allocation10 + $0xe74] sm:$0xf0]  ;;  %v8416_v35 = vld [vmem:[#allocation10 + $0x75c] sm:$0xf] }
 0x376   : > { %v6882_v28 = vld [vmem:[#allocation10 + $0x818] sm:$0xf]  ;;  %v7683_v41 = vor.u32 %v8644_v22, %v7682_v19  ;;  %4722 = vmatpush.bf16.msrb.mxu0 %v7427_v25  ;;  %v6788_v19 = vld [vmem:[#allocation10 + $0x778] sm:$0xf0]  ;;  %v6023_v22 = vor.u32 %v8224_v15, %v6020_v17 }
 0x377   : > { %v8444_v43 = vld [vmem:[#allocation10 + $0x834] sm:$0xf0]  ;;  %v8216_v42 = vld [vmem:[#allocation10 + $0x11c] sm:$0xf] }
 0x378   : > { %v7138_v44 = vld [vmem:[#allocation10 + $0xa18] sm:$0xf]  ;;  %v6883_v58 = vor.u32 %v8444_v43, %v6882_v28  ;;  %4735 = vmatpush.bf16.msrb.mxu1 %v7683_v41  ;;  %v6279_v28 = vor.u32 %v8288_v24, %v6276_v26  ;;  %v5988_v18 = vld [vmem:[#allocation10 + $0x138] sm:$0xf0]  ;;  %v6535_v43 = vor.u32 %v8352_v27, %v6532_v33 }
 0x379   : > { %v8508_v40 = vld [vmem:[#allocation10 + $0xa34] sm:$0xf0]  ;;  %v6244_v25 = vld [vmem:[#allocation10 + $0x338] sm:$0xf0] }
 0x37a   : > { %v7394_v50 = vld [vmem:[#allocation10 + $0xc18] sm:$0xf]  ;;  %v7139_v47 = vor.u32 %v8508_v40, %v7138_v44  ;;  %4697 = vmatpush.bf16.msra.mxu2 %v6883_v58  ;;  %v6791_v44 = vor.u32 %v8416_v35, %v6788_v19  ;;  %v8280_v40 = vld [vmem:[#allocation10 + $0x31c] sm:$0xf] }
 0x37b   : > { %v8572_v51 = vld [vmem:[#allocation10 + $0xc34] sm:$0xf0]  ;;  %v8344_v41 = vld [vmem:[#allocation10 + $0x51c] sm:$0xf]  ;;  %v6247_v54 = vor.u32 %v8280_v40, %v6244_v25 }
 0x37c   : > { %v7650_v52 = vld [vmem:[#allocation10 + $0xe18] sm:$0xf]  ;;  %v7395_v0 = vor.u32 %v8572_v51, %v7394_v50  ;;  %4710 = vmatpush.bf16.msra.mxu3 %v7139_v47  ;;  %v6756_v50 = vld [vmem:[#allocation10 + $0x738] sm:$0xf0]  ;;  %v4517_v51 = vpop.f32.mrf.mxu0  ;;  %v6503_v57 = vor.u32 %v8344_v41, %v6500_v49 }
 0x37d   : > { %v8636_v53 = vld [vmem:[#allocation10 + $0xe34] sm:$0xf0]  ;;  %4698 = vmatmul.bf16.vlgmr.msra.gmra.mxu2 %v9377_v29  ;;  %v8208_v55 = vld [vmem:[#allocation10 + $0xdc] sm:$0xf]  ;;  %v6759_v59 = vor.u32 %v8408_v45, %v6756_v50 }
 0x37e   : > { %v7651_v2 = vor.u32 %v8636_v53, %v7650_v52  ;;  %4723 = vmatpush.bf16.msrb.mxu0 %v7395_v0  ;;  %4742 = vmatpush.bf16.msrb.mxu2 %v6087_v3  ;;  %v4530_v52 = vpop.f32.mrf.mxu1  ;;  %v5991_v53 = vor.u32 %v8216_v42, %v5988_v18  ;;  %v5956_v56 = vld [vmem:[#allocation10 + $0xf8] sm:$0xf0] }
 0x37f   : > { %4711 = vmatmul.bf16.vlgmr.msra.gmra.mxu3 %v9379_v30  ;;  %v8272_v58 = vld [vmem:[#allocation10 + $0x2dc] sm:$0xf] }
 0x380   : > { %4736 = vmatpush.bf16.msrb.mxu1 %v7651_v2  ;;  %4755 = vmatpush.bf16.msrb.mxu3 %v6343_v4  ;;  %v6212_v47 = vld [vmem:[#allocation10 + $0x2f8] sm:$0xf0]  ;;  %v5959_v2 = vor.u32 %v8208_v55, %v5956_v56  ;;  %v4506_v56 = vpop.f32.mrf.mxu3 }
 0x381   : > { %4724 = vmatmul.bf16.vlgmr.msrb.gmra.mxu0 %v9381_v34  ;;  %v8336_v60 = vld [vmem:[#allocation10 + $0x4dc] sm:$0xf]  ;;  %v6215_v3 = vor.u32 %v8272_v58, %v6212_v47 }
 0x382   : > { %4768 = vmatpush.bf16.msra.mxu0 %v6599_v7  ;;  %4743 = vmatpush.bf16.msrb.mxu2 %v6055_v12  ;;  %v6468_v63 = vld [vmem:[#allocation10 + $0x4f8] sm:$0xf0] }
 0x383   : > { %4737 = vmatmul.bf16.vlgmr.msrb.gmra.mxu1 %v9383_v23  ;;  %v8400_v61 = vld [vmem:[#allocation10 + $0x6dc] sm:$0xf]  ;;  %v6471_v62 = vor.u32 %v8336_v60, %v6468_v63 }
 0x384   : > { %4781 = vmatpush.bf16.msra.mxu1 %v6855_v16  ;;  %4756 = vmatpush.bf16.msrb.mxu3 %v6311_v14  ;;  %v6724_v0 = vld [vmem:[#allocation10 + $0x6f8] sm:$0xf0]  ;;  %v4491_v16 = vpop.f32.mrf.mxu2  ;;  %v4519_v17 = vpop.f32.mrf.mxu0 }
 0x385   : > { %v8200_v4 = vld [vmem:[#allocation10 + $0x9c] sm:$0xf]  ;;  %v6727_v7 = vor.u32 %v8400_v61, %v6724_v0  ;;  %v4492_v6 = vadd.f32 %v4491_v16, %v9474_v48 }
 0x386   : > { %4769 = vmatpush.bf16.msra.mxu0 %v6567_v32  ;;  %4744 = vmatpush.bf16.msrb.mxu2 %v6023_v22  ;;  %v5924_v5 = vld [vmem:[#allocation10 + $0xb8] sm:$0xf0]  ;;  %v4532_v32 = vpop.f32.mrf.mxu1 }
 0x387   : > { %v8264_v21 = vld [vmem:[#allocation10 + $0x29c] sm:$0xf]  ;;  %v4505_v15 = vadd.f32 %v4504_v8, %v4492_v6 }
 0x388   : > { %4782 = vmatpush.bf16.msra.mxu1 %v6823_v20  ;;  %4757 = vmatpush.bf16.msrb.mxu3 %v6279_v28  ;;  %v6180_v9 = vld [vmem:[#allocation10 + $0x2b8] sm:$0xf0]  ;;  %v5927_v20 = vor.u32 %v8200_v4, %v5924_v5 }
 0x389   : > { %v8328_v46 = vld [vmem:[#allocation10 + $0x49c] sm:$0xf]  ;;  %v6183_v24 = vor.u32 %v8264_v21, %v6180_v9  ;;  %v4518_v48 = vadd.f32 %v4517_v51, %v4505_v15 }
 0x38a   : > { %4770 = vmatpush.bf16.msra.mxu0 %v6535_v43  ;;  %4745 = vmatpush.bf16.msrb.mxu2 %v5991_v53  ;;  %v6436_v10 = vld [vmem:[#allocation10 + $0x4b8] sm:$0xf0] }
 0x38b   : > { %v8392_v12 = vld [vmem:[#allocation10 + $0x69c] sm:$0xf]  ;;  %v6439_v33 = vor.u32 %v8328_v46, %v6436_v10  ;;  %v9481_v40 = vadd.f32 %v4530_v52, %v4518_v48 }
 0x38c   : > { %4783 = vmatpush.bf16.msra.mxu1 %v6791_v44  ;;  %4758 = vmatpush.bf16.msrb.mxu3 %v6247_v54  ;;  %v6692_v14 = vld [vmem:[#allocation10 + $0x6b8] sm:$0xf0]  ;;  %v4493_v55 = vpop.f32.mrf.mxu2 }
 0x38d   : > { %v8192_v26 = vld [vmem:[#allocation10 + $0x5c] sm:$0xf]  ;;  %v6695_v35 = vor.u32 %v8392_v12, %v6692_v14 }
 0x38e   : > { %4771 = vmatpush.bf16.msra.mxu0 %v6503_v57  ;;  %4746 = vmatpush.bf16.msrb.mxu2 %v5959_v2  ;;  %v5892_v27 = vld [vmem:[#allocation10 + $0x78] sm:$0xf0] }
 0x38f   : > { %v8256_v19 = vld [vmem:[#allocation10 + $0x25c] sm:$0xf]  ;;  %v5895_v25 = vor.u32 %v8192_v26, %v5892_v27 }
 0x390   : > { %4784 = vmatpush.bf16.msra.mxu1 %v6759_v59  ;;  %4759 = vmatpush.bf16.msrb.mxu3 %v6215_v3  ;;  %v6148_v22 = vld [vmem:[#allocation10 + $0x278] sm:$0xf0] }
 0x391   : > { %v8320_v28 = vld [vmem:[#allocation10 + $0x45c] sm:$0xf]  ;;  %v6151_v41 = vor.u32 %v8256_v19, %v6148_v22 }
 0x392   : > { %4772 = vmatpush.bf16.msra.mxu0 %v6471_v62  ;;  %v6404_v42 = vld [vmem:[#allocation10 + $0x478] sm:$0xf0]  ;;  %4747 = vmatpush.bf16.msrb.mxu2 %v5927_v20 }
 0x393   : > { %v8384_v18 = vld [vmem:[#allocation10 + $0x65c] sm:$0xf]  ;;  %v6407_v53 = vor.u32 %v8320_v28, %v6404_v42 }
 0x394   : > { %4785 = vmatpush.bf16.msra.mxu1 %v6727_v7  ;;  %v6660_v43 = vld [vmem:[#allocation10 + $0x678] sm:$0xf0]  ;;  %4760 = vmatpush.bf16.msrb.mxu3 %v6183_v24 }
 0x395   : > { %v8184_v44 = vld [vmem:[#allocation10 + $0x1c] sm:$0xf]  ;;  %v6663_v54 = vor.u32 %v8384_v18, %v6660_v43 }
 0x396   : > { %v5860_v49 = vld [vmem:[#allocation10 + $0x38] sm:$0xf0]  ;;  %4773 = vmatpush.bf16.msra.mxu0 %v6439_v33  ;;  %4748 = vmatpush.bf16.msrb.mxu2 %v5895_v25 }
 0x397   : > { %v8248_v45 = vld [vmem:[#allocation10 + $0x21c] sm:$0xf]  ;;  %v5863_v0 = vor.u32 %v8184_v44, %v5860_v49 }
 0x398   : > { %v6116_v50 = vld [vmem:[#allocation10 + $0x238] sm:$0xf0]  ;;  %4786 = vmatpush.bf16.msra.mxu1 %v6695_v35  ;;  %4761 = vmatpush.bf16.msrb.mxu3 %v6151_v41 }
 0x399   : > { %v8312_v51 = vld [vmem:[#allocation10 + $0x41c] sm:$0xf]  ;;  %v6119_v2 = vor.u32 %v8248_v45, %v6116_v50 }
 0x39a   : > { %v6372_v57 = vld [vmem:[#allocation10 + $0x438] sm:$0xf0]  ;;  %4774 = vmatpush.bf16.msra.mxu0 %v6407_v53  ;;  %4749 = vmatpush.bf16.msrb.mxu2 %v5863_v0 }
 0x39b   : > { %v8376_v59 = vld [vmem:[#allocation10 + $0x61c] sm:$0xf]  ;;  %v6375_v62 = vor.u32 %v8312_v51, %v6372_v57 }
 0x39c   : > { %v6628_v58 = vld [vmem:[#allocation10 + $0x638] sm:$0xf0]  ;;  %4787 = vmatpush.bf16.msra.mxu1 %v6663_v54  ;;  %4762 = vmatpush.bf16.msrb.mxu3 %v6119_v2 }
 0x39d   : > { %v8496_v47 = vld [vmem:[#allocation10 + $0x9dc] sm:$0xf]  ;;  %v6631_v7 = vor.u32 %v8376_v59, %v6628_v58  ;;  %4750 = vmatmul.bf16.vlgmr.msrb.gmra.mxu2 %v9361_v36 }
 0x39e   : > { %v7108_v52 = vld [vmem:[#allocation10 + $0x9f8] sm:$0xf0]  ;;  %4775 = vmatpush.bf16.msra.mxu0 %v6375_v62 }
 0x39f   : > { %v8560_v60 = vld [vmem:[#allocation10 + $0xbdc] sm:$0xf]  ;;  %v7111_v16 = vor.u32 %v8496_v47, %v7108_v52  ;;  %4763 = vmatmul.bf16.vlgmr.msrb.gmra.mxu3 %v9363_v37 }
 0x3a0   : > { %v7364_v63 = vld [vmem:[#allocation10 + $0xbf8] sm:$0xf0]  ;;  %4788 = vmatpush.bf16.msra.mxu1 %v6631_v7 }
 0x3a1   : > { %v8624_v61 = vld [vmem:[#allocation10 + $0xddc] sm:$0xf]  ;;  %v7367_v8 = vor.u32 %v8560_v60, %v7364_v63  ;;  %4794 = vmatpush.bf16.msra.mxu2 %v7111_v16  ;;  %4776 = vmatmul.bf16.vlgmr.msra.gmra.mxu0 %v9365_v38  ;;  %v4569_v38 = vpop.f32.mrf.mxu0 }
 0x3a2   : > { %v7620_v3 = vld [vmem:[#allocation10 + $0xdf8] sm:$0xf0] }
 0x3a3   : > { %v8688_v4 = vld [vmem:[#allocation10 + $0xfdc] sm:$0xf]  ;;  %v7623_v46 = vor.u32 %v8624_v61, %v7620_v3  ;;  %4807 = vmatpush.bf16.msra.mxu3 %v7367_v8  ;;  %4789 = vmatmul.bf16.vlgmr.msra.gmra.mxu1 %v9367_v39  ;;  %v4582_v39 = vpop.f32.mrf.mxu1  ;;  %v9487_v3 = vld [vmem:[#allocation11] sm:$0xff] }
 0x3a4   : > { %v7876_v5 = vld [vmem:[#allocation10 + $0xff8] sm:$0xf0] }
 0x3a5   : > { %v8488_v21 = vld [vmem:[#allocation10 + $0x99c] sm:$0xf]  ;;  %v7879_v6 = vor.u32 %v8688_v4, %v7876_v5  ;;  %4820 = vmatpush.bf16.msrb.mxu0 %v7623_v46  ;;  %v4003_v4 = vperm.slane %v9487_v3, 5  ;;  %v4556_v46 = vpop.f32.mrf.mxu3 }
 0x3a6   : > { %v7076_v9 = vld [vmem:[#allocation10 + $0x9b8] sm:$0xf0] }
 0x3a7   : > { %v8552_v10 = vld [vmem:[#allocation10 + $0xb9c] sm:$0xf]  ;;  %v7079_v20 = vor.u32 %v8488_v21, %v7076_v9  ;;  %4833 = vmatpush.bf16.msrb.mxu1 %v7879_v6  ;;  %v4543_v9 = vpop.f32.mrf.mxu2 }
 0x3a8   : > { %v7332_v12 = vld [vmem:[#allocation10 + $0xbb8] sm:$0xf0] }
 0x3a9   : > { %v8616_v14 = vld [vmem:[#allocation10 + $0xd9c] sm:$0xf]  ;;  %v7335_v24 = vor.u32 %v8552_v10, %v7332_v12  ;;  %4795 = vmatpush.bf16.msra.mxu2 %v7079_v20 }
 0x3aa   : > { %v7588_v15 = vld [vmem:[#allocation10 + $0xdb8] sm:$0xf0] }
 0x3ab   : > { %v8680_v17 = vld [vmem:[#allocation10 + $0xf9c] sm:$0xf]  ;;  %v7591_v33 = vor.u32 %v8616_v14, %v7588_v15  ;;  %4808 = vmatpush.bf16.msra.mxu3 %v7335_v24  ;;  %v4544_v14 = vadd.f32 %v4543_v9, %v4003_v4  ;;  %v4571_v24 = vpop.f32.mrf.mxu0  ;;  %v8724_v4 = vld [vmem:[%s9749_s7 + $0xf8] sm:$0xff]  ;;  %v8697_v9 = vld [vmem:[%s9749_s7 + $0x20] sm:$0xff] }
 0x3ac   : > { %v7844_v32 = vld [vmem:[#allocation10 + $0xfb8] sm:$0xf0] }
 0x3ad   : > { %v8480_v26 = vld [vmem:[#allocation10 + $0x95c] sm:$0xf]  ;;  %v7847_v35 = vor.u32 %v8680_v17, %v7844_v32  ;;  %4821 = vmatpush.bf16.msrb.mxu0 %v7591_v33  ;;  %v4557_v20 = vadd.f32 %v4556_v46, %v4544_v14  ;;  %v8705_v46 = vld [vmem:[%s9749_s7 + $0x60] sm:$0xff]  ;;  %v8704_v14 = vld [vmem:[%s9749_s7 + $0x58] sm:$0xff] }
 0x3ae   : > { %v7044_v27 = vld [vmem:[#allocation10 + $0x978] sm:$0xf0] }
 0x3af   : > { %v8544_v19 = vld [vmem:[#allocation10 + $0xb5c] sm:$0xf]  ;;  %v7047_v43 = vor.u32 %v8480_v26, %v7044_v27  ;;  %4834 = vmatpush.bf16.msrb.mxu1 %v7847_v35  ;;  %v4584_v26 = vpop.f32.mrf.mxu1 }
 0x3b0   : > { %v7300_v22 = vld [vmem:[#allocation10 + $0xb78] sm:$0xf0] }
 0x3b1   : > { %v8608_v28 = vld [vmem:[#allocation10 + $0xd5c] sm:$0xf]  ;;  %v7303_v44 = vor.u32 %v8544_v19, %v7300_v22  ;;  %4796 = vmatpush.bf16.msra.mxu2 %v7047_v43  ;;  %v4570_v43 = vadd.f32 %v4569_v38, %v4557_v20 }
 0x3b2   : > { %v7556_v48 = vld [vmem:[#allocation10 + $0xd78] sm:$0xf0] }
 0x3b3   : > { %v8672_v42 = vld [vmem:[#allocation10 + $0xf5c] sm:$0xf]  ;;  %v7559_v49 = vor.u32 %v8608_v28, %v7556_v48  ;;  %4809 = vmatpush.bf16.msra.mxu3 %v7303_v44 }
 0x3b4   : > { %v7812_v18 = vld [vmem:[#allocation10 + $0xf78] sm:$0xf0] }
 0x3b5   : > { %v8472_v25 = vld [vmem:[#allocation10 + $0x91c] sm:$0xf]  ;;  %v7815_v45 = vor.u32 %v8672_v42, %v7812_v18  ;;  %4822 = vmatpush.bf16.msrb.mxu0 %v7559_v49 }
 0x3b6   : > { %v7012_v41 = vld [vmem:[#allocation10 + $0x938] sm:$0xf0] }
 0x3b7   : > { %v8536_v36 = vld [vmem:[#allocation10 + $0xb1c] sm:$0xf]  ;;  %v7015_v56 = vor.u32 %v8472_v25, %v7012_v41  ;;  %4835 = vmatpush.bf16.msrb.mxu1 %v7815_v45 }
 0x3b8   : > { %v7268_v50 = vld [vmem:[#allocation10 + $0xb38] sm:$0xf0] }
 0x3b9   : > { %v8600_v37 = vld [vmem:[#allocation10 + $0xd1c] sm:$0xf]  ;;  %v7271_v51 = vor.u32 %v8536_v36, %v7268_v50  ;;  %4797 = vmatpush.bf16.msra.mxu2 %v7015_v56  ;;  %v4558_v56 = vpop.f32.mrf.mxu3 }
 0x3ba   : > { %v7524_v53 = vld [vmem:[#allocation10 + $0xd38] sm:$0xf0] }
 0x3bb   : > { %v8664_v54 = vld [vmem:[#allocation10 + $0xf1c] sm:$0xf]  ;;  %v7527_v47 = vor.u32 %v8600_v37, %v7524_v53  ;;  %4810 = vmatpush.bf16.msra.mxu3 %v7271_v51  ;;  %v9490_v37 = vadd.f32 %v4582_v39, %v4570_v43 }
 0x3bc   : > { %v7780_v55 = vld [vmem:[#allocation10 + $0xf38] sm:$0xf0] }
 0x3bd   : > { %v8464_v57 = vld [vmem:[#allocation10 + $0x8dc] sm:$0xf]  ;;  %v7783_v52 = vor.u32 %v8664_v54, %v7780_v55  ;;  %4823 = vmatpush.bf16.msrb.mxu0 %v7527_v47  ;;  %v4545_v55 = vpop.f32.mrf.mxu2 }
 0x3be   : > { %v6980_v59 = vld [vmem:[#allocation10 + $0x8f8] sm:$0xf0] }
 0x3bf   : > { %v8528_v58 = vld [vmem:[#allocation10 + $0xadc] sm:$0xf]  ;;  %v6983_v5 = vor.u32 %v8464_v57, %v6980_v59  ;;  %4836 = vmatpush.bf16.msrb.mxu1 %v7783_v52 }
 0x3c0   : > { %v7236_v60 = vld [vmem:[#allocation10 + $0xaf8] sm:$0xf0] }
 0x3c1   : > { %v8592_v63 = vld [vmem:[#allocation10 + $0xcdc] sm:$0xf]  ;;  %v7239_v62 = vor.u32 %v8528_v58, %v7236_v60  ;;  %4798 = vmatpush.bf16.msra.mxu2 %v6983_v5  ;;  %v8699_v5 = vld [vmem:[%s9749_s7 + $0x30] sm:$0xff]  ;;  %v9562_v20 = vpop.f32.mrf.mxu3 }
 0x3c2   : > { %v7492_v61 = vld [vmem:[#allocation10 + $0xcf8] sm:$0xf0] }
 0x3c3   : > { %v8656_v0 = vld [vmem:[#allocation10 + $0xedc] sm:$0xf]  ;;  %v7495_v8 = vor.u32 %v8592_v63, %v7492_v61  ;;  %4811 = vmatpush.bf16.msra.mxu3 %v7239_v62  ;;  %v8700_v61 = vld [vmem:[%s9749_s7 + $0x38] sm:$0xff]  ;;  %v8707_v62 = vld [vmem:[%s9749_s7 + $0x70] sm:$0xff] }
 0x3c4   : > { %v7748_v2 = vld [vmem:[#allocation10 + $0xef8] sm:$0xf0] }
 0x3c5   : > { %v8456_v7 = vld [vmem:[#allocation10 + $0x89c] sm:$0xf]  ;;  %v7751_v21 = vor.u32 %v8656_v0, %v7748_v2  ;;  %4824 = vmatpush.bf16.msrb.mxu0 %v7495_v8  ;;  %v8708_v0 = vld [vmem:[%s9749_s7 + $0x78] sm:$0xff] }
 0x3c6   : > { %v6948_v16 = vld [vmem:[#allocation10 + $0x8b8] sm:$0xf0]  ;;  %v8716_v2 = vld [vmem:[%s9749_s7 + $0xb8] sm:$0xff] }
 0x3c7   : > { %v8520_v6 = vld [vmem:[#allocation10 + $0xa9c] sm:$0xf]  ;;  %v6951_v27 = vor.u32 %v8456_v7, %v6948_v16  ;;  %4837 = vmatpush.bf16.msrb.mxu1 %v7751_v21  ;;  %v8715_v7 = vld [vmem:[%s9749_s7 + $0xb0] sm:$0xff] }
 0x3c8   : > { %v7204_v10 = vld [vmem:[#allocation10 + $0xab8] sm:$0xf0]  ;;  %v8723_v16 = vld [vmem:[%s9749_s7 + $0xf0] sm:$0xff] }
 0x3c9   : > { %v8584_v12 = vld [vmem:[#allocation10 + $0xc9c] sm:$0xf]  ;;  %v7207_v33 = vor.u32 %v8520_v6, %v7204_v10  ;;  %4799 = vmatpush.bf16.msra.mxu2 %v6951_v27  ;;  %v8713_v6 = vld [vmem:[%s9749_s7 + $0xa0] sm:$0xff]  ;;  %v8695_v27 = vld [vmem:[%s9749_s7 + $0x10] sm:$0xff]  ;;  %v4610_v43 = vpop.f32.mrf.mxu3 }
 0x3ca   : > { %v7460_v15 = vld [vmem:[#allocation10 + $0xcb8] sm:$0xf0]  ;;  %v8721_v10 = vld [vmem:[%s9749_s7 + $0xe0] sm:$0xff] }
 0x3cb   : > { %v8648_v17 = vld [vmem:[#allocation10 + $0xe9c] sm:$0xf]  ;;  %v7463_v22 = vor.u32 %v8584_v12, %v7460_v15  ;;  %4812 = vmatpush.bf16.msra.mxu3 %v7207_v33  ;;  %v8696_v12 = vld [vmem:[%s9749_s7 + $0x18] sm:$0xff]  ;;  %v8703_v33 = vld [vmem:[%s9749_s7 + $0x50] sm:$0xff] }
 0x3cc   : > { %v7716_v32 = vld [vmem:[#allocation10 + $0xeb8] sm:$0xf0]  ;;  %v8712_v15 = vld [vmem:[%s9749_s7 + $0x98] sm:$0xff] }
 0x3cd   : > { %v8448_v35 = vld [vmem:[#allocation10 + $0x85c] sm:$0xf]  ;;  %v7719_v28 = vor.u32 %v8648_v17, %v7716_v32  ;;  %4825 = vmatpush.bf16.msrb.mxu0 %v7463_v22  ;;  %v8720_v17 = vld [vmem:[%s9749_s7 + $0xd8] sm:$0xff]  ;;  %v9560_v32 = vpop.f32.mrf.mxu2 }
 0x3ce   : > { %v6916_v19 = vld [vmem:[#allocation10 + $0x878] sm:$0xf0] }
 0x3cf   : > { %v8512_v48 = vld [vmem:[#allocation10 + $0xa5c] sm:$0xf]  ;;  %v6919_v49 = vor.u32 %v8448_v35, %v6916_v19  ;;  %4838 = vmatpush.bf16.msrb.mxu1 %v7719_v28  ;;  %v8711_v35 = vld [vmem:[%s9749_s7 + $0x90] sm:$0xff] }
 0x3d0   : > { %v7172_v42 = vld [vmem:[#allocation10 + $0xa78] sm:$0xf0]  ;;  %v8719_v19 = vld [vmem:[%s9749_s7 + $0xd0] sm:$0xff] }
 0x3d1   : > { %v8576_v18 = vld [vmem:[#allocation10 + $0xc5c] sm:$0xf]  ;;  %v7175_v45 = vor.u32 %v8512_v48, %v7172_v42  ;;  %4800 = vmatpush.bf16.msra.mxu2 %v6919_v49  ;;  %v4847_v49 = vmax.f32 %v9428_v11, 0.0  ;;  %v8740_v11 = vld [vmem:[%s9749_s7 + $0x178] sm:$0xff] }
 0x3d2   : > { %v7428_v44 = vld [vmem:[#allocation10 + $0xc78] sm:$0xf0] }
 0x3d3   : > { %v8640_v25 = vld [vmem:[#allocation10 + $0xe5c] sm:$0xf]  ;;  %v7431_v53 = vor.u32 %v8576_v18, %v7428_v44  ;;  %4813 = vmatpush.bf16.msra.mxu3 %v7175_v45  ;;  %v8693_v44 = vld [vmem:[%s9749_s7] sm:$0xff]  ;;  %v4855_v55 = vpack.c.bf16 %v4847_v49, %v4847_v49  ;;  %v8756_v49 = vld [vmem:[%s9749_s7 + $0x1f8] sm:$0xff] }
 0x3d4   : > { %v7684_v41 = vld [vmem:[#allocation10 + $0xe78] sm:$0xf0]  ;;  %v8709_v45 = vld [vmem:[%s9749_s7 + $0x80] sm:$0xff] }
 0x3d5   : > { %v8440_v36 = vld [vmem:[#allocation10 + $0x81c] sm:$0xf]  ;;  %v7687_v54 = vor.u32 %v8640_v25, %v7684_v41  ;;  %4826 = vmatpush.bf16.msrb.mxu0 %v7431_v53  ;;  %v4597_v18 = vpop.f32.mrf.mxu2  ;;  %v8701_v25 = vld [vmem:[%s9749_s7 + $0x40] sm:$0xff]  ;;  %v4846_v41 = vmax.f32 %v9411_v1, 0.0  ;;  %v4849_v53 = vmax.f32 %v9464_v31, 0.0  ;;  %v8732_v1 = vld [vmem:[%s9749_s7 + $0x138] sm:$0xff] }
 0x3d6   : > { %v6884_v50 = vld [vmem:[#allocation10 + $0x838] sm:$0xf0] }
 0x3d7   : > { %v8504_v51 = vld [vmem:[#allocation10 + $0xa1c] sm:$0xf]  ;;  %v6887_v52 = vor.u32 %v8440_v36, %v6884_v50  ;;  %4839 = vmatpush.bf16.msrb.mxu1 %v7687_v54  ;;  %v8717_v36 = vld [vmem:[%s9749_s7 + $0xc0] sm:$0xff]  ;;  %v4848_v50 = vmax.f32 %v9445_v13, 0.0  ;;  %v4854_v54 = vpack.c.bf16 %v4846_v41, %v4846_v41  ;;  %v8748_v13 = vld [vmem:[%s9749_s7 + $0x1b8] sm:$0xff]  ;;  %v4857_v31 = vpack.c.bf16 %v4849_v53, %v4849_v53 }
 0x3d8   : > { %v7140_v57 = vld [vmem:[#allocation10 + $0xa38] sm:$0xf0]  ;;  %v8755_v53 = vld [vmem:[%s9749_s7 + $0x1f0] sm:$0xff] }
 0x3d9   : > { %v8568_v38 = vld [vmem:[#allocation10 + $0xc1c] sm:$0xf]  ;;  %v7143_v60 = vor.u32 %v8504_v51, %v7140_v57  ;;  %4801 = vmatpush.bf16.msra.mxu2 %v6887_v52  ;;  %v4856_v56 = vpack.c.bf16 %v4848_v50, %v4848_v50  ;;  %v8731_v51 = vld [vmem:[%s9749_s7 + $0x130] sm:$0xff] }
 0x3da   : > { %v7396_v59 = vld [vmem:[#allocation10 + $0xc38] sm:$0xf0]  ;;  %v8739_v57 = vld [vmem:[%s9749_s7 + $0x170] sm:$0xff] }
 0x3db   : > { %v8632_v58 = vld [vmem:[#allocation10 + $0xe1c] sm:$0xf]  ;;  %v7399_v39 = vor.u32 %v8568_v38, %v7396_v59  ;;  %4814 = vmatpush.bf16.msra.mxu3 %v7143_v60  ;;  %v8747_v38 = vld [vmem:[%s9749_s7 + $0x1b0] sm:$0xff] }
 0x3dc   : > { %v7652_v47 = vld [vmem:[#allocation10 + $0xe38] sm:$0xf0]  ;;  %4802 = vmatmul.bf16.vlgmr.msra.gmra.mxu2 %v9377_v29 }
 0x3dd   : > { %v7655_v63 = vor.u32 %v8632_v58, %v7652_v47  ;;  %4827 = vmatpush.bf16.msrb.mxu0 %v7399_v39  ;;  %5375 = vmatpush.bf16.msrb.mxu2 %v8700_v61  ;;  %v8698_v8 = vld [vmem:[%s9749_s7 + $0x28] sm:$0xff]  ;;  %v8729_v39 = vld [vmem:[%s9749_s7 + $0x120] sm:$0xff]  ;;  %v4596_v61 = vadd.f32 %v9560_v32, %v9490_v37  ;;  %v8744_v37 = vld [vmem:[%s9749_s7 + $0x198] sm:$0xff]  ;;  %v4850_v32 = vmax.f32 %v9481_v40, 0.0 }
 0x3de   : > { %4815 = vmatmul.bf16.vlgmr.msra.gmra.mxu3 %v9379_v30  ;;  %v8706_v21 = vld [vmem:[%s9749_s7 + $0x68] sm:$0xff] }
 0x3df   : > { %4840 = vmatpush.bf16.msrb.mxu1 %v7655_v63  ;;  %5388 = vmatpush.bf16.msrb.mxu3 %v8708_v0  ;;  %v8714_v29 = vld [vmem:[%s9749_s7 + $0xa8] sm:$0xff]  ;;  %v8737_v63 = vld [vmem:[%s9749_s7 + $0x160] sm:$0xff] }
 0x3e0   : > { %4828 = vmatmul.bf16.vlgmr.msrb.gmra.mxu0 %v9381_v34  ;;  %v8722_v30 = vld [vmem:[%s9749_s7 + $0xe8] sm:$0xff]  ;;  %v9532_v34 = vpop.f32.mrf.mxu0  ;;  %v8745_v0 = vld [vmem:[%s9749_s7 + $0x1a0] sm:$0xff] }
 0x3e1   : > { %5401 = vmatpush.bf16.msra.mxu0 %v8716_v2  ;;  %5376 = vmatpush.bf16.msrb.mxu2 %v8699_v5  ;;  %v8694_v22 = vld [vmem:[%s9749_s7 + $0x8] sm:$0xff]  ;;  %v8728_v2 = vld [vmem:[%s9749_s7 + $0x118] sm:$0xff]  ;;  %v4609_v5 = vadd.f32 %v9562_v20, %v4596_v61  ;;  %v4004_v20 = vperm.slane %v9487_v3, 6 }
 0x3e2   : > { %4841 = vmatmul.bf16.vlgmr.msrb.gmra.mxu1 %v9383_v23  ;;  %v9534_v23 = vpop.f32.mrf.mxu1  ;;  %v8702_v28 = vld [vmem:[%s9749_s7 + $0x48] sm:$0xff] }
 0x3e3   : > { %5414 = vmatpush.bf16.msra.mxu1 %v8724_v4  ;;  %5389 = vmatpush.bf16.msrb.mxu3 %v8707_v62  ;;  %v8710_v48 = vld [vmem:[%s9749_s7 + $0x88] sm:$0xff]  ;;  %v8736_v4 = vld [vmem:[%s9749_s7 + $0x158] sm:$0xff]  ;;  %v4647_v62 = vpop.f32.mrf.mxu2 }
 0x3e4   : > { %v8718_v42 = vld [vmem:[%s9749_s7 + $0xc8] sm:$0xff] }
 0x3e5   : > { %5402 = vmatpush.bf16.msra.mxu0 %v8715_v7  ;;  %5377 = vmatpush.bf16.msrb.mxu2 %v8698_v8  ;;  %v8730_v59 = vld [vmem:[%s9749_s7 + $0x128] sm:$0xff]  ;;  %v4660_v7 = vpop.f32.mrf.mxu3 }
 0x3e6   : > { %v8738_v58 = vld [vmem:[%s9749_s7 + $0x168] sm:$0xff] }
 0x3e7   : > { %5415 = vmatpush.bf16.msra.mxu1 %v8723_v16  ;;  %5390 = vmatpush.bf16.msrb.mxu3 %v8706_v21  ;;  %v8746_v47 = vld [vmem:[%s9749_s7 + $0x1a8] sm:$0xff]  ;;  %v8727_v21 = vld [vmem:[%s9749_s7 + $0x110] sm:$0xff] }
 0x3e8   : > { %v4623_v24 = vpop.f32.mrf.mxu0 }
 0x3e9   : > { %5403 = vmatpush.bf16.msra.mxu0 %v8714_v29  ;;  %5378 = vmatpush.bf16.msrb.mxu2 %v8697_v9  ;;  %v8735_v29 = vld [vmem:[%s9749_s7 + $0x150] sm:$0xff]  ;;  %v8741_v24 = vld [vmem:[%s9749_s7 + $0x180] sm:$0xff] }
 0x3ea   : > { %v4636_v26 = vpop.f32.mrf.mxu1  ;;  %v8743_v9 = vld [vmem:[%s9749_s7 + $0x190] sm:$0xff] }
 0x3eb   : > { %5416 = vmatpush.bf16.msra.mxu1 %v8722_v30  ;;  %5391 = vmatpush.bf16.msrb.mxu3 %v8705_v46  ;;  %v4622_v30 = vadd.f32 %v9532_v34, %v4609_v5  ;;  %v8726_v46 = vld [vmem:[%s9749_s7 + $0x108] sm:$0xff]  ;;  %v4858_v26 = vpack.c.bf16 %v4850_v32, %v4850_v32 }
 0x3ec   : > { %v8742_v34 = vld [vmem:[%s9749_s7 + $0x188] sm:$0xff] }
 0x3ed   : > { %5404 = vmatpush.bf16.msra.mxu0 %v8713_v6  ;;  %5379 = vmatpush.bf16.msrb.mxu2 %v8696_v12  ;;  %v8734_v6 = vld [vmem:[%s9749_s7 + $0x148] sm:$0xff]  ;;  %v4649_v12 = vpop.f32.mrf.mxu2 }
 0x3ef   : > { %5417 = vmatpush.bf16.msra.mxu1 %v8721_v10  ;;  %5392 = vmatpush.bf16.msrb.mxu3 %v8704_v14  ;;  %v4635_v10 = vadd.f32 %v9534_v23, %v4622_v30  ;;  %v4662_v14 = vpop.f32.mrf.mxu3 }
 0x3f0   : > { %v4673_v52 = vpop.f32.mrf.mxu0 }
 0x3f1   : > { %5405 = vmatpush.bf16.msra.mxu0 %v8712_v15  ;;  %5380 = vmatpush.bf16.msrb.mxu2 %v8695_v27  ;;  %v8725_v15 = vld [vmem:[%s9749_s7 + $0x100] sm:$0xff]  ;;  %v4851_v23 = vmax.f32 %v4635_v10, 0.0 }
 0x3f2   : > { %v4686_v60 = vpop.f32.mrf.mxu1 }
 0x3f3   : > { %5418 = vmatpush.bf16.msra.mxu1 %v8720_v17  ;;  %5393 = vmatpush.bf16.msrb.mxu3 %v8703_v33  ;;  %v8733_v17 = vld [vmem:[%s9749_s7 + $0x140] sm:$0xff]  ;;  %v4859_v27 = vpack.c.bf16 %v4851_v23, %v4851_v23  ;;  %v4648_v33 = vadd.f32 %v4647_v62, %v4004_v20 }
 0x3f5   : > { %5406 = vmatpush.bf16.msra.mxu0 %v8711_v35  ;;  %5381 = vmatpush.bf16.msrb.mxu2 %v8694_v22  ;;  %v4661_v35 = vadd.f32 %v4660_v7, %v4648_v33 }
 0x3f7   : > { %5419 = vmatpush.bf16.msra.mxu1 %v8719_v19  ;;  %5394 = vmatpush.bf16.msrb.mxu3 %v8702_v28  ;;  %v4674_v19 = vadd.f32 %v4673_v52, %v4661_v35  ;;  %v8749_v52 = vld [vmem:[%s9749_s7 + $0x1c0] sm:$0xff] }
 0x3f8   : > { %v4675_v16 = vpop.f32.mrf.mxu0 }
 0x3f9   : > { %5407 = vmatpush.bf16.msra.mxu0 %v8710_v48  ;;  %5382 = vmatpush.bf16.msrb.mxu2 %v8693_v44  ;;  %v4687_v28 = vadd.f32 %v4686_v60, %v4674_v19 }
 0x3fa   : > { %v4688_v8 = vpop.f32.mrf.mxu1 }
 0x3fb   : > { %5420 = vmatpush.bf16.msra.mxu1 %v8718_v42  ;;  %5395 = vmatpush.bf16.msrb.mxu3 %v8701_v25 }
 0x3fc   : > { %5383 = vmatmul.bf16.vlgmr.msrb.gmra.mxu2 %v4854_v54  ;;  %v8754_v54 = vld [vmem:[%s9749_s7 + $0x1e8] sm:$0xff] }
 0x3fd   : > { %5408 = vmatpush.bf16.msra.mxu0 %v8709_v45  ;;  %5427 = vmatpush.bf16.msra.mxu2 %v8732_v1 }
 0x3fe   : > { %5396 = vmatmul.bf16.vlgmr.msrb.gmra.mxu3 %v4855_v55  ;;  %v8753_v55 = vld [vmem:[%s9749_s7 + $0x1e0] sm:$0xff] }
 0x3ff   : > { %5421 = vmatpush.bf16.msra.mxu1 %v8717_v36  ;;  %5440 = vmatpush.bf16.msra.mxu3 %v8740_v11 }
 0x400   : > { %5409 = vmatmul.bf16.vlgmr.msra.gmra.mxu0 %v4856_v56  ;;  %v4725_v22 = vpop.f32.mrf.mxu0  ;;  %v4699_v48 = vpop.f32.mrf.mxu2 }
 0x401   : > { %5453 = vmatpush.bf16.msrb.mxu0 %v8748_v13  ;;  %5428 = vmatpush.bf16.msra.mxu2 %v8731_v51  ;;  %v4700_v18 = vadd.f32 %v4699_v48, %v4687_v28  ;;  %v8752_v13 = vld [vmem:[%s9749_s7 + $0x1d8] sm:$0xff]  ;;  %v8751_v51 = vld [vmem:[%s9749_s7 + $0x1d0] sm:$0xff] }
 0x402   : > { %5422 = vmatmul.bf16.vlgmr.msra.gmra.mxu1 %v4857_v31  ;;  %v4738_v40 = vpop.f32.mrf.mxu1  ;;  %v4712_v42 = vpop.f32.mrf.mxu3 }
 0x403   : > { %5441 = vmatpush.bf16.msra.mxu3 %v8739_v57  ;;  %v4713_v43 = vadd.f32 %v4712_v42, %v4700_v18  ;;  %5466 = vmatpush.bf16.msrb.mxu1 %v8756_v49 }
 0x405   : > { %5454 = vmatpush.bf16.msrb.mxu0 %v8747_v38  ;;  %5429 = vmatpush.bf16.msra.mxu2 %v8730_v59  ;;  %v4726_v41 = vadd.f32 %v4725_v22, %v4713_v43 }
 0x407   : > { %5442 = vmatpush.bf16.msra.mxu3 %v8738_v58  ;;  %v4739_v45 = vadd.f32 %v4738_v40, %v4726_v41  ;;  %5467 = vmatpush.bf16.msrb.mxu1 %v8755_v53  ;;  %v9185_v53 = vmov 3.0  }
 0x408   : > { %v4727_v44 = vpop.f32.mrf.mxu0  ;;  %v4701_v36 = vpop.f32.mrf.mxu2  ;;  %8878 = vrcp.f32 %v9185_v53 }
 0x409   : > { %5455 = vmatpush.bf16.msrb.mxu0 %v8746_v47  ;;  %5430 = vmatpush.bf16.msra.mxu2 %v8729_v39  ;;  %v4852_v1 = vmax.f32 %v4739_v45, 0.0  ;;  %v8750_v47 = vld [vmem:[%s9749_s7 + $0x1c8] sm:$0xff]  ;;  %v9183_v44 = vmov 0  }
 0x40a   : > { %v4740_v25 = vpop.f32.mrf.mxu1  ;;  %v4714_v50 = vpop.f32.mrf.mxu3  ;;  %8874 = vset.pattern.permute.xlu1 %v9183_v44  ;;  %8875 = vset.pattern.permute.xlu0 %v9183_v44 }
 0x40b   : > { %5443 = vmatpush.bf16.msra.mxu3 %v8737_v63  ;;  %v4860_v11 = vpack.c.bf16 %v4852_v1, %v4852_v1  ;;  %5468 = vmatpush.bf16.msrb.mxu1 %v8754_v54  ;;  %v4005_v63 = vperm.slane %v9487_v3, 7 }
 0x40d   : > { %5456 = vmatpush.bf16.msrb.mxu0 %v8745_v0  ;;  %5431 = vmatpush.bf16.msra.mxu2 %v8728_v2 }
 0x40e   : > { %v8879_v1 = vpop.eup %8878 }
 0x40f   : > { %5444 = vmatpush.bf16.msra.mxu3 %v8736_v4  ;;  %5469 = vmatpush.bf16.msrb.mxu1 %v8753_v55  ;;  %vm5492_vm3 = vweird.f32 %v8879_v1 }
 0x411   : > { %5457 = vmatpush.bf16.msrb.mxu0 %v8744_v37  ;;  %5432 = vmatpush.bf16.msra.mxu2 %v8727_v21 }
 0x413   : > { %5445 = vmatpush.bf16.msra.mxu3 %v8735_v29  ;;  %5470 = vmatpush.bf16.msrb.mxu1 %v8752_v13 }
 0x415   : > { %5458 = vmatpush.bf16.msrb.mxu0 %v8743_v9  ;;  %5433 = vmatpush.bf16.msra.mxu2 %v8726_v46 }
 0x417   : > { %5446 = vmatpush.bf16.msra.mxu3 %v8734_v6  ;;  %5471 = vmatpush.bf16.msrb.mxu1 %v8751_v51 }
 0x419   : > { %5459 = vmatpush.bf16.msrb.mxu0 %v8742_v34  ;;  %5434 = vmatpush.bf16.msra.mxu2 %v8725_v15  ;;  %v4990_v34 = vld [vmem:[#allocation13] sm:$0x1] }
 0x41b   : > { %5447 = vmatpush.bf16.msra.mxu3 %v8733_v17  ;;  %5472 = vmatpush.bf16.msrb.mxu1 %v8750_v47 }
 0x41c   : > { %5435 = vmatmul.bf16.vlgmr.msra.gmra.mxu2 %v4858_v26 }
 0x41d   : > { %5460 = vmatpush.bf16.msrb.mxu0 %v8741_v24 }
 0x41e   : > { %5448 = vmatmul.bf16.vlgmr.msra.gmra.mxu3 %v4859_v27  ;;  %v4777_v56 = vpop.f32.mrf.mxu0 }
 0x41f   : > { %5473 = vmatpush.bf16.msrb.mxu1 %v8749_v52 }
 0x420   : > { %5461 = vmatmul.bf16.vlgmr.msrb.gmra.mxu0 %v4860_v11  ;;  %v4790_v31 = vpop.f32.mrf.mxu1  ;;  %v4751_v57 = vpop.f32.mrf.mxu2  ;;  %v5488_v11 = vmul.f32 3.0, %v8879_v1 }
 0x421   : > { %v4752_v61 = vadd.f32 %v4751_v57, %v4005_v63 }
 0x422   : > { %v4764_v38 = vpop.f32.mrf.mxu3  ;;  %v5489_v54 = vsub.f32 1.0, %v5488_v11 }
 0x423   : > { %v4765_v0 = vadd.f32 %v4764_v38, %v4752_v61 }
 0x424   : > { %v5490_v55 = vmul.f32 %v8879_v1, %v5489_v54 }
 0x425   : > { %v4778_v2 = vadd.f32 %v4777_v56, %v4765_v0 }
 0x426   : > { %v4779_v59 = vpop.f32.mrf.mxu0  ;;  %v5491_v13 = vadd.f32 %v8879_v1, %v5490_v55 }
 0x427   : > { %v4791_v62 = vadd.f32 %v4790_v31, %v4778_v2 }
 0x428   : > { %v4792_v58 = vpop.f32.mrf.mxu1  ;;  %v4753_v60 = vpop.f32.mrf.mxu2  ;;  %v5493_v56 = vsel %vm5492_vm3, %v8879_v1, %v5491_v13 }
 0x42a   : > { %v4766_v39 = vpop.f32.mrf.mxu3 }
 0x45d   : > { %v4829_v4 = vpop.f32.mrf.mxu0 }
 0x45f   : > { %v4842_v5 = vpop.f32.mrf.mxu1  ;;  %v4803_v7 = vpop.f32.mrf.mxu2 }
 0x460   : > { %v4804_v16 = vadd.f32 %v4803_v7, %v4791_v62 }
 0x461   : > { %v4816_v37 = vpop.f32.mrf.mxu3 }
 0x462   : > { %v4817_v8 = vadd.f32 %v4816_v37, %v4804_v16 }
 0x464   : > { %v4830_v30 = vadd.f32 %v4829_v4, %v4817_v8 }
 0x465   : > { %v4831_v21 = vpop.f32.mrf.mxu0 }
 0x466   : > { %v4843_v9 = vadd.f32 %v4842_v5, %v4830_v30 }
 0x467   : > { %v4844_v29 = vpop.f32.mrf.mxu1  ;;  %v4805_v46 = vpop.f32.mrf.mxu2 }
 0x468   : > { %v4853_v10 = vmax.f32 %v4843_v9, 0.0 }
 0x469   : > { %v4818_v6 = vpop.f32.mrf.mxu3 }
 0x46a   : > { %v4861_v12 = vpack.c.bf16 %v4853_v10, %v4853_v10 }
 0x46c   : > { %5474 = vmatmul.bf16.vlgmr.msrb.gmra.mxu1 %v4861_v12 }
 0x47d   : > { %v5410_v3 = vpop.f32.mrf.mxu0 }
 0x47f   : > { %v5423_v14 = vpop.f32.mrf.mxu1  ;;  %v5384_v15 = vpop.f32.mrf.mxu2 }
 0x480   : > { %v5385_v32 = vadd.f32 %v5384_v15, %v4990_v34 }
 0x481   : > { %v5397_v17 = vpop.f32.mrf.mxu3 }
 0x482   : > { %v5398_v23 = vadd.f32 %v5397_v17, %v5385_v32 }
 0x484   : > { %v5411_v26 = vadd.f32 %v5410_v3, %v5398_v23 }
 0x485   : > { %v5412_v20 = vpop.f32.mrf.mxu0 }
 0x486   : > { %v5424_v27 = vadd.f32 %v5423_v14, %v5411_v26 }
 0x487   : > { %v5425_v24 = vpop.f32.mrf.mxu1  ;;  %v5386_v33 = vpop.f32.mrf.mxu2 }
 0x489   : > { %v5399_v35 = vpop.f32.mrf.mxu3 }
 0x49d   : > { %v5462_v18 = vpop.f32.mrf.mxu0 }
 0x49f   : > { %v5436_v19 = vpop.f32.mrf.mxu2 }
 0x4a0   : > { %v5437_v40 = vadd.f32 %v5436_v19, %v5424_v27 }
 0x4a1   : > { %v5449_v22 = vpop.f32.mrf.mxu3 }
 0x4a2   : > { %v5450_v28 = vadd.f32 %v5449_v22, %v5437_v40 }
 0x4a4   : > { %v5463_v25 = vadd.f32 %v5462_v18, %v5450_v28 }
 0x4a5   : > { %v5464_v43 = vpop.f32.mrf.mxu0 }
 0x4a7   : > { %v5438_v48 = vpop.f32.mrf.mxu2 }
 0x4a9   : > { %v5451_v42 = vpop.f32.mrf.mxu3 }
 0x4e9   : > { %v5475_v41 = vpop.f32.mrf.mxu1 }
 0x4ea   : > { %v5476_v49 = vadd.f32 %v5475_v41, %v5463_v25 }
 0x4ec   : > { %5497 = vperm.xlu1 %8874, %v5476_v49   ;;  %5480 = vrot.lane.b32.xlu0 %v5476_v49, %s9184_s25 }
 0x4f1   : > { %v5477_v45 = vpop.f32.mrf.mxu1 }
 0x55e   : > { %v5481_v36 = vpop.permute.xlu0 %5480  ;;  %v5498_v38 = vpop.permute.xlu1 %5497 }
 0x55f   : > { %v5484_v50 = vsel %vm5483_vm2, %v5481_v36, 0.0 }
 0x560   : > { %5485 = vadd.xlane.f32.xlu0 %v5484_v50 }
 0x5d3   : > { %v5486_v31 = vpop.xlane.xlu0 %5485 }
 0x5d4   : > { %v5494_v51 = vmul.f32 %v5493_v56, %v5486_v31 }
 0x5d6   : > { %v5495_v57 = vsub.f32 %v5476_v49, %v5494_v51 }
 0x5d8   : > { %v5500_v59 = vadd.f32 %v5498_v38, %v5495_v57 }
 0x5da   : > { %5502 = vrot.lane.b32.xlu1 %v5500_v59, %s9184_s25 }
 0x64c   : > { %v5503_v58 = vpop.permute.xlu1 %5502 }
 0x64d   : > { %5505 = vst.msk [vmem:[%s432_s16] sm:$0x1] %vm5483_vm2, %v5503_v58 }
 0x64e   : > { %9119 = shalt.err (!%p9116_p8)
}
 0x64f   : > { %8785 = dma.vmem_to_hbm [thread:$0]  (%p9274_p5), %s5518_s2, 16, %s5520_s17, %s5507_s26  }
 0x650 PF: > { %p8827_p9 = scmp.ge.s32.totalorder %s9170_s12, 2  ;;  %s5531_s14 = sand.u32 1, %s9158_s30  }
 0x651   : > { %s5532_s23 = scalar_lea.sflag [#allocation4], %s5531_s14 }
 0x652   : > { %p8810_p10 = pnand %p8827_p9, %p9278_p6 }
 0x654   : > { %p8811_p11 = pneg %p8810_p10 }
 0x656   : > { %9153 = dma.done.wait (%p8811_p11), %s5532_s23, 16  }
 0x657   : > { %9155 = vsyncadd (%p8811_p11), %s5532_s23, 4294967280  ;;  %s9767_s24 = sld [smem:[#allocation20_spill]]  ;;  %p23_p12 = scmp.ge.s32.totalorder %s9261_s15, 4  }
 0x658   : > { %s9768_s30 = smov %s9162_s10  ;;  %s9769_s10 = smov %s9166_s11 }
 0x659   : > { %s9771_s12 = smov %s9261_s15  ;;  %25 = sbr.rel (!%p23_p12) target bundleno = 13 (0xd), region = 120 }
 0x65d   : > { %s9770_s11 = smov %s9767_s24 }
 0x65e   :  { %5537 = vsyncpa [#allocation3], 1 }
 0x65f   :  { %5539 = vsyncpa [#allocation3 + $0x1], 1 }
 0x660   :  { %5540 = vsyncpa [#allocation6], 1 }
 0x661   :  { %5541 = vsyncpa [#allocation9], 1 }
 0x662   :  { %5542 = vsyncpa [#allocation12], 1 }
 0x663   :  { %5543 = vsyncpa [#allocation4], 1 }
 0x664   :  { %5545 = vsyncpa [#allocation4 + $0x1], 1 }

</bundles_post_ra>
